<compile_context>
chip_gen: v7x
topology: tpu7x:2x2x1
jax: 0.10.0
libtpu: 0.0.40
codegen_flags: <defaults>
</compile_context>

<pallas_src>
import functools
import math

import numpy as np
import jax
import jax.numpy as jnp
from jax.experimental import pallas as pl
from jax.experimental.pallas import tpu as pltpu


# ---------------------------------------------------------------------------
# Kernel 1: fused [fc1 | ctx] 3x3 conv (BN folded) + ReLU + head matmul.
# grid = (N,), one batch element per step ("parallel" for megacore).
# Weights are small ((1152,128) + (128,256) bf16) and stay resident in VMEM.
# ---------------------------------------------------------------------------
def _conv3x3_head_kernel(xp_ref, w3_ref, b3_ref, wh_ref, bh_ref, o_ref,
                         *, h, w, cin, mid2):
    xfull = xp_ref[0]                                      # (h+2, w+2, cin) bf16
    acc = jnp.zeros((h * w, mid2), jnp.float32)
    tap = 0
    for kh in range(3):                                    # 9 taps, unrolled
        for kw in range(3):
            patch = xfull[kh:kh + h, kw:kw + w, :].reshape(h * w, cin)
            acc = acc + jnp.dot(patch, w3_ref[tap * cin:(tap + 1) * cin, :],
                                preferred_element_type=jnp.float32)
            tap += 1
    hid = jnp.maximum(acc + b3_ref[...], 0.0).astype(jnp.bfloat16)   # (h*w, 2*mid)
    slab = jnp.dot(hid, wh_ref[...],
                   preferred_element_type=jnp.float32) + bh_ref[...]  # (h*w, cpad)
    o_ref[0] = slab.reshape(h, w, slab.shape[-1]).astype(o_ref.dtype)


def conv3x3_head(yp, w3, b3, wh, bh, *, h, w, out_dtype=jnp.bfloat16):
    """yp: (N, h+2, w+2, Cin) halo-padded NHWC bf16 -> (N, h, w, cpad) slab."""
    N = yp.shape[0]
    cin = yp.shape[-1]
    k9, mid2 = w3.shape
    cpad = wh.shape[-1]
    b3 = jnp.asarray(b3, jnp.float32).reshape(1, mid2)
    bh = jnp.asarray(bh, jnp.float32).reshape(1, cpad)

    flops = 2 * N * h * w * (k9 * mid2 + mid2 * cpad)
    bytes_accessed = int(yp.size * yp.dtype.itemsize
                         + w3.size * w3.dtype.itemsize
                         + wh.size * wh.dtype.itemsize
                         + N * h * w * cpad * np.dtype(out_dtype).itemsize)

    kernel = functools.partial(_conv3x3_head_kernel, h=h, w=w, cin=cin, mid2=mid2)
    return pl.pallas_call(
        kernel,
        out_shape=jax.ShapeDtypeStruct((N, h, w, cpad), out_dtype),
        grid=(N,),
        in_specs=[
            pl.BlockSpec((1, h + 2, w + 2, cin), lambda n: (n, 0, 0, 0)),
            pl.BlockSpec((k9, mid2), lambda n: (0, 0)),     # resident weights
            pl.BlockSpec((1, mid2), lambda n: (0, 0)),
            pl.BlockSpec((mid2, cpad), lambda n: (0, 0)),   # resident head
            pl.BlockSpec((1, cpad), lambda n: (0, 0)),
        ],
        out_specs=pl.BlockSpec((1, h, w, cpad), lambda n: (n, 0, 0, 0)),
        compiler_params=pltpu.CompilerParams(dimension_semantics=("parallel",)),
        cost_estimate=pl.CostEstimate(flops=flops, transcendentals=0,
                                      bytes_accessed=bytes_accessed),
    )(yp, w3, b3, wh, bh)


# ---------------------------------------------------------------------------
# Kernel 2: channels-last bilinear upsample (align_corners=False) — pure VPU
# lerps with static interpolation tables; lane-dense cpad output, f32 result.
# ---------------------------------------------------------------------------
def _interp_table(in_size, out_size):
    scale = in_size / out_size
    tab = []
    for o in range(out_size):
        src = max((o + 0.5) * scale - 0.5, 0.0)
        i0 = min(int(math.floor(src)), in_size - 1)
        i1 = min(i0 + 1, in_size - 1)
        frac = float(src - i0)
        tab.append((i0, i1, frac))
    return tuple(tab)


def _bilinear_kernel(s_ref, o_ref, *, htab, wtab):
    x = s_ref[0].astype(jnp.float32)                       # (h, w, cpad)
    # width pass: one lane-dense (W, cpad) row per *input* row
    wrow = {}
    needed = sorted({t[0] for t in htab} | {t[1] for t in htab})
    for y in needed:
        cols = []
        for (x0, x1, fx) in wtab:
            if x0 == x1 or fx == 0.0:
                cols.append(x[y, x0, :])
            else:
                cols.append((1.0 - fx) * x[y, x0, :] + fx * x[y, x1, :])
        wrow[y] = jnp.stack(cols, axis=0)                  # (W, cpad)
    # height pass: write each output row directly
    for oy, (y0, y1, fy) in enumerate(htab):
        if y0 == y1 or fy == 0.0:
            r = wrow[y0]
        else:
            r = (1.0 - fy) * wrow[y0] + fy * wrow[y1]
        o_ref[0, oy] = r.astype(o_ref.dtype)


def bilinear_decode(slab, H, W, *, out_dtype=jnp.float32):
    """slab: (N, h, w, cpad) bf16 -> (N, H, W, cpad) out_dtype."""
    N, h, w, cpad = slab.shape
    htab = _interp_table(h, H)
    wtab = _interp_table(w, W)
    kernel = functools.partial(_bilinear_kernel, htab=htab, wtab=wtab)
    return pl.pallas_call(
        kernel,
        out_shape=jax.ShapeDtypeStruct((N, H, W, cpad), out_dtype),
        grid=(N,),
        in_specs=[pl.BlockSpec((1, h, w, cpad), lambda n: (n, 0, 0, 0))],
        out_specs=pl.BlockSpec((1, H, W, cpad), lambda n: (n, 0, 0, 0)),
        compiler_params=pltpu.CompilerParams(dimension_semantics=("parallel",)),
    )(slab)


# ---------------------------------------------------------------------------
# Parameter construction (mirrors ExtentNet.__init__, '1relu'), with BN /
# op2sem group-mean / head fusion folded offline.
# ---------------------------------------------------------------------------
def build_extentnet(key, inplanes=128, outstride=4):
    # TODO(synk): real backbones give inplanes=512/1024, outstride=8/16;
    # scaled down for a small synthetic run.
    output_dims = {k: 0 for k in range(1, 18)}
    output_dims[397] = 0
    output_dims[3] = 2
    output_dims[7] = 3
    output_dims = {int(k): v for k, v in output_dims.items()}

    op2sem = [[0]]
    _pmapt = sorted(list(output_dims))
    _pmapt.pop(17)
    _pmapt.insert(10, 397)
    obj_ids = _pmapt
    j = 0
    Ncls = len(output_dims) + 1
    for i, k in enumerate(obj_ids, 1):
        v = output_dims[k]
        inds = [i]
        if v > 0:
            inds.extend(list(range(Ncls + j, Ncls + j + v)))
            op2sem.append(inds)
            j += 1
        else:
            op2sem.append([i])

    breakup = [1, 4]
    split_tensor = [1]
    for _ in sorted(output_dims):
        split_tensor.extend(breakup)
    for k2 in sorted(output_dims):
        v = output_dims[k2]
        if v > 0:
            split_tensor.extend(v * breakup)
    split_tensor = np.asarray(split_tensor, np.int64)
    cumsum = np.cumsum(split_tensor) - 1
    bbox_starts = cumsum[np.nonzero(split_tensor == 4)[0] - 1] + 1
    bbox_inds = np.concatenate([np.arange(v, v + 4) for v in bbox_starts])
    objout = len(bbox_inds[:4 * (Ncls - 1)])
    partout = len(bbox_inds[4 * (Ncls - 1):])

    num_classes = sum(len(v) for v in op2sem)
    n_groups = len(op2sem)
    mid = inplanes // 2

    # op2sem group-mean folded into fc2 (exact: no nonlinearity after fc2).
    mix = np.zeros((num_classes, n_groups), np.float32)
    for g, inds in enumerate(op2sem):
        for c in inds:
            mix[c, g] = 1.0 / len(inds)
    mix = jnp.asarray(mix)

    ks = jax.random.split(key, 12)

    def conv3_w(k, cin, cout):                 # stored (kh, kw, cin, cout)
        std = math.sqrt(2.0 / (9 * cout))
        return (std * jax.random.normal(k, (3, 3, cin, cout), jnp.float32)
                ).reshape(9 * cin, cout)

    def conv1_w(k, cin, cout):
        std = math.sqrt(2.0 / cout)
        return std * jax.random.normal(k, (cin, cout), jnp.float32)

    def conv_b(k, cin_eff, cout):
        bound = 1.0 / math.sqrt(cin_eff)
        return jax.random.uniform(k, (cout,), jnp.float32, -bound, bound)

    # BatchNorm folded in eval mode (gamma=1, beta=0, running stats 0/1).
    # TODO(synk): PyTorch training-mode batch statistics not reproduced.
    bn_scale = jnp.float32(1.0 / math.sqrt(1.0 + 1e-5))

    stem_w = math.sqrt(2.0 / inplanes) * jax.random.normal(ks[0], (3, inplanes), jnp.float32)
    stem_b = conv_b(ks[1], 3, inplanes)

    fc1_w = conv3_w(ks[2], inplanes, mid)
    fc1_b = conv_b(ks[3], 9 * inplanes, mid)
    fc2_w = conv1_w(ks[4], mid, num_classes)
    fc2_b = conv_b(ks[5], mid, num_classes)
    ctx_w = conv3_w(ks[6], inplanes, mid)
    ctx_b = conv_b(ks[7], 9 * inplanes, mid)
    obj_w = conv1_w(ks[8], mid, objout)
    obj_b = conv_b(ks[9], mid, objout)
    part_w = conv1_w(ks[10], mid, partout)
    part_b = conv_b(ks[11], mid, partout)

    # fuse [fc1 | ctx] 3x3 convs; BN folded into weights/bias.
    conv3_w_f = jnp.concatenate([fc1_w * bn_scale, ctx_w * bn_scale], axis=1)   # (9*Cin, 2*mid)
    conv3_b_f = jnp.concatenate([fc1_b * bn_scale, ctx_b * bn_scale])           # (2*mid,)

    # fuse [sem | cat | obj | part] heads into one lane-dense slab.
    ctot = n_groups + num_classes + objout + partout
    cpad = ((ctot + 127) // 128) * 128
    pad_extra = cpad - ctot
    top = jnp.concatenate(
        [fc2_w @ mix, fc2_w,
         jnp.zeros((mid, objout + partout + pad_extra), jnp.float32)], axis=1)
    bot = jnp.concatenate(
        [jnp.zeros((mid, n_groups + num_classes), jnp.float32),
         obj_w, part_w, jnp.zeros((mid, pad_extra), jnp.float32)], axis=1)
    head_w = jnp.concatenate([top, bot], axis=0)                 # (2*mid, cpad)
    head_b = jnp.concatenate([fc2_b @ mix, fc2_b, obj_b, part_b,
                              jnp.zeros((pad_extra,), jnp.float32)])

    return {
        "cfg": {"inplanes": inplanes, "outstride": outstride, "mid": mid,
                "num_classes": num_classes, "n_groups": n_groups,
                "objout": objout, "partout": partout,
                "ctot": ctot, "cpad": cpad},
        "stem_w": stem_w, "stem_b": stem_b,
        "conv3_w": conv3_w_f.astype(jnp.bfloat16),
        "conv3_b": conv3_b_f,
        "head_w": head_w.astype(jnp.bfloat16),
        "head_b": head_b,
    }


# ---------------------------------------------------------------------------
# Forward pass
# ---------------------------------------------------------------------------
def extent_net_forward(params, x):
    cfg = params["cfg"]
    N, _, H, W = x.shape
    s = cfg["outstride"]
    h, w = H // s, W // s

    # --- backbone stub (plain XLA; K=3 is VPU work, not MXU work) -----------
    # TODO(synk): VGGNet / drn_d_* backbones are defined in external files.
    xp = x.reshape(N, 3, h, s, w, s).mean(axis=(3, 5))                  # (N,3,h,w)
    xr = jnp.transpose(xp, (0, 2, 3, 1))                                # (N,h,w,3)
    y = jnp.maximum(jnp.einsum('nhwc,cd->nhwd', xr, params["stem_w"])
                    + params["stem_b"], 0.0).astype(jnp.bfloat16)       # (N,h,w,Cin)

    # halo pad once (cheap) instead of the 9x HBM im2col blowup
    yp = jnp.pad(y, ((0, 0), (1, 1), (1, 1), (0, 0)))                   # (N,h+2,w+2,Cin)

    # --- fused conv3x3(fc1|ctx)+BN+ReLU + head, one kernel, bf16 slab -------
    slab = conv3x3_head(yp, params["conv3_w"], params["conv3_b"],
                        params["head_w"], params["head_b"], h=h, w=w,
                        out_dtype=jnp.bfloat16)                         # (N,h,w,cpad)

    # --- decode: channels-last VPU bilinear lerp, all cpad lanes carried ----
    up = bilinear_decode(slab, H, W, out_dtype=jnp.float32)             # (N,H,W,cpad)

    up = jnp.transpose(up, (0, 3, 1, 2))                                # single NCHW transpose
    c0 = cfg["n_groups"]
    c1 = c0 + cfg["num_classes"]
    c2 = c1 + cfg["objout"]
    ctot = cfg["ctot"]
    return up[:, :c0], up[:, c0:c1], up[:, c1:c2], up[:, c2:ctot]


# ---------------------------------------------------------------------------
# Pure-JAX reference (f32 activations, same folded weights) for validation.
# ---------------------------------------------------------------------------
def reference_forward(params, x):
    cfg = params["cfg"]
    N, _, H, W = x.shape
    s = cfg["outstride"]
    h, w = H // s, W // s
    Cin = cfg["inplanes"]
    mid2 = 2 * cfg["mid"]
    cpad = cfg["cpad"]

    xp = x.reshape(N, 3, h, s, w, s).mean(axis=(3, 5))
    xr = jnp.transpose(xp, (0, 2, 3, 1))
    y = jnp.maximum(jnp.einsum('nhwc,cd->nhwd', xr, params["stem_w"])
                    + params["stem_b"], 0.0)

    ypad = jnp.pad(y, ((0, 0), (1, 1), (1, 1), (0, 0)))
    w3 = params["conv3_w"].astype(jnp.float32)
    acc = jnp.zeros((N * h * w, mid2), jnp.float32)
    tap = 0
    for kh in range(3):
        for kw in range(3):
            patch = ypad[:, kh:kh + h, kw:kw + w, :].reshape(N * h * w, Cin)
            acc = acc + patch @ w3[tap * Cin:(tap + 1) * Cin]
            tap += 1
    hid = jnp.maximum(acc + params["conv3_b"][None, :], 0.0)
    slab = hid @ params["head_w"].astype(jnp.float32) + params["head_b"][None, :]
    slab4 = slab.reshape(N, h, w, cpad)

    htab = _interp_table(h, H)
    wtab = _interp_table(w, W)
    wx0 = np.array([t[0] for t in wtab]); wx1 = np.array([t[1] for t in wtab])
    wfx = jnp.asarray([t[2] for t in wtab], jnp.float32)
    hy0 = np.array([t[0] for t in htab]); hy1 = np.array([t[1] for t in htab])
    hfy = jnp.asarray([t[2] for t in htab], jnp.float32)

    t1 = ((1.0 - wfx)[None, None, :, None] * slab4[:, :, wx0, :]
          + wfx[None, None, :, None] * slab4[:, :, wx1, :])             # (N,h,W,cpad)
    up = ((1.0 - hfy)[None, :, None, None] * t1[:, hy0]
          + hfy[None, :, None, None] * t1[:, hy1])                      # (N,H,W,cpad)
    up = jnp.transpose(up, (0, 3, 1, 2))

    c0 = cfg["n_groups"]
    c1 = c0 + cfg["num_classes"]
    c2 = c1 + cfg["objout"]
    ctot = cfg["ctot"]
    return up[:, :c0], up[:, c0:c1], up[:, c1:c2], up[:, c2:ctot]


# ---------------------------------------------------------------------------
if __name__ == "__main__":
    key = jax.random.PRNGKey(0)
    k_x, k_p = jax.random.split(key)
    params = build_extentnet(k_p, inplanes=128, outstride=4)

    x = jax.random.normal(k_x, (2, 3, 16, 16), jnp.float32)

    fwd = jax.jit(lambda xx: extent_net_forward(params, xx))
    outs = jax.block_until_ready(fwd(x))

    cfg = params["cfg"]
    assert outs[0].shape == (2, cfg["n_groups"], 16, 16)
    assert outs[1].shape == (2, cfg["num_classes"], 16, 16)
    assert outs[2].shape == (2, cfg["objout"], 16, 16)
    assert outs[3].shape == (2, cfg["partout"], 16, 16)
    assert all(bool(jnp.all(jnp.isfinite(o))) for o in outs)

    # bf16-tolerance validation against a pure-JAX f32 reference
    refs = reference_forward(params, x)
    for got, ref in zip(outs, refs):
        scale = float(jnp.max(jnp.abs(ref))) + 1e-6
        err = float(jnp.max(jnp.abs(got - ref))) / scale
        assert err < 5e-2, f"mismatch vs reference: rel err {err}"

    print("KERNEL_OK")
</pallas_src>

<mosaic_0001>
module attributes {stable_mosaic.version = 11 : i64} {
  func.func @_conv3x3_head_kernel(%arg0: i32, %arg1: memref<1x6x6x128xbf16, #tpu.memory_space<vmem>>, %arg2: memref<1152x128xbf16, #tpu.memory_space<vmem>>, %arg3: memref<1x128xf32, #tpu.memory_space<vmem>>, %arg4: memref<128x256xbf16, #tpu.memory_space<vmem>>, %arg5: memref<1x256xf32, #tpu.memory_space<vmem>>, %arg6: memref<1x4x4x256xbf16, #tpu.memory_space<vmem>>) attributes {dimension_semantics = [#tpu.dimension_semantics<parallel>], iteration_bounds = array<i64: 2>, scalar_prefetch = 0 : i64, scratch_operands = 0 : i64, tpu.core_type = #tpu.core_type<tc>, window_params = [{transform_indices = @transform_0, window_bounds = array<i64: 1, 6, 6, 128>}, {pipeline_mode = #tpu.pipeline_mode<synchronous>, transform_indices = @transform_1, window_bounds = array<i64: 1152, 128>}, {pipeline_mode = #tpu.pipeline_mode<synchronous>, transform_indices = @transform_2, window_bounds = array<i64: 1, 128>}, {pipeline_mode = #tpu.pipeline_mode<synchronous>, transform_indices = @transform_3, window_bounds = array<i64: 128, 256>}, {pipeline_mode = #tpu.pipeline_mode<synchronous>, transform_indices = @transform_4, window_bounds = array<i64: 1, 256>}, {transform_indices = @transform_5, window_bounds = array<i64: 1, 4, 4, 256>}]} {
    %c0 = arith.constant 0 : index
    %c0_0 = arith.constant 0 : index
    %c0_1 = arith.constant 0 : index
    %c0_2 = arith.constant 0 : index
    %0 = vector.load %arg1[%c0, %c0_0, %c0_1, %c0_2] : memref<1x6x6x128xbf16, #tpu.memory_space<vmem>>, vector<1x6x6x128xbf16>
    %1 = vector.shape_cast %0 : vector<1x6x6x128xbf16> to vector<6x6x128xbf16>
    %cst = arith.constant 0.000000e+00 : f32
    %2 = vector.broadcast %cst : f32 to vector<16x128xf32>
    %3 = vector.extract_strided_slice %1 {offsets = [0, 0, 0], sizes = [4, 4, 128], strides = [1, 1, 1]} : vector<6x6x128xbf16> to vector<4x4x128xbf16>
    %4 = vector.shape_cast %3 : vector<4x4x128xbf16> to vector<16x128xbf16>
    %c0_3 = arith.constant 0 : index
    %c0_4 = arith.constant 0 : index
    %5 = vector.load %arg2[%c0_3, %c0_4] : memref<1152x128xbf16, #tpu.memory_space<vmem>>, vector<128x128xbf16>
    %cst_5 = arith.constant dense<0.000000e+00> : vector<16x128xf32>
    %6 = tpu.matmul %4, %5, %cst_5 {dimension_numbers = #tpu.dot_dimension_numbers<[1], [0], [0], [1], [0, 0, 1, 1], [], []>} : vector<16x128xbf16>, vector<128x128xbf16>, vector<16x128xf32> -> vector<16x128xf32>
    %7 = arith.addf %2, %6 : vector<16x128xf32>
    %8 = vector.extract_strided_slice %1 {offsets = [0, 1, 0], sizes = [4, 4, 128], strides = [1, 1, 1]} : vector<6x6x128xbf16> to vector<4x4x128xbf16>
    %9 = vector.shape_cast %8 : vector<4x4x128xbf16> to vector<16x128xbf16>
    %c128 = arith.constant 128 : index
    %c0_6 = arith.constant 0 : index
    %10 = vector.load %arg2[%c128, %c0_6] : memref<1152x128xbf16, #tpu.memory_space<vmem>>, vector<128x128xbf16>
    %cst_7 = arith.constant dense<0.000000e+00> : vector<16x128xf32>
    %11 = tpu.matmul %9, %10, %cst_7 {dimension_numbers = #tpu.dot_dimension_numbers<[1], [0], [0], [1], [0, 0, 1, 1], [], []>} : vector<16x128xbf16>, vector<128x128xbf16>, vector<16x128xf32> -> vector<16x128xf32>
    %12 = arith.addf %7, %11 : vector<16x128xf32>
    %13 = vector.extract_strided_slice %1 {offsets = [0, 2, 0], sizes = [4, 4, 128], strides = [1, 1, 1]} : vector<6x6x128xbf16> to vector<4x4x128xbf16>
    %14 = vector.shape_cast %13 : vector<4x4x128xbf16> to vector<16x128xbf16>
    %c256 = arith.constant 256 : index
    %c0_8 = arith.constant 0 : index
    %15 = vector.load %arg2[%c256, %c0_8] : memref<1152x128xbf16, #tpu.memory_space<vmem>>, vector<128x128xbf16>
    %cst_9 = arith.constant dense<0.000000e+00> : vector<16x128xf32>
    %16 = tpu.matmul %14, %15, %cst_9 {dimension_numbers = #tpu.dot_dimension_numbers<[1], [0], [0], [1], [0, 0, 1, 1], [], []>} : vector<16x128xbf16>, vector<128x128xbf16>, vector<16x128xf32> -> vector<16x128xf32>
    %17 = arith.addf %12, %16 : vector<16x128xf32>
    %18 = vector.extract_strided_slice %1 {offsets = [1, 0, 0], sizes = [4, 4, 128], strides = [1, 1, 1]} : vector<6x6x128xbf16> to vector<4x4x128xbf16>
    %19 = vector.shape_cast %18 : vector<4x4x128xbf16> to vector<16x128xbf16>
    %c384 = arith.constant 384 : index
    %c0_10 = arith.constant 0 : index
    %20 = vector.load %arg2[%c384, %c0_10] : memref<1152x128xbf16, #tpu.memory_space<vmem>>, vector<128x128xbf16>
    %cst_11 = arith.constant dense<0.000000e+00> : vector<16x128xf32>
    %21 = tpu.matmul %19, %20, %cst_11 {dimension_numbers = #tpu.dot_dimension_numbers<[1], [0], [0], [1], [0, 0, 1, 1], [], []>} : vector<16x128xbf16>, vector<128x128xbf16>, vector<16x128xf32> -> vector<16x128xf32>
    %22 = arith.addf %17, %21 : vector<16x128xf32>
    %23 = vector.extract_strided_slice %1 {offsets = [1, 1, 0], sizes = [4, 4, 128], strides = [1, 1, 1]} : vector<6x6x128xbf16> to vector<4x4x128xbf16>
    %24 = vector.shape_cast %23 : vector<4x4x128xbf16> to vector<16x128xbf16>
    %c512 = arith.constant 512 : index
    %c0_12 = arith.constant 0 : index
    %25 = vector.load %arg2[%c512, %c0_12] : memref<1152x128xbf16, #tpu.memory_space<vmem>>, vector<128x128xbf16>
    %cst_13 = arith.constant dense<0.000000e+00> : vector<16x128xf32>
    %26 = tpu.matmul %24, %25, %cst_13 {dimension_numbers = #tpu.dot_dimension_numbers<[1], [0], [0], [1], [0, 0, 1, 1], [], []>} : vector<16x128xbf16>, vector<128x128xbf16>, vector<16x128xf32> -> vector<16x128xf32>
    %27 = arith.addf %22, %26 : vector<16x128xf32>
    %28 = vector.extract_strided_slice %1 {offsets = [1, 2, 0], sizes = [4, 4, 128], strides = [1, 1, 1]} : vector<6x6x128xbf16> to vector<4x4x128xbf16>
    %29 = vector.shape_cast %28 : vector<4x4x128xbf16> to vector<16x128xbf16>
    %c640 = arith.constant 640 : index
    %c0_14 = arith.constant 0 : index
    %30 = vector.load %arg2[%c640, %c0_14] : memref<1152x128xbf16, #tpu.memory_space<vmem>>, vector<128x128xbf16>
    %cst_15 = arith.constant dense<0.000000e+00> : vector<16x128xf32>
    %31 = tpu.matmul %29, %30, %cst_15 {dimension_numbers = #tpu.dot_dimension_numbers<[1], [0], [0], [1], [0, 0, 1, 1], [], []>} : vector<16x128xbf16>, vector<128x128xbf16>, vector<16x128xf32> -> vector<16x128xf32>
    %32 = arith.addf %27, %31 : vector<16x128xf32>
    %33 = vector.extract_strided_slice %1 {offsets = [2, 0, 0], sizes = [4, 4, 128], strides = [1, 1, 1]} : vector<6x6x128xbf16> to vector<4x4x128xbf16>
    %34 = vector.shape_cast %33 : vector<4x4x128xbf16> to vector<16x128xbf16>
    %c768 = arith.constant 768 : index
    %c0_16 = arith.constant 0 : index
    %35 = vector.load %arg2[%c768, %c0_16] : memref<1152x128xbf16, #tpu.memory_space<vmem>>, vector<128x128xbf16>
    %cst_17 = arith.constant dense<0.000000e+00> : vector<16x128xf32>
    %36 = tpu.matmul %34, %35, %cst_17 {dimension_numbers = #tpu.dot_dimension_numbers<[1], [0], [0], [1], [0, 0, 1, 1], [], []>} : vector<16x128xbf16>, vector<128x128xbf16>, vector<16x128xf32> -> vector<16x128xf32>
    %37 = arith.addf %32, %36 : vector<16x128xf32>
    %38 = vector.extract_strided_slice %1 {offsets = [2, 1, 0], sizes = [4, 4, 128], strides = [1, 1, 1]} : vector<6x6x128xbf16> to vector<4x4x128xbf16>
    %39 = vector.shape_cast %38 : vector<4x4x128xbf16> to vector<16x128xbf16>
    %c896 = arith.constant 896 : index
    %c0_18 = arith.constant 0 : index
    %40 = vector.load %arg2[%c896, %c0_18] : memref<1152x128xbf16, #tpu.memory_space<vmem>>, vector<128x128xbf16>
    %cst_19 = arith.constant dense<0.000000e+00> : vector<16x128xf32>
    %41 = tpu.matmul %39, %40, %cst_19 {dimension_numbers = #tpu.dot_dimension_numbers<[1], [0], [0], [1], [0, 0, 1, 1], [], []>} : vector<16x128xbf16>, vector<128x128xbf16>, vector<16x128xf32> -> vector<16x128xf32>
    %42 = arith.addf %37, %41 : vector<16x128xf32>
    %43 = vector.extract_strided_slice %1 {offsets = [2, 2, 0], sizes = [4, 4, 128], strides = [1, 1, 1]} : vector<6x6x128xbf16> to vector<4x4x128xbf16>
    %44 = vector.shape_cast %43 : vector<4x4x128xbf16> to vector<16x128xbf16>
    %c1024 = arith.constant 1024 : index
    %c0_20 = arith.constant 0 : index
    %45 = vector.load %arg2[%c1024, %c0_20] : memref<1152x128xbf16, #tpu.memory_space<vmem>>, vector<128x128xbf16>
    %cst_21 = arith.constant dense<0.000000e+00> : vector<16x128xf32>
    %46 = tpu.matmul %44, %45, %cst_21 {dimension_numbers = #tpu.dot_dimension_numbers<[1], [0], [0], [1], [0, 0, 1, 1], [], []>} : vector<16x128xbf16>, vector<128x128xbf16>, vector<16x128xf32> -> vector<16x128xf32>
    %47 = arith.addf %42, %46 : vector<16x128xf32>
    %c0_22 = arith.constant 0 : index
    %c0_23 = arith.constant 0 : index
    %48 = vector.load %arg3[%c0_22, %c0_23] : memref<1x128xf32, #tpu.memory_space<vmem>>, vector<1x128xf32>
    %49 = vector.broadcast %48 : vector<1x128xf32> to vector<16x128xf32>
    %50 = arith.addf %47, %49 : vector<16x128xf32>
    %cst_24 = arith.constant 0.000000e+00 : f32
    %51 = vector.broadcast %cst_24 : f32 to vector<16x128xf32>
    %52 = arith.maximumf %50, %51 : vector<16x128xf32>
    %53 = arith.truncf %52 : vector<16x128xf32> to vector<16x128xbf16>
    %c0_25 = arith.constant 0 : index
    %c0_26 = arith.constant 0 : index
    %54 = vector.load %arg4[%c0_25, %c0_26] : memref<128x256xbf16, #tpu.memory_space<vmem>>, vector<128x256xbf16>
    %cst_27 = arith.constant dense<0.000000e+00> : vector<16x256xf32>
    %55 = tpu.matmul %53, %54, %cst_27 {dimension_numbers = #tpu.dot_dimension_numbers<[1], [0], [0], [1], [0, 0, 1, 1], [], []>} : vector<16x128xbf16>, vector<128x256xbf16>, vector<16x256xf32> -> vector<16x256xf32>
    %c0_28 = arith.constant 0 : index
    %c0_29 = arith.constant 0 : index
    %56 = vector.load %arg5[%c0_28, %c0_29] : memref<1x256xf32, #tpu.memory_space<vmem>>, vector<1x256xf32>
    %57 = vector.broadcast %56 : vector<1x256xf32> to vector<16x256xf32>
    %58 = arith.addf %55, %57 : vector<16x256xf32>
    %59 = vector.shape_cast %58 : vector<16x256xf32> to vector<4x4x256xf32>
    %60 = arith.truncf %59 : vector<4x4x256xf32> to vector<4x4x256xbf16>
    %c0_30 = arith.constant 0 : index
    %c0_31 = arith.constant 0 : index
    %c0_32 = arith.constant 0 : index
    %c0_33 = arith.constant 0 : index
    %61 = vector.load %arg6[%c0_30, %c0_31, %c0_32, %c0_33] : memref<1x4x4x256xbf16, #tpu.memory_space<vmem>>, vector<1x4x4x256xbf16>
    %62 = vector.shape_cast %61 : vector<1x4x4x256xbf16> to vector<4x4x256xbf16>
    %63 = vector.shape_cast %60 : vector<4x4x256xbf16> to vector<1x4x4x256xbf16>
    tpu.vector_store %arg6[%c0_30, %c0_31, %c0_32, %c0_33], %63 {strides = array<i32>} : memref<1x4x4x256xbf16, #tpu.memory_space<vmem>>, vector<1x4x4x256xbf16>,
    return
  }
  func.func @transform_0(%arg0: i32) -> (i32, i32, i32, i32) {
    %c0_i32 = arith.constant 0 : i32
    %c0_i32_0 = arith.constant 0 : i32
    %c0_i32_1 = arith.constant 0 : i32
    %c0_i32_2 = arith.constant 0 : i32
    return %arg0, %c0_i32, %c0_i32_0, %c0_i32_1 : i32, i32, i32, i32
  }
  func.func @transform_1(%arg0: i32) -> (i32, i32) {
    %c0_i32 = arith.constant 0 : i32
    %c0_i32_0 = arith.constant 0 : i32
    %c0_i32_1 = arith.constant 0 : i32
    return %c0_i32, %c0_i32_0 : i32, i32
  }
  func.func @transform_2(%arg0: i32) -> (i32, i32) {
    %c0_i32 = arith.constant 0 : i32
    %c0_i32_0 = arith.constant 0 : i32
    %c0_i32_1 = arith.constant 0 : i32
    return %c0_i32, %c0_i32_0 : i32, i32
  }
  func.func @transform_3(%arg0: i32) -> (i32, i32) {
    %c0_i32 = arith.constant 0 : i32
    %c0_i32_0 = arith.constant 0 : i32
    %c0_i32_1 = arith.constant 0 : i32
    return %c0_i32, %c0_i32_0 : i32, i32
  }
  func.func @transform_4(%arg0: i32) -> (i32, i32) {
    %c0_i32 = arith.constant 0 : i32
    %c0_i32_0 = arith.constant 0 : i32
    %c0_i32_1 = arith.constant 0 : i32
    return %c0_i32, %c0_i32_0 : i32, i32
  }
  func.func @transform_5(%arg0: i32) -> (i32, i32, i32, i32) {
    %c0_i32 = arith.constant 0 : i32
    %c0_i32_0 = arith.constant 0 : i32
    %c0_i32_1 = arith.constant 0 : i32
    %c0_i32_2 = arith.constant 0 : i32
    return %arg0, %c0_i32, %c0_i32_0, %c0_i32_1 : i32, i32, i32, i32
  }
}

module attributes {stable_mosaic.version = 11 : i64} {
  func.func @_bilinear_kernel(%arg0: i32, %arg1: memref<1x4x4x256xbf16, #tpu.memory_space<vmem>>, %arg2: memref<1x16x16x256xf32, #tpu.memory_space<vmem>>) attributes {dimension_semantics = [#tpu.dimension_semantics<parallel>], iteration_bounds = array<i64: 2>, scalar_prefetch = 0 : i64, scratch_operands = 0 : i64, tpu.core_type = #tpu.core_type<tc>, window_params = [{transform_indices = @transform_0, window_bounds = array<i64: 1, 4, 4, 256>}, {transform_indices = @transform_1, window_bounds = array<i64: 1, 16, 16, 256>}]} {
    %c0 = arith.constant 0 : index
    %c0_0 = arith.constant 0 : index
    %c0_1 = arith.constant 0 : index
    %c0_2 = arith.constant 0 : index
    %0 = vector.load %arg1[%c0, %c0_0, %c0_1, %c0_2] : memref<1x4x4x256xbf16, #tpu.memory_space<vmem>>, vector<1x4x4x256xbf16>
    %1 = vector.shape_cast %0 : vector<1x4x4x256xbf16> to vector<4x4x256xbf16>
    %2 = arith.extf %1 : vector<4x4x256xbf16> to vector<4x4x256xf32>
    %3 = vector.extract_strided_slice %2 {offsets = [0, 0, 0], sizes = [1, 1, 256], strides = [1, 1, 1]} : vector<4x4x256xf32> to vector<1x1x256xf32>
    %4 = vector.shape_cast %3 : vector<1x1x256xf32> to vector<256xf32>
    %5 = vector.extract_strided_slice %2 {offsets = [0, 0, 0], sizes = [1, 1, 256], strides = [1, 1, 1]} : vector<4x4x256xf32> to vector<1x1x256xf32>
    %6 = vector.shape_cast %5 : vector<1x1x256xf32> to vector<256xf32>
    %7 = vector.extract_strided_slice %2 {offsets = [0, 0, 0], sizes = [1, 1, 256], strides = [1, 1, 1]} : vector<4x4x256xf32> to vector<1x1x256xf32>
    %8 = vector.shape_cast %7 : vector<1x1x256xf32> to vector<256xf32>
    %cst = arith.constant 8.750000e-01 : f32
    %9 = vector.broadcast %cst : f32 to vector<256xf32>
    %10 = arith.mulf %9, %8 : vector<256xf32>
    %11 = vector.extract_strided_slice %2 {offsets = [0, 1, 0], sizes = [1, 1, 256], strides = [1, 1, 1]} : vector<4x4x256xf32> to vector<1x1x256xf32>
    %12 = vector.shape_cast %11 : vector<1x1x256xf32> to vector<256xf32>
    %cst_3 = arith.constant 1.250000e-01 : f32
    %13 = vector.broadcast %cst_3 : f32 to vector<256xf32>
    %14 = arith.mulf %13, %12 : vector<256xf32>
    %15 = arith.addf %10, %14 : vector<256xf32>
    %16 = vector.extract_strided_slice %2 {offsets = [0, 0, 0], sizes = [1, 1, 256], strides = [1, 1, 1]} : vector<4x4x256xf32> to vector<1x1x256xf32>
    %17 = vector.shape_cast %16 : vector<1x1x256xf32> to vector<256xf32>
    %cst_4 = arith.constant 6.250000e-01 : f32
    %18 = vector.broadcast %cst_4 : f32 to vector<256xf32>
    %19 = arith.mulf %18, %17 : vector<256xf32>
    %20 = vector.extract_strided_slice %2 {offsets = [0, 1, 0], sizes = [1, 1, 256], strides = [1, 1, 1]} : vector<4x4x256xf32> to vector<1x1x256xf32>
    %21 = vector.shape_cast %20 : vector<1x1x256xf32> to vector<256xf32>
    %cst_5 = arith.constant 3.750000e-01 : f32
    %22 = vector.broadcast %cst_5 : f32 to vector<256xf32>
    %23 = arith.mulf %22, %21 : vector<256xf32>
    %24 = arith.addf %19, %23 : vector<256xf32>
    %25 = vector.extract_strided_slice %2 {offsets = [0, 0, 0], sizes = [1, 1, 256], strides = [1, 1, 1]} : vector<4x4x256xf32> to vector<1x1x256xf32>
    %26 = vector.shape_cast %25 : vector<1x1x256xf32> to vector<256xf32>
    %cst_6 = arith.constant 3.750000e-01 : f32
    %27 = vector.broadcast %cst_6 : f32 to vector<256xf32>
    %28 = arith.mulf %27, %26 : vector<256xf32>
    %29 = vector.extract_strided_slice %2 {offsets = [0, 1, 0], sizes = [1, 1, 256], strides = [1, 1, 1]} : vector<4x4x256xf32> to vector<1x1x256xf32>
    %30 = vector.shape_cast %29 : vector<1x1x256xf32> to vector<256xf32>
    %cst_7 = arith.constant 6.250000e-01 : f32
    %31 = vector.broadcast %cst_7 : f32 to vector<256xf32>
    %32 = arith.mulf %31, %30 : vector<256xf32>
    %33 = arith.addf %28, %32 : vector<256xf32>
    %34 = vector.extract_strided_slice %2 {offsets = [0, 0, 0], sizes = [1, 1, 256], strides = [1, 1, 1]} : vector<4x4x256xf32> to vector<1x1x256xf32>
    %35 = vector.shape_cast %34 : vector<1x1x256xf32> to vector<256xf32>
    %cst_8 = arith.constant 1.250000e-01 : f32
    %36 = vector.broadcast %cst_8 : f32 to vector<256xf32>
    %37 = arith.mulf %36, %35 : vector<256xf32>
    %38 = vector.extract_strided_slice %2 {offsets = [0, 1, 0], sizes = [1, 1, 256], strides = [1, 1, 1]} : vector<4x4x256xf32> to vector<1x1x256xf32>
    %39 = vector.shape_cast %38 : vector<1x1x256xf32> to vector<256xf32>
    %cst_9 = arith.constant 8.750000e-01 : f32
    %40 = vector.broadcast %cst_9 : f32 to vector<256xf32>
    %41 = arith.mulf %40, %39 : vector<256xf32>
    %42 = arith.addf %37, %41 : vector<256xf32>
    %43 = vector.extract_strided_slice %2 {offsets = [0, 1, 0], sizes = [1, 1, 256], strides = [1, 1, 1]} : vector<4x4x256xf32> to vector<1x1x256xf32>
    %44 = vector.shape_cast %43 : vector<1x1x256xf32> to vector<256xf32>
    %cst_10 = arith.constant 8.750000e-01 : f32
    %45 = vector.broadcast %cst_10 : f32 to vector<256xf32>
    %46 = arith.mulf %45, %44 : vector<256xf32>
    %47 = vector.extract_strided_slice %2 {offsets = [0, 2, 0], sizes = [1, 1, 256], strides = [1, 1, 1]} : vector<4x4x256xf32> to vector<1x1x256xf32>
    %48 = vector.shape_cast %47 : vector<1x1x256xf32> to vector<256xf32>
    %cst_11 = arith.constant 1.250000e-01 : f32
    %49 = vector.broadcast %cst_11 : f32 to vector<256xf32>
    %50 = arith.mulf %49, %48 : vector<256xf32>
    %51 = arith.addf %46, %50 : vector<256xf32>
    %52 = vector.extract_strided_slice %2 {offsets = [0, 1, 0], sizes = [1, 1, 256], strides = [1, 1, 1]} : vector<4x4x256xf32> to vector<1x1x256xf32>
    %53 = vector.shape_cast %52 : vector<1x1x256xf32> to vector<256xf32>
    %cst_12 = arith.constant 6.250000e-01 : f32
    %54 = vector.broadcast %cst_12 : f32 to vector<256xf32>
    %55 = arith.mulf %54, %53 : vector<256xf32>
    %56 = vector.extract_strided_slice %2 {offsets = [0, 2, 0], sizes = [1, 1, 256], strides = [1, 1, 1]} : vector<4x4x256xf32> to vector<1x1x256xf32>
    %57 = vector.shape_cast %56 : vector<1x1x256xf32> to vector<256xf32>
    %cst_13 = arith.constant 3.750000e-01 : f32
    %58 = vector.broadcast %cst_13 : f32 to vector<256xf32>
    %59 = arith.mulf %58, %57 : vector<256xf32>
    %60 = arith.addf %55, %59 : vector<256xf32>
    %61 = vector.extract_strided_slice %2 {offsets = [0, 1, 0], sizes = [1, 1, 256], strides = [1, 1, 1]} : vector<4x4x256xf32> to vector<1x1x256xf32>
    %62 = vector.shape_cast %61 : vector<1x1x256xf32> to vector<256xf32>
    %cst_14 = arith.constant 3.750000e-01 : f32
    %63 = vector.broadcast %cst_14 : f32 to vector<256xf32>
    %64 = arith.mulf %63, %62 : vector<256xf32>
    %65 = vector.extract_strided_slice %2 {offsets = [0, 2, 0], sizes = [1, 1, 256], strides = [1, 1, 1]} : vector<4x4x256xf32> to vector<1x1x256xf32>
    %66 = vector.shape_cast %65 : vector<1x1x256xf32> to vector<256xf32>
    %cst_15 = arith.constant 6.250000e-01 : f32
    %67 = vector.broadcast %cst_15 : f32 to vector<256xf32>
    %68 = arith.mulf %67, %66 : vector<256xf32>
    %69 = arith.addf %64, %68 : vector<256xf32>
    %70 = vector.extract_strided_slice %2 {offsets = [0, 1, 0], sizes = [1, 1, 256], strides = [1, 1, 1]} : vector<4x4x256xf32> to vector<1x1x256xf32>
    %71 = vector.shape_cast %70 : vector<1x1x256xf32> to vector<256xf32>
    %cst_16 = arith.constant 1.250000e-01 : f32
    %72 = vector.broadcast %cst_16 : f32 to vector<256xf32>
    %73 = arith.mulf %72, %71 : vector<256xf32>
    %74 = vector.extract_strided_slice %2 {offsets = [0, 2, 0], sizes = [1, 1, 256], strides = [1, 1, 1]} : vector<4x4x256xf32> to vector<1x1x256xf32>
    %75 = vector.shape_cast %74 : vector<1x1x256xf32> to vector<256xf32>
    %cst_17 = arith.constant 8.750000e-01 : f32
    %76 = vector.broadcast %cst_17 : f32 to vector<256xf32>
    %77 = arith.mulf %76, %75 : vector<256xf32>
    %78 = arith.addf %73, %77 : vector<256xf32>
    %79 = vector.extract_strided_slice %2 {offsets = [0, 2, 0], sizes = [1, 1, 256], strides = [1, 1, 1]} : vector<4x4x256xf32> to vector<1x1x256xf32>
    %80 = vector.shape_cast %79 : vector<1x1x256xf32> to vector<256xf32>
    %cst_18 = arith.constant 8.750000e-01 : f32
    %81 = vector.broadcast %cst_18 : f32 to vector<256xf32>
    %82 = arith.mulf %81, %80 : vector<256xf32>
    %83 = vector.extract_strided_slice %2 {offsets = [0, 3, 0], sizes = [1, 1, 256], strides = [1, 1, 1]} : vector<4x4x256xf32> to vector<1x1x256xf32>
    %84 = vector.shape_cast %83 : vector<1x1x256xf32> to vector<256xf32>
    %cst_19 = arith.constant 1.250000e-01 : f32
    %85 = vector.broadcast %cst_19 : f32 to vector<256xf32>
    %86 = arith.mulf %85, %84 : vector<256xf32>
    %87 = arith.addf %82, %86 : vector<256xf32>
    %88 = vector.extract_strided_slice %2 {offsets = [0, 2, 0], sizes = [1, 1, 256], strides = [1, 1, 1]} : vector<4x4x256xf32> to vector<1x1x256xf32>
    %89 = vector.shape_cast %88 : vector<1x1x256xf32> to vector<256xf32>
    %cst_20 = arith.constant 6.250000e-01 : f32
    %90 = vector.broadcast %cst_20 : f32 to vector<256xf32>
    %91 = arith.mulf %90, %89 : vector<256xf32>
    %92 = vector.extract_strided_slice %2 {offsets = [0, 3, 0], sizes = [1, 1, 256], strides = [1, 1, 1]} : vector<4x4x256xf32> to vector<1x1x256xf32>
    %93 = vector.shape_cast %92 : vector<1x1x256xf32> to vector<256xf32>
    %cst_21 = arith.constant 3.750000e-01 : f32
    %94 = vector.broadcast %cst_21 : f32 to vector<256xf32>
    %95 = arith.mulf %94, %93 : vector<256xf32>
    %96 = arith.addf %91, %95 : vector<256xf32>
    %97 = vector.extract_strided_slice %2 {offsets = [0, 2, 0], sizes = [1, 1, 256], strides = [1, 1, 1]} : vector<4x4x256xf32> to vector<1x1x256xf32>
    %98 = vector.shape_cast %97 : vector<1x1x256xf32> to vector<256xf32>
    %cst_22 = arith.constant 3.750000e-01 : f32
    %99 = vector.broadcast %cst_22 : f32 to vector<256xf32>
    %100 = arith.mulf %99, %98 : vector<256xf32>
    %101 = vector.extract_strided_slice %2 {offsets = [0, 3, 0], sizes = [1, 1, 256], strides = [1, 1, 1]} : vector<4x4x256xf32> to vector<1x1x256xf32>
    %102 = vector.shape_cast %101 : vector<1x1x256xf32> to vector<256xf32>
    %cst_23 = arith.constant 6.250000e-01 : f32
    %103 = vector.broadcast %cst_23 : f32 to vector<256xf32>
    %104 = arith.mulf %103, %102 : vector<256xf32>
    %105 = arith.addf %100, %104 : vector<256xf32>
    %106 = vector.extract_strided_slice %2 {offsets = [0, 2, 0], sizes = [1, 1, 256], strides = [1, 1, 1]} : vector<4x4x256xf32> to vector<1x1x256xf32>
    %107 = vector.shape_cast %106 : vector<1x1x256xf32> to vector<256xf32>
    %cst_24 = arith.constant 1.250000e-01 : f32
    %108 = vector.broadcast %cst_24 : f32 to vector<256xf32>
    %109 = arith.mulf %108, %107 : vector<256xf32>
    %110 = vector.extract_strided_slice %2 {offsets = [0, 3, 0], sizes = [1, 1, 256], strides = [1, 1, 1]} : vector<4x4x256xf32> to vector<1x1x256xf32>
    %111 = vector.shape_cast %110 : vector<1x1x256xf32> to vector<256xf32>
    %cst_25 = arith.constant 8.750000e-01 : f32
    %112 = vector.broadcast %cst_25 : f32 to vector<256xf32>
    %113 = arith.mulf %112, %111 : vector<256xf32>
    %114 = arith.addf %109, %113 : vector<256xf32>
    %115 = vector.extract_strided_slice %2 {offsets = [0, 3, 0], sizes = [1, 1, 256], strides = [1, 1, 1]} : vector<4x4x256xf32> to vector<1x1x256xf32>
    %116 = vector.shape_cast %115 : vector<1x1x256xf32> to vector<256xf32>
    %117 = vector.extract_strided_slice %2 {offsets = [0, 3, 0], sizes = [1, 1, 256], strides = [1, 1, 1]} : vector<4x4x256xf32> to vector<1x1x256xf32>
    %118 = vector.shape_cast %117 : vector<1x1x256xf32> to vector<256xf32>
    %119 = vector.shape_cast %4 : vector<256xf32> to vector<1x256xf32>
    %120 = vector.shape_cast %6 : vector<256xf32> to vector<1x256xf32>
    %121 = vector.shape_cast %15 : vector<256xf32> to vector<1x256xf32>
    %122 = vector.shape_cast %24 : vector<256xf32> to vector<1x256xf32>
    %123 = vector.shape_cast %33 : vector<256xf32> to vector<1x256xf32>
    %124 = vector.shape_cast %42 : vector<256xf32> to vector<1x256xf32>
    %125 = vector.shape_cast %51 : vector<256xf32> to vector<1x256xf32>
    %126 = vector.shape_cast %60 : vector<256xf32> to vector<1x256xf32>
    %127 = vector.shape_cast %69 : vector<256xf32> to vector<1x256xf32>
    %128 = vector.shape_cast %78 : vector<256xf32> to vector<1x256xf32>
    %129 = vector.shape_cast %87 : vector<256xf32> to vector<1x256xf32>
    %130 = vector.shape_cast %96 : vector<256xf32> to vector<1x256xf32>
    %131 = vector.shape_cast %105 : vector<256xf32> to vector<1x256xf32>
    %132 = vector.shape_cast %114 : vector<256xf32> to vector<1x256xf32>
    %133 = vector.shape_cast %116 : vector<256xf32> to vector<1x256xf32>
    %134 = vector.shape_cast %118 : vector<256xf32> to vector<1x256xf32>
    %135 = tpu.concatenate %119, %120, %121, %122, %123, %124, %125, %126, %127, %128, %129, %130, %131, %132, %133, %134 in 0 : vector<1x256xf32>, vector<1x256xf32>, vector<1x256xf32>, vector<1x256xf32>, vector<1x256xf32>, vector<1x256xf32>, vector<1x256xf32>, vector<1x256xf32>, vector<1x256xf32>, vector<1x256xf32>, vector<1x256xf32>, vector<1x256xf32>, vector<1x256xf32>, vector<1x256xf32>, vector<1x256xf32>, vector<1x256xf32> -> vector<16x256xf32>
    %136 = vector.extract_strided_slice %2 {offsets = [1, 0, 0], sizes = [1, 1, 256], strides = [1, 1, 1]} : vector<4x4x256xf32> to vector<1x1x256xf32>
    %137 = vector.shape_cast %136 : vector<1x1x256xf32> to vector<256xf32>
    %138 = vector.extract_strided_slice %2 {offsets = [1, 0, 0], sizes = [1, 1, 256], strides = [1, 1, 1]} : vector<4x4x256xf32> to vector<1x1x256xf32>
    %139 = vector.shape_cast %138 : vector<1x1x256xf32> to vector<256xf32>
    %140 = vector.extract_strided_slice %2 {offsets = [1, 0, 0], sizes = [1, 1, 256], strides = [1, 1, 1]} : vector<4x4x256xf32> to vector<1x1x256xf32>
    %141 = vector.shape_cast %140 : vector<1x1x256xf32> to vector<256xf32>
    %cst_26 = arith.constant 8.750000e-01 : f32
    %142 = vector.broadcast %cst_26 : f32 to vector<256xf32>
    %143 = arith.mulf %142, %141 : vector<256xf32>
    %144 = vector.extract_strided_slice %2 {offsets = [1, 1, 0], sizes = [1, 1, 256], strides = [1, 1, 1]} : vector<4x4x256xf32> to vector<1x1x256xf32>
    %145 = vector.shape_cast %144 : vector<1x1x256xf32> to vector<256xf32>
    %cst_27 = arith.constant 1.250000e-01 : f32
    %146 = vector.broadcast %cst_27 : f32 to vector<256xf32>
    %147 = arith.mulf %146, %145 : vector<256xf32>
    %148 = arith.addf %143, %147 : vector<256xf32>
    %149 = vector.extract_strided_slice %2 {offsets = [1, 0, 0], sizes = [1, 1, 256], strides = [1, 1, 1]} : vector<4x4x256xf32> to vector<1x1x256xf32>
    %150 = vector.shape_cast %149 : vector<1x1x256xf32> to vector<256xf32>
    %cst_28 = arith.constant 6.250000e-01 : f32
    %151 = vector.broadcast %cst_28 : f32 to vector<256xf32>
    %152 = arith.mulf %151, %150 : vector<256xf32>
    %153 = vector.extract_strided_slice %2 {offsets = [1, 1, 0], sizes = [1, 1, 256], strides = [1, 1, 1]} : vector<4x4x256xf32> to vector<1x1x256xf32>
    %154 = vector.shape_cast %153 : vector<1x1x256xf32> to vector<256xf32>
    %cst_29 = arith.constant 3.750000e-01 : f32
    %155 = vector.broadcast %cst_29 : f32 to vector<256xf32>
    %156 = arith.mulf %155, %154 : vector<256xf32>
    %157 = arith.addf %152, %156 : vector<256xf32>
    %158 = vector.extract_strided_slice %2 {offsets = [1, 0, 0], sizes = [1, 1, 256], strides = [1, 1, 1]} : vector<4x4x256xf32> to vector<1x1x256xf32>
    %159 = vector.shape_cast %158 : vector<1x1x256xf32> to vector<256xf32>
    %cst_30 = arith.constant 3.750000e-01 : f32
    %160 = vector.broadcast %cst_30 : f32 to vector<256xf32>
    %161 = arith.mulf %160, %159 : vector<256xf32>
    %162 = vector.extract_strided_slice %2 {offsets = [1, 1, 0], sizes = [1, 1, 256], strides = [1, 1, 1]} : vector<4x4x256xf32> to vector<1x1x256xf32>
    %163 = vector.shape_cast %162 : vector<1x1x256xf32> to vector<256xf32>
    %cst_31 = arith.constant 6.250000e-01 : f32
    %164 = vector.broadcast %cst_31 : f32 to vector<256xf32>
    %165 = arith.mulf %164, %163 : vector<256xf32>
    %166 = arith.addf %161, %165 : vector<256xf32>
    %167 = vector.extract_strided_slice %2 {offsets = [1, 0, 0], sizes = [1, 1, 256], strides = [1, 1, 1]} : vector<4x4x256xf32> to vector<1x1x256xf32>
    %168 = vector.shape_cast %167 : vector<1x1x256xf32> to vector<256xf32>
    %cst_32 = arith.constant 1.250000e-01 : f32
    %169 = vector.broadcast %cst_32 : f32 to vector<256xf32>
    %170 = arith.mulf %169, %168 : vector<256xf32>
    %171 = vector.extract_strided_slice %2 {offsets = [1, 1, 0], sizes = [1, 1, 256], strides = [1, 1, 1]} : vector<4x4x256xf32> to vector<1x1x256xf32>
    %172 = vector.shape_cast %171 : vector<1x1x256xf32> to vector<256xf32>
    %cst_33 = arith.constant 8.750000e-01 : f32
    %173 = vector.broadcast %cst_33 : f32 to vector<256xf32>
    %174 = arith.mulf %173, %172 : vector<256xf32>
    %175 = arith.addf %170, %174 : vector<256xf32>
    %176 = vector.extract_strided_slice %2 {offsets = [1, 1, 0], sizes = [1, 1, 256], strides = [1, 1, 1]} : vector<4x4x256xf32> to vector<1x1x256xf32>
    %177 = vector.shape_cast %176 : vector<1x1x256xf32> to vector<256xf32>
    %cst_34 = arith.constant 8.750000e-01 : f32
    %178 = vector.broadcast %cst_34 : f32 to vector<256xf32>
    %179 = arith.mulf %178, %177 : vector<256xf32>
    %180 = vector.extract_strided_slice %2 {offsets = [1, 2, 0], sizes = [1, 1, 256], strides = [1, 1, 1]} : vector<4x4x256xf32> to vector<1x1x256xf32>
    %181 = vector.shape_cast %180 : vector<1x1x256xf32> to vector<256xf32>
    %cst_35 = arith.constant 1.250000e-01 : f32
    %182 = vector.broadcast %cst_35 : f32 to vector<256xf32>
    %183 = arith.mulf %182, %181 : vector<256xf32>
    %184 = arith.addf %179, %183 : vector<256xf32>
    %185 = vector.extract_strided_slice %2 {offsets = [1, 1, 0], sizes = [1, 1, 256], strides = [1, 1, 1]} : vector<4x4x256xf32> to vector<1x1x256xf32>
    %186 = vector.shape_cast %185 : vector<1x1x256xf32> to vector<256xf32>
    %cst_36 = arith.constant 6.250000e-01 : f32
    %187 = vector.broadcast %cst_36 : f32 to vector<256xf32>
    %188 = arith.mulf %187, %186 : vector<256xf32>
    %189 = vector.extract_strided_slice %2 {offsets = [1, 2, 0], sizes = [1, 1, 256], strides = [1, 1, 1]} : vector<4x4x256xf32> to vector<1x1x256xf32>
    %190 = vector.shape_cast %189 : vector<1x1x256xf32> to vector<256xf32>
    %cst_37 = arith.constant 3.750000e-01 : f32
    %191 = vector.broadcast %cst_37 : f32 to vector<256xf32>
    %192 = arith.mulf %191, %190 : vector<256xf32>
    %193 = arith.addf %188, %192 : vector<256xf32>
    %194 = vector.extract_strided_slice %2 {offsets = [1, 1, 0], sizes = [1, 1, 256], strides = [1, 1, 1]} : vector<4x4x256xf32> to vector<1x1x256xf32>
    %195 = vector.shape_cast %194 : vector<1x1x256xf32> to vector<256xf32>
    %cst_38 = arith.constant 3.750000e-01 : f32
    %196 = vector.broadcast %cst_38 : f32 to vector<256xf32>
    %197 = arith.mulf %196, %195 : vector<256xf32>
    %198 = vector.extract_strided_slice %2 {offsets = [1, 2, 0], sizes = [1, 1, 256], strides = [1, 1, 1]} : vector<4x4x256xf32> to vector<1x1x256xf32>
    %199 = vector.shape_cast %198 : vector<1x1x256xf32> to vector<256xf32>
    %cst_39 = arith.constant 6.250000e-01 : f32
    %200 = vector.broadcast %cst_39 : f32 to vector<256xf32>
    %201 = arith.mulf %200, %199 : vector<256xf32>
    %202 = arith.addf %197, %201 : vector<256xf32>
    %203 = vector.extract_strided_slice %2 {offsets = [1, 1, 0], sizes = [1, 1, 256], strides = [1, 1, 1]} : vector<4x4x256xf32> to vector<1x1x256xf32>
    %204 = vector.shape_cast %203 : vector<1x1x256xf32> to vector<256xf32>
    %cst_40 = arith.constant 1.250000e-01 : f32
    %205 = vector.broadcast %cst_40 : f32 to vector<256xf32>
    %206 = arith.mulf %205, %204 : vector<256xf32>
    %207 = vector.extract_strided_slice %2 {offsets = [1, 2, 0], sizes = [1, 1, 256], strides = [1, 1, 1]} : vector<4x4x256xf32> to vector<1x1x256xf32>
    %208 = vector.shape_cast %207 : vector<1x1x256xf32> to vector<256xf32>
    %cst_41 = arith.constant 8.750000e-01 : f32
    %209 = vector.broadcast %cst_41 : f32 to vector<256xf32>
    %210 = arith.mulf %209, %208 : vector<256xf32>
    %211 = arith.addf %206, %210 : vector<256xf32>
    %212 = vector.extract_strided_slice %2 {offsets = [1, 2, 0], sizes = [1, 1, 256], strides = [1, 1, 1]} : vector<4x4x256xf32> to vector<1x1x256xf32>
    %213 = vector.shape_cast %212 : vector<1x1x256xf32> to vector<256xf32>
    %cst_42 = arith.constant 8.750000e-01 : f32
    %214 = vector.broadcast %cst_42 : f32 to vector<256xf32>
    %215 = arith.mulf %214, %213 : vector<256xf32>
    %216 = vector.extract_strided_slice %2 {offsets = [1, 3, 0], sizes = [1, 1, 256], strides = [1, 1, 1]} : vector<4x4x256xf32> to vector<1x1x256xf32>
    %217 = vector.shape_cast %216 : vector<1x1x256xf32> to vector<256xf32>
    %cst_43 = arith.constant 1.250000e-01 : f32
    %218 = vector.broadcast %cst_43 : f32 to vector<256xf32>
    %219 = arith.mulf %218, %217 : vector<256xf32>
    %220 = arith.addf %215, %219 : vector<256xf32>
    %221 = vector.extract_strided_slice %2 {offsets = [1, 2, 0], sizes = [1, 1, 256], strides = [1, 1, 1]} : vector<4x4x256xf32> to vector<1x1x256xf32>
    %222 = vector.shape_cast %221 : vector<1x1x256xf32> to vector<256xf32>
    %cst_44 = arith.constant 6.250000e-01 : f32
    %223 = vector.broadcast %cst_44 : f32 to vector<256xf32>
    %224 = arith.mulf %223, %222 : vector<256xf32>
    %225 = vector.extract_strided_slice %2 {offsets = [1, 3, 0], sizes = [1, 1, 256], strides = [1, 1, 1]} : vector<4x4x256xf32> to vector<1x1x256xf32>
    %226 = vector.shape_cast %225 : vector<1x1x256xf32> to vector<256xf32>
    %cst_45 = arith.constant 3.750000e-01 : f32
    %227 = vector.broadcast %cst_45 : f32 to vector<256xf32>
    %228 = arith.mulf %227, %226 : vector<256xf32>
    %229 = arith.addf %224, %228 : vector<256xf32>
    %230 = vector.extract_strided_slice %2 {offsets = [1, 2, 0], sizes = [1, 1, 256], strides = [1, 1, 1]} : vector<4x4x256xf32> to vector<1x1x256xf32>
    %231 = vector.shape_cast %230 : vector<1x1x256xf32> to vector<256xf32>
    %cst_46 = arith.constant 3.750000e-01 : f32
    %232 = vector.broadcast %cst_46 : f32 to vector<256xf32>
    %233 = arith.mulf %232, %231 : vector<256xf32>
    %234 = vector.extract_strided_slice %2 {offsets = [1, 3, 0], sizes = [1, 1, 256], strides = [1, 1, 1]} : vector<4x4x256xf32> to vector<1x1x256xf32>
    %235 = vector.shape_cast %234 : vector<1x1x256xf32> to vector<256xf32>
    %cst_47 = arith.constant 6.250000e-01 : f32
    %236 = vector.broadcast %cst_47 : f32 to vector<256xf32>
    %237 = arith.mulf %236, %235 : vector<256xf32>
    %238 = arith.addf %233, %237 : vector<256xf32>
    %239 = vector.extract_strided_slice %2 {offsets = [1, 2, 0], sizes = [1, 1, 256], strides = [1, 1, 1]} : vector<4x4x256xf32> to vector<1x1x256xf32>
    %240 = vector.shape_cast %239 : vector<1x1x256xf32> to vector<256xf32>
    %cst_48 = arith.constant 1.250000e-01 : f32
    %241 = vector.broadcast %cst_48 : f32 to vector<256xf32>
    %242 = arith.mulf %241, %240 : vector<256xf32>
    %243 = vector.extract_strided_slice %2 {offsets = [1, 3, 0], sizes = [1, 1, 256], strides = [1, 1, 1]} : vector<4x4x256xf32> to vector<1x1x256xf32>
    %244 = vector.shape_cast %243 : vector<1x1x256xf32> to vector<256xf32>
    %cst_49 = arith.constant 8.750000e-01 : f32
    %245 = vector.broadcast %cst_49 : f32 to vector<256xf32>
    %246 = arith.mulf %245, %244 : vector<256xf32>
    %247 = arith.addf %242, %246 : vector<256xf32>
    %248 = vector.extract_strided_slice %2 {offsets = [1, 3, 0], sizes = [1, 1, 256], strides = [1, 1, 1]} : vector<4x4x256xf32> to vector<1x1x256xf32>
    %249 = vector.shape_cast %248 : vector<1x1x256xf32> to vector<256xf32>
    %250 = vector.extract_strided_slice %2 {offsets = [1, 3, 0], sizes = [1, 1, 256], strides = [1, 1, 1]} : vector<4x4x256xf32> to vector<1x1x256xf32>
    %251 = vector.shape_cast %250 : vector<1x1x256xf32> to vector<256xf32>
    %252 = vector.shape_cast %137 : vector<256xf32> to vector<1x256xf32>
    %253 = vector.shape_cast %139 : vector<256xf32> to vector<1x256xf32>
    %254 = vector.shape_cast %148 : vector<256xf32> to vector<1x256xf32>
    %255 = vector.shape_cast %157 : vector<256xf32> to vector<1x256xf32>
    %256 = vector.shape_cast %166 : vector<256xf32> to vector<1x256xf32>
    %257 = vector.shape_cast %175 : vector<256xf32> to vector<1x256xf32>
    %258 = vector.shape_cast %184 : vector<256xf32> to vector<1x256xf32>
    %259 = vector.shape_cast %193 : vector<256xf32> to vector<1x256xf32>
    %260 = vector.shape_cast %202 : vector<256xf32> to vector<1x256xf32>
    %261 = vector.shape_cast %211 : vector<256xf32> to vector<1x256xf32>
    %262 = vector.shape_cast %220 : vector<256xf32> to vector<1x256xf32>
    %263 = vector.shape_cast %229 : vector<256xf32> to vector<1x256xf32>
    %264 = vector.shape_cast %238 : vector<256xf32> to vector<1x256xf32>
    %265 = vector.shape_cast %247 : vector<256xf32> to vector<1x256xf32>
    %266 = vector.shape_cast %249 : vector<256xf32> to vector<1x256xf32>
    %267 = vector.shape_cast %251 : vector<256xf32> to vector<1x256xf32>
    %268 = tpu.concatenate %252, %253, %254, %255, %256, %257, %258, %259, %260, %261, %262, %263, %264, %265, %266, %267 in 0 : vector<1x256xf32>, vector<1x256xf32>, vector<1x256xf32>, vector<1x256xf32>, vector<1x256xf32>, vector<1x256xf32>, vector<1x256xf32>, vector<1x256xf32>, vector<1x256xf32>, vector<1x256xf32>, vector<1x256xf32>, vector<1x256xf32>, vector<1x256xf32>, vector<1x256xf32>, vector<1x256xf32>, vector<1x256xf32> -> vector<16x256xf32>
    %269 = vector.extract_strided_slice %2 {offsets = [2, 0, 0], sizes = [1, 1, 256], strides = [1, 1, 1]} : vector<4x4x256xf32> to vector<1x1x256xf32>
    %270 = vector.shape_cast %269 : vector<1x1x256xf32> to vector<256xf32>
    %271 = vector.extract_strided_slice %2 {offsets = [2, 0, 0], sizes = [1, 1, 256], strides = [1, 1, 1]} : vector<4x4x256xf32> to vector<1x1x256xf32>
    %272 = vector.shape_cast %271 : vector<1x1x256xf32> to vector<256xf32>
    %273 = vector.extract_strided_slice %2 {offsets = [2, 0, 0], sizes = [1, 1, 256], strides = [1, 1, 1]} : vector<4x4x256xf32> to vector<1x1x256xf32>
    %274 = vector.shape_cast %273 : vector<1x1x256xf32> to vector<256xf32>
    %cst_50 = arith.constant 8.750000e-01 : f32
    %275 = vector.broadcast %cst_50 : f32 to vector<256xf32>
    %276 = arith.mulf %275, %274 : vector<256xf32>
    %277 = vector.extract_strided_slice %2 {offsets = [2, 1, 0], sizes = [1, 1, 256], strides = [1, 1, 1]} : vector<4x4x256xf32> to vector<1x1x256xf32>
    %278 = vector.shape_cast %277 : vector<1x1x256xf32> to vector<256xf32>
    %cst_51 = arith.constant 1.250000e-01 : f32
    %279 = vector.broadcast %cst_51 : f32 to vector<256xf32>
    %280 = arith.mulf %279, %278 : vector<256xf32>
    %281 = arith.addf %276, %280 : vector<256xf32>
    %282 = vector.extract_strided_slice %2 {offsets = [2, 0, 0], sizes = [1, 1, 256], strides = [1, 1, 1]} : vector<4x4x256xf32> to vector<1x1x256xf32>
    %283 = vector.shape_cast %282 : vector<1x1x256xf32> to vector<256xf32>
    %cst_52 = arith.constant 6.250000e-01 : f32
    %284 = vector.broadcast %cst_52 : f32 to vector<256xf32>
    %285 = arith.mulf %284, %283 : vector<256xf32>
    %286 = vector.extract_strided_slice %2 {offsets = [2, 1, 0], sizes = [1, 1, 256], strides = [1, 1, 1]} : vector<4x4x256xf32> to vector<1x1x256xf32>
    %287 = vector.shape_cast %286 : vector<1x1x256xf32> to vector<256xf32>
    %cst_53 = arith.constant 3.750000e-01 : f32
    %288 = vector.broadcast %cst_53 : f32 to vector<256xf32>
    %289 = arith.mulf %288, %287 : vector<256xf32>
    %290 = arith.addf %285, %289 : vector<256xf32>
    %291 = vector.extract_strided_slice %2 {offsets = [2, 0, 0], sizes = [1, 1, 256], strides = [1, 1, 1]} : vector<4x4x256xf32> to vector<1x1x256xf32>
    %292 = vector.shape_cast %291 : vector<1x1x256xf32> to vector<256xf32>
    %cst_54 = arith.constant 3.750000e-01 : f32
    %293 = vector.broadcast %cst_54 : f32 to vector<256xf32>
    %294 = arith.mulf %293, %292 : vector<256xf32>
    %295 = vector.extract_strided_slice %2 {offsets = [2, 1, 0], sizes = [1, 1, 256], strides = [1, 1, 1]} : vector<4x4x256xf32> to vector<1x1x256xf32>
    %296 = vector.shape_cast %295 : vector<1x1x256xf32> to vector<256xf32>
    %cst_55 = arith.constant 6.250000e-01 : f32
    %297 = vector.broadcast %cst_55 : f32 to vector<256xf32>
    %298 = arith.mulf %297, %296 : vector<256xf32>
    %299 = arith.addf %294, %298 : vector<256xf32>
    %300 = vector.extract_strided_slice %2 {offsets = [2, 0, 0], sizes = [1, 1, 256], strides = [1, 1, 1]} : vector<4x4x256xf32> to vector<1x1x256xf32>
    %301 = vector.shape_cast %300 : vector<1x1x256xf32> to vector<256xf32>
    %cst_56 = arith.constant 1.250000e-01 : f32
    %302 = vector.broadcast %cst_56 : f32 to vector<256xf32>
    %303 = arith.mulf %302, %301 : vector<256xf32>
    %304 = vector.extract_strided_slice %2 {offsets = [2, 1, 0], sizes = [1, 1, 256], strides = [1, 1, 1]} : vector<4x4x256xf32> to vector<1x1x256xf32>
    %305 = vector.shape_cast %304 : vector<1x1x256xf32> to vector<256xf32>
    %cst_57 = arith.constant 8.750000e-01 : f32
    %306 = vector.broadcast %cst_57 : f32 to vector<256xf32>
    %307 = arith.mulf %306, %305 : vector<256xf32>
    %308 = arith.addf %303, %307 : vector<256xf32>
    %309 = vector.extract_strided_slice %2 {offsets = [2, 1, 0], sizes = [1, 1, 256], strides = [1, 1, 1]} : vector<4x4x256xf32> to vector<1x1x256xf32>
    %310 = vector.shape_cast %309 : vector<1x1x256xf32> to vector<256xf32>
    %cst_58 = arith.constant 8.750000e-01 : f32
    %311 = vector.broadcast %cst_58 : f32 to vector<256xf32>
    %312 = arith.mulf %311, %310 : vector<256xf32>
    %313 = vector.extract_strided_slice %2 {offsets = [2, 2, 0], sizes = [1, 1, 256], strides = [1, 1, 1]} : vector<4x4x256xf32> to vector<1x1x256xf32>
    %314 = vector.shape_cast %313 : vector<1x1x256xf32> to vector<256xf32>
    %cst_59 = arith.constant 1.250000e-01 : f32
    %315 = vector.broadcast %cst_59 : f32 to vector<256xf32>
    %316 = arith.mulf %315, %314 : vector<256xf32>
    %317 = arith.addf %312, %316 : vector<256xf32>
    %318 = vector.extract_strided_slice %2 {offsets = [2, 1, 0], sizes = [1, 1, 256], strides = [1, 1, 1]} : vector<4x4x256xf32> to vector<1x1x256xf32>
    %319 = vector.shape_cast %318 : vector<1x1x256xf32> to vector<256xf32>
    %cst_60 = arith.constant 6.250000e-01 : f32
    %320 = vector.broadcast %cst_60 : f32 to vector<256xf32>
    %321 = arith.mulf %320, %319 : vector<256xf32>
    %322 = vector.extract_strided_slice %2 {offsets = [2, 2, 0], sizes = [1, 1, 256], strides = [1, 1, 1]} : vector<4x4x256xf32> to vector<1x1x256xf32>
    %323 = vector.shape_cast %322 : vector<1x1x256xf32> to vector<256xf32>
    %cst_61 = arith.constant 3.750000e-01 : f32
    %324 = vector.broadcast %cst_61 : f32 to vector<256xf32>
    %325 = arith.mulf %324, %323 : vector<256xf32>
    %326 = arith.addf %321, %325 : vector<256xf32>
    %327 = vector.extract_strided_slice %2 {offsets = [2, 1, 0], sizes = [1, 1, 256], strides = [1, 1, 1]} : vector<4x4x256xf32> to vector<1x1x256xf32>
    %328 = vector.shape_cast %327 : vector<1x1x256xf32> to vector<256xf32>
    %cst_62 = arith.constant 3.750000e-01 : f32
    %329 = vector.broadcast %cst_62 : f32 to vector<256xf32>
    %330 = arith.mulf %329, %328 : vector<256xf32>
    %331 = vector.extract_strided_slice %2 {offsets = [2, 2, 0], sizes = [1, 1, 256], strides = [1, 1, 1]} : vector<4x4x256xf32> to vector<1x1x256xf32>
    %332 = vector.shape_cast %331 : vector<1x1x256xf32> to vector<256xf32>
    %cst_63 = arith.constant 6.250000e-01 : f32
    %333 = vector.broadcast %cst_63 : f32 to vector<256xf32>
    %334 = arith.mulf %333, %332 : vector<256xf32>
    %335 = arith.addf %330, %334 : vector<256xf32>
    %336 = vector.extract_strided_slice %2 {offsets = [2, 1, 0], sizes = [1, 1, 256], strides = [1, 1, 1]} : vector<4x4x256xf32> to vector<1x1x256xf32>
    %337 = vector.shape_cast %336 : vector<1x1x256xf32> to vector<256xf32>
    %cst_64 = arith.constant 1.250000e-01 : f32
    %338 = vector.broadcast %cst_64 : f32 to vector<256xf32>
    %339 = arith.mulf %338, %337 : vector<256xf32>
    %340 = vector.extract_strided_slice %2 {offsets = [2, 2, 0], sizes = [1, 1, 256], strides = [1, 1, 1]} : vector<4x4x256xf32> to vector<1x1x256xf32>
    %341 = vector.shape_cast %340 : vector<1x1x256xf32> to vector<256xf32>
    %cst_65 = arith.constant 8.750000e-01 : f32
    %342 = vector.broadcast %cst_65 : f32 to vector<256xf32>
    %343 = arith.mulf %342, %341 : vector<256xf32>
    %344 = arith.addf %339, %343 : vector<256xf32>
    %345 = vector.extract_strided_slice %2 {offsets = [2, 2, 0], sizes = [1, 1, 256], strides = [1, 1, 1]} : vector<4x4x256xf32> to vector<1x1x256xf32>
    %346 = vector.shape_cast %345 : vector<1x1x256xf32> to vector<256xf32>
    %cst_66 = arith.constant 8.750000e-01 : f32
    %347 = vector.broadcast %cst_66 : f32 to vector<256xf32>
    %348 = arith.mulf %347, %346 : vector<256xf32>
    %349 = vector.extract_strided_slice %2 {offsets = [2, 3, 0], sizes = [1, 1, 256], strides = [1, 1, 1]} : vector<4x4x256xf32> to vector<1x1x256xf32>
    %350 = vector.shape_cast %349 : vector<1x1x256xf32> to vector<256xf32>
    %cst_67 = arith.constant 1.250000e-01 : f32
    %351 = vector.broadcast %cst_67 : f32 to vector<256xf32>
    %352 = arith.mulf %351, %350 : vector<256xf32>
    %353 = arith.addf %348, %352 : vector<256xf32>
    %354 = vector.extract_strided_slice %2 {offsets = [2, 2, 0], sizes = [1, 1, 256], strides = [1, 1, 1]} : vector<4x4x256xf32> to vector<1x1x256xf32>
    %355 = vector.shape_cast %354 : vector<1x1x256xf32> to vector<256xf32>
    %cst_68 = arith.constant 6.250000e-01 : f32
    %356 = vector.broadcast %cst_68 : f32 to vector<256xf32>
    %357 = arith.mulf %356, %355 : vector<256xf32>
    %358 = vector.extract_strided_slice %2 {offsets = [2, 3, 0], sizes = [1, 1, 256], strides = [1, 1, 1]} : vector<4x4x256xf32> to vector<1x1x256xf32>
    %359 = vector.shape_cast %358 : vector<1x1x256xf32> to vector<256xf32>
    %cst_69 = arith.constant 3.750000e-01 : f32
    %360 = vector.broadcast %cst_69 : f32 to vector<256xf32>
    %361 = arith.mulf %360, %359 : vector<256xf32>
    %362 = arith.addf %357, %361 : vector<256xf32>
    %363 = vector.extract_strided_slice %2 {offsets = [2, 2, 0], sizes = [1, 1, 256], strides = [1, 1, 1]} : vector<4x4x256xf32> to vector<1x1x256xf32>
    %364 = vector.shape_cast %363 : vector<1x1x256xf32> to vector<256xf32>
    %cst_70 = arith.constant 3.750000e-01 : f32
    %365 = vector.broadcast %cst_70 : f32 to vector<256xf32>
    %366 = arith.mulf %365, %364 : vector<256xf32>
    %367 = vector.extract_strided_slice %2 {offsets = [2, 3, 0], sizes = [1, 1, 256], strides = [1, 1, 1]} : vector<4x4x256xf32> to vector<1x1x256xf32>
    %368 = vector.shape_cast %367 : vector<1x1x256xf32> to vector<256xf32>
    %cst_71 = arith.constant 6.250000e-01 : f32
    %369 = vector.broadcast %cst_71 : f32 to vector<256xf32>
    %370 = arith.mulf %369, %368 : vector<256xf32>
    %371 = arith.addf %366, %370 : vector<256xf32>
    %372 = vector.extract_strided_slice %2 {offsets = [2, 2, 0], sizes = [1, 1, 256], strides = [1, 1, 1]} : vector<4x4x256xf32> to vector<1x1x256xf32>
    %373 = vector.shape_cast %372 : vector<1x1x256xf32> to vector<256xf32>
    %cst_72 = arith.constant 1.250000e-01 : f32
    %374 = vector.broadcast %cst_72 : f32 to vector<256xf32>
    %375 = arith.mulf %374, %373 : vector<256xf32>
    %376 = vector.extract_strided_slice %2 {offsets = [2, 3, 0], sizes = [1, 1, 256], strides = [1, 1, 1]} : vector<4x4x256xf32> to vector<1x1x256xf32>
    %377 = vector.shape_cast %376 : vector<1x1x256xf32> to vector<256xf32>
    %cst_73 = arith.constant 8.750000e-01 : f32
    %378 = vector.broadcast %cst_73 : f32 to vector<256xf32>
    %379 = arith.mulf %378, %377 : vector<256xf32>
    %380 = arith.addf %375, %379 : vector<256xf32>
    %381 = vector.extract_strided_slice %2 {offsets = [2, 3, 0], sizes = [1, 1, 256], strides = [1, 1, 1]} : vector<4x4x256xf32> to vector<1x1x256xf32>
    %382 = vector.shape_cast %381 : vector<1x1x256xf32> to vector<256xf32>
    %383 = vector.extract_strided_slice %2 {offsets = [2, 3, 0], sizes = [1, 1, 256], strides = [1, 1, 1]} : vector<4x4x256xf32> to vector<1x1x256xf32>
    %384 = vector.shape_cast %383 : vector<1x1x256xf32> to vector<256xf32>
    %385 = vector.shape_cast %270 : vector<256xf32> to vector<1x256xf32>
    %386 = vector.shape_cast %272 : vector<256xf32> to vector<1x256xf32>
    %387 = vector.shape_cast %281 : vector<256xf32> to vector<1x256xf32>
    %388 = vector.shape_cast %290 : vector<256xf32> to vector<1x256xf32>
    %389 = vector.shape_cast %299 : vector<256xf32> to vector<1x256xf32>
    %390 = vector.shape_cast %308 : vector<256xf32> to vector<1x256xf32>
    %391 = vector.shape_cast %317 : vector<256xf32> to vector<1x256xf32>
    %392 = vector.shape_cast %326 : vector<256xf32> to vector<1x256xf32>
    %393 = vector.shape_cast %335 : vector<256xf32> to vector<1x256xf32>
    %394 = vector.shape_cast %344 : vector<256xf32> to vector<1x256xf32>
    %395 = vector.shape_cast %353 : vector<256xf32> to vector<1x256xf32>
    %396 = vector.shape_cast %362 : vector<256xf32> to vector<1x256xf32>
    %397 = vector.shape_cast %371 : vector<256xf32> to vector<1x256xf32>
    %398 = vector.shape_cast %380 : vector<256xf32> to vector<1x256xf32>
    %399 = vector.shape_cast %382 : vector<256xf32> to vector<1x256xf32>
    %400 = vector.shape_cast %384 : vector<256xf32> to vector<1x256xf32>
    %401 = tpu.concatenate %385, %386, %387, %388, %389, %390, %391, %392, %393, %394, %395, %396, %397, %398, %399, %400 in 0 : vector<1x256xf32>, vector<1x256xf32>, vector<1x256xf32>, vector<1x256xf32>, vector<1x256xf32>, vector<1x256xf32>, vector<1x256xf32>, vector<1x256xf32>, vector<1x256xf32>, vector<1x256xf32>, vector<1x256xf32>, vector<1x256xf32>, vector<1x256xf32>, vector<1x256xf32>, vector<1x256xf32>, vector<1x256xf32> -> vector<16x256xf32>
    %402 = vector.extract_strided_slice %2 {offsets = [3, 0, 0], sizes = [1, 1, 256], strides = [1, 1, 1]} : vector<4x4x256xf32> to vector<1x1x256xf32>
    %403 = vector.shape_cast %402 : vector<1x1x256xf32> to vector<256xf32>
    %404 = vector.extract_strided_slice %2 {offsets = [3, 0, 0], sizes = [1, 1, 256], strides = [1, 1, 1]} : vector<4x4x256xf32> to vector<1x1x256xf32>
    %405 = vector.shape_cast %404 : vector<1x1x256xf32> to vector<256xf32>
    %406 = vector.extract_strided_slice %2 {offsets = [3, 0, 0], sizes = [1, 1, 256], strides = [1, 1, 1]} : vector<4x4x256xf32> to vector<1x1x256xf32>
    %407 = vector.shape_cast %406 : vector<1x1x256xf32> to vector<256xf32>
    %cst_74 = arith.constant 8.750000e-01 : f32
    %408 = vector.broadcast %cst_74 : f32 to vector<256xf32>
    %409 = arith.mulf %408, %407 : vector<256xf32>
    %410 = vector.extract_strided_slice %2 {offsets = [3, 1, 0], sizes = [1, 1, 256], strides = [1, 1, 1]} : vector<4x4x256xf32> to vector<1x1x256xf32>
    %411 = vector.shape_cast %410 : vector<1x1x256xf32> to vector<256xf32>
    %cst_75 = arith.constant 1.250000e-01 : f32
    %412 = vector.broadcast %cst_75 : f32 to vector<256xf32>
    %413 = arith.mulf %412, %411 : vector<256xf32>
    %414 = arith.addf %409, %413 : vector<256xf32>
    %415 = vector.extract_strided_slice %2 {offsets = [3, 0, 0], sizes = [1, 1, 256], strides = [1, 1, 1]} : vector<4x4x256xf32> to vector<1x1x256xf32>
    %416 = vector.shape_cast %415 : vector<1x1x256xf32> to vector<256xf32>
    %cst_76 = arith.constant 6.250000e-01 : f32
    %417 = vector.broadcast %cst_76 : f32 to vector<256xf32>
    %418 = arith.mulf %417, %416 : vector<256xf32>
    %419 = vector.extract_strided_slice %2 {offsets = [3, 1, 0], sizes = [1, 1, 256], strides = [1, 1, 1]} : vector<4x4x256xf32> to vector<1x1x256xf32>
    %420 = vector.shape_cast %419 : vector<1x1x256xf32> to vector<256xf32>
    %cst_77 = arith.constant 3.750000e-01 : f32
    %421 = vector.broadcast %cst_77 : f32 to vector<256xf32>
    %422 = arith.mulf %421, %420 : vector<256xf32>
    %423 = arith.addf %418, %422 : vector<256xf32>
    %424 = vector.extract_strided_slice %2 {offsets = [3, 0, 0], sizes = [1, 1, 256], strides = [1, 1, 1]} : vector<4x4x256xf32> to vector<1x1x256xf32>
    %425 = vector.shape_cast %424 : vector<1x1x256xf32> to vector<256xf32>
    %cst_78 = arith.constant 3.750000e-01 : f32
    %426 = vector.broadcast %cst_78 : f32 to vector<256xf32>
    %427 = arith.mulf %426, %425 : vector<256xf32>
    %428 = vector.extract_strided_slice %2 {offsets = [3, 1, 0], sizes = [1, 1, 256], strides = [1, 1, 1]} : vector<4x4x256xf32> to vector<1x1x256xf32>
    %429 = vector.shape_cast %428 : vector<1x1x256xf32> to vector<256xf32>
    %cst_79 = arith.constant 6.250000e-01 : f32
    %430 = vector.broadcast %cst_79 : f32 to vector<256xf32>
    %431 = arith.mulf %430, %429 : vector<256xf32>
    %432 = arith.addf %427, %431 : vector<256xf32>
    %433 = vector.extract_strided_slice %2 {offsets = [3, 0, 0], sizes = [1, 1, 256], strides = [1, 1, 1]} : vector<4x4x256xf32> to vector<1x1x256xf32>
    %434 = vector.shape_cast %433 : vector<1x1x256xf32> to vector<256xf32>
    %cst_80 = arith.constant 1.250000e-01 : f32
    %435 = vector.broadcast %cst_80 : f32 to vector<256xf32>
    %436 = arith.mulf %435, %434 : vector<256xf32>
    %437 = vector.extract_strided_slice %2 {offsets = [3, 1, 0], sizes = [1, 1, 256], strides = [1, 1, 1]} : vector<4x4x256xf32> to vector<1x1x256xf32>
    %438 = vector.shape_cast %437 : vector<1x1x256xf32> to vector<256xf32>
    %cst_81 = arith.constant 8.750000e-01 : f32
    %439 = vector.broadcast %cst_81 : f32 to vector<256xf32>
    %440 = arith.mulf %439, %438 : vector<256xf32>
    %441 = arith.addf %436, %440 : vector<256xf32>
    %442 = vector.extract_strided_slice %2 {offsets = [3, 1, 0], sizes = [1, 1, 256], strides = [1, 1, 1]} : vector<4x4x256xf32> to vector<1x1x256xf32>
    %443 = vector.shape_cast %442 : vector<1x1x256xf32> to vector<256xf32>
    %cst_82 = arith.constant 8.750000e-01 : f32
    %444 = vector.broadcast %cst_82 : f32 to vector<256xf32>
    %445 = arith.mulf %444, %443 : vector<256xf32>
    %446 = vector.extract_strided_slice %2 {offsets = [3, 2, 0], sizes = [1, 1, 256], strides = [1, 1, 1]} : vector<4x4x256xf32> to vector<1x1x256xf32>
    %447 = vector.shape_cast %446 : vector<1x1x256xf32> to vector<256xf32>
    %cst_83 = arith.constant 1.250000e-01 : f32
    %448 = vector.broadcast %cst_83 : f32 to vector<256xf32>
    %449 = arith.mulf %448, %447 : vector<256xf32>
    %450 = arith.addf %445, %449 : vector<256xf32>
    %451 = vector.extract_strided_slice %2 {offsets = [3, 1, 0], sizes = [1, 1, 256], strides = [1, 1, 1]} : vector<4x4x256xf32> to vector<1x1x256xf32>
    %452 = vector.shape_cast %451 : vector<1x1x256xf32> to vector<256xf32>
    %cst_84 = arith.constant 6.250000e-01 : f32
    %453 = vector.broadcast %cst_84 : f32 to vector<256xf32>
    %454 = arith.mulf %453, %452 : vector<256xf32>
    %455 = vector.extract_strided_slice %2 {offsets = [3, 2, 0], sizes = [1, 1, 256], strides = [1, 1, 1]} : vector<4x4x256xf32> to vector<1x1x256xf32>
    %456 = vector.shape_cast %455 : vector<1x1x256xf32> to vector<256xf32>
    %cst_85 = arith.constant 3.750000e-01 : f32
    %457 = vector.broadcast %cst_85 : f32 to vector<256xf32>
    %458 = arith.mulf %457, %456 : vector<256xf32>
    %459 = arith.addf %454, %458 : vector<256xf32>
    %460 = vector.extract_strided_slice %2 {offsets = [3, 1, 0], sizes = [1, 1, 256], strides = [1, 1, 1]} : vector<4x4x256xf32> to vector<1x1x256xf32>
    %461 = vector.shape_cast %460 : vector<1x1x256xf32> to vector<256xf32>
    %cst_86 = arith.constant 3.750000e-01 : f32
    %462 = vector.broadcast %cst_86 : f32 to vector<256xf32>
    %463 = arith.mulf %462, %461 : vector<256xf32>
    %464 = vector.extract_strided_slice %2 {offsets = [3, 2, 0], sizes = [1, 1, 256], strides = [1, 1, 1]} : vector<4x4x256xf32> to vector<1x1x256xf32>
    %465 = vector.shape_cast %464 : vector<1x1x256xf32> to vector<256xf32>
    %cst_87 = arith.constant 6.250000e-01 : f32
    %466 = vector.broadcast %cst_87 : f32 to vector<256xf32>
    %467 = arith.mulf %466, %465 : vector<256xf32>
    %468 = arith.addf %463, %467 : vector<256xf32>
    %469 = vector.extract_strided_slice %2 {offsets = [3, 1, 0], sizes = [1, 1, 256], strides = [1, 1, 1]} : vector<4x4x256xf32> to vector<1x1x256xf32>
    %470 = vector.shape_cast %469 : vector<1x1x256xf32> to vector<256xf32>
    %cst_88 = arith.constant 1.250000e-01 : f32
    %471 = vector.broadcast %cst_88 : f32 to vector<256xf32>
    %472 = arith.mulf %471, %470 : vector<256xf32>
    %473 = vector.extract_strided_slice %2 {offsets = [3, 2, 0], sizes = [1, 1, 256], strides = [1, 1, 1]} : vector<4x4x256xf32> to vector<1x1x256xf32>
    %474 = vector.shape_cast %473 : vector<1x1x256xf32> to vector<256xf32>
    %cst_89 = arith.constant 8.750000e-01 : f32
    %475 = vector.broadcast %cst_89 : f32 to vector<256xf32>
    %476 = arith.mulf %475, %474 : vector<256xf32>
    %477 = arith.addf %472, %476 : vector<256xf32>
    %478 = vector.extract_strided_slice %2 {offsets = [3, 2, 0], sizes = [1, 1, 256], strides = [1, 1, 1]} : vector<4x4x256xf32> to vector<1x1x256xf32>
    %479 = vector.shape_cast %478 : vector<1x1x256xf32> to vector<256xf32>
    %cst_90 = arith.constant 8.750000e-01 : f32
    %480 = vector.broadcast %cst_90 : f32 to vector<256xf32>
    %481 = arith.mulf %480, %479 : vector<256xf32>
    %482 = vector.extract_strided_slice %2 {offsets = [3, 3, 0], sizes = [1, 1, 256], strides = [1, 1, 1]} : vector<4x4x256xf32> to vector<1x1x256xf32>
    %483 = vector.shape_cast %482 : vector<1x1x256xf32> to vector<256xf32>
    %cst_91 = arith.constant 1.250000e-01 : f32
    %484 = vector.broadcast %cst_91 : f32 to vector<256xf32>
    %485 = arith.mulf %484, %483 : vector<256xf32>
    %486 = arith.addf %481, %485 : vector<256xf32>
    %487 = vector.extract_strided_slice %2 {offsets = [3, 2, 0], sizes = [1, 1, 256], strides = [1, 1, 1]} : vector<4x4x256xf32> to vector<1x1x256xf32>
    %488 = vector.shape_cast %487 : vector<1x1x256xf32> to vector<256xf32>
    %cst_92 = arith.constant 6.250000e-01 : f32
    %489 = vector.broadcast %cst_92 : f32 to vector<256xf32>
    %490 = arith.mulf %489, %488 : vector<256xf32>
    %491 = vector.extract_strided_slice %2 {offsets = [3, 3, 0], sizes = [1, 1, 256], strides = [1, 1, 1]} : vector<4x4x256xf32> to vector<1x1x256xf32>
    %492 = vector.shape_cast %491 : vector<1x1x256xf32> to vector<256xf32>
    %cst_93 = arith.constant 3.750000e-01 : f32
    %493 = vector.broadcast %cst_93 : f32 to vector<256xf32>
    %494 = arith.mulf %493, %492 : vector<256xf32>
    %495 = arith.addf %490, %494 : vector<256xf32>
    %496 = vector.extract_strided_slice %2 {offsets = [3, 2, 0], sizes = [1, 1, 256], strides = [1, 1, 1]} : vector<4x4x256xf32> to vector<1x1x256xf32>
    %497 = vector.shape_cast %496 : vector<1x1x256xf32> to vector<256xf32>
    %cst_94 = arith.constant 3.750000e-01 : f32
    %498 = vector.broadcast %cst_94 : f32 to vector<256xf32>
    %499 = arith.mulf %498, %497 : vector<256xf32>
    %500 = vector.extract_strided_slice %2 {offsets = [3, 3, 0], sizes = [1, 1, 256], strides = [1, 1, 1]} : vector<4x4x256xf32> to vector<1x1x256xf32>
    %501 = vector.shape_cast %500 : vector<1x1x256xf32> to vector<256xf32>
    %cst_95 = arith.constant 6.250000e-01 : f32
    %502 = vector.broadcast %cst_95 : f32 to vector<256xf32>
    %503 = arith.mulf %502, %501 : vector<256xf32>
    %504 = arith.addf %499, %503 : vector<256xf32>
    %505 = vector.extract_strided_slice %2 {offsets = [3, 2, 0], sizes = [1, 1, 256], strides = [1, 1, 1]} : vector<4x4x256xf32> to vector<1x1x256xf32>
    %506 = vector.shape_cast %505 : vector<1x1x256xf32> to vector<256xf32>
    %cst_96 = arith.constant 1.250000e-01 : f32
    %507 = vector.broadcast %cst_96 : f32 to vector<256xf32>
    %508 = arith.mulf %507, %506 : vector<256xf32>
    %509 = vector.extract_strided_slice %2 {offsets = [3, 3, 0], sizes = [1, 1, 256], strides = [1, 1, 1]} : vector<4x4x256xf32> to vector<1x1x256xf32>
    %510 = vector.shape_cast %509 : vector<1x1x256xf32> to vector<256xf32>
    %cst_97 = arith.constant 8.750000e-01 : f32
    %511 = vector.broadcast %cst_97 : f32 to vector<256xf32>
    %512 = arith.mulf %511, %510 : vector<256xf32>
    %513 = arith.addf %508, %512 : vector<256xf32>
    %514 = vector.extract_strided_slice %2 {offsets = [3, 3, 0], sizes = [1, 1, 256], strides = [1, 1, 1]} : vector<4x4x256xf32> to vector<1x1x256xf32>
    %515 = vector.shape_cast %514 : vector<1x1x256xf32> to vector<256xf32>
    %516 = vector.extract_strided_slice %2 {offsets = [3, 3, 0], sizes = [1, 1, 256], strides = [1, 1, 1]} : vector<4x4x256xf32> to vector<1x1x256xf32>
    %517 = vector.shape_cast %516 : vector<1x1x256xf32> to vector<256xf32>
    %518 = vector.shape_cast %403 : vector<256xf32> to vector<1x256xf32>
    %519 = vector.shape_cast %405 : vector<256xf32> to vector<1x256xf32>
    %520 = vector.shape_cast %414 : vector<256xf32> to vector<1x256xf32>
    %521 = vector.shape_cast %423 : vector<256xf32> to vector<1x256xf32>
    %522 = vector.shape_cast %432 : vector<256xf32> to vector<1x256xf32>
    %523 = vector.shape_cast %441 : vector<256xf32> to vector<1x256xf32>
    %524 = vector.shape_cast %450 : vector<256xf32> to vector<1x256xf32>
    %525 = vector.shape_cast %459 : vector<256xf32> to vector<1x256xf32>
    %526 = vector.shape_cast %468 : vector<256xf32> to vector<1x256xf32>
    %527 = vector.shape_cast %477 : vector<256xf32> to vector<1x256xf32>
    %528 = vector.shape_cast %486 : vector<256xf32> to vector<1x256xf32>
    %529 = vector.shape_cast %495 : vector<256xf32> to vector<1x256xf32>
    %530 = vector.shape_cast %504 : vector<256xf32> to vector<1x256xf32>
    %531 = vector.shape_cast %513 : vector<256xf32> to vector<1x256xf32>
    %532 = vector.shape_cast %515 : vector<256xf32> to vector<1x256xf32>
    %533 = vector.shape_cast %517 : vector<256xf32> to vector<1x256xf32>
    %534 = tpu.concatenate %518, %519, %520, %521, %522, %523, %524, %525, %526, %527, %528, %529, %530, %531, %532, %533 in 0 : vector<1x256xf32>, vector<1x256xf32>, vector<1x256xf32>, vector<1x256xf32>, vector<1x256xf32>, vector<1x256xf32>, vector<1x256xf32>, vector<1x256xf32>, vector<1x256xf32>, vector<1x256xf32>, vector<1x256xf32>, vector<1x256xf32>, vector<1x256xf32>, vector<1x256xf32>, vector<1x256xf32>, vector<1x256xf32> -> vector<16x256xf32>
    %c0_98 = arith.constant 0 : index
    %c0_99 = arith.constant 0 : index
    %c0_100 = arith.constant 0 : index
    %c0_101 = arith.constant 0 : index
    %535 = vector.load %arg2[%c0_98, %c0_99, %c0_100, %c0_101] : memref<1x16x16x256xf32, #tpu.memory_space<vmem>>, vector<1x1x16x256xf32>
    %536 = vector.shape_cast %535 : vector<1x1x16x256xf32> to vector<16x256xf32>
    %537 = vector.shape_cast %135 : vector<16x256xf32> to vector<1x1x16x256xf32>
    tpu.vector_store %arg2[%c0_98, %c0_99, %c0_100, %c0_101], %537 {strides = array<i32>} : memref<1x16x16x256xf32, #tpu.memory_space<vmem>>, vector<1x1x16x256xf32>,
    %c0_102 = arith.constant 0 : index
    %c1 = arith.constant 1 : index
    %c0_103 = arith.constant 0 : index
    %c0_104 = arith.constant 0 : index
    %538 = vector.load %arg2[%c0_102, %c1, %c0_103, %c0_104] : memref<1x16x16x256xf32, #tpu.memory_space<vmem>>, vector<1x1x16x256xf32>
    %539 = vector.shape_cast %538 : vector<1x1x16x256xf32> to vector<16x256xf32>
    %540 = vector.shape_cast %135 : vector<16x256xf32> to vector<1x1x16x256xf32>
    tpu.vector_store %arg2[%c0_102, %c1, %c0_103, %c0_104], %540 {strides = array<i32>} : memref<1x16x16x256xf32, #tpu.memory_space<vmem>>, vector<1x1x16x256xf32>,
    %cst_105 = arith.constant 8.750000e-01 : f32
    %541 = vector.broadcast %cst_105 : f32 to vector<16x256xf32>
    %542 = arith.mulf %541, %135 : vector<16x256xf32>
    %cst_106 = arith.constant 1.250000e-01 : f32
    %543 = vector.broadcast %cst_106 : f32 to vector<16x256xf32>
    %544 = arith.mulf %543, %268 : vector<16x256xf32>
    %545 = arith.addf %542, %544 : vector<16x256xf32>
    %c0_107 = arith.constant 0 : index
    %c2 = arith.constant 2 : index
    %c0_108 = arith.constant 0 : index
    %c0_109 = arith.constant 0 : index
    %546 = vector.load %arg2[%c0_107, %c2, %c0_108, %c0_109] : memref<1x16x16x256xf32, #tpu.memory_space<vmem>>, vector<1x1x16x256xf32>
    %547 = vector.shape_cast %546 : vector<1x1x16x256xf32> to vector<16x256xf32>
    %548 = vector.shape_cast %545 : vector<16x256xf32> to vector<1x1x16x256xf32>
    tpu.vector_store %arg2[%c0_107, %c2, %c0_108, %c0_109], %548 {strides = array<i32>} : memref<1x16x16x256xf32, #tpu.memory_space<vmem>>, vector<1x1x16x256xf32>,
    %cst_110 = arith.constant 6.250000e-01 : f32
    %549 = vector.broadcast %cst_110 : f32 to vector<16x256xf32>
    %550 = arith.mulf %549, %135 : vector<16x256xf32>
    %cst_111 = arith.constant 3.750000e-01 : f32
    %551 = vector.broadcast %cst_111 : f32 to vector<16x256xf32>
    %552 = arith.mulf %551, %268 : vector<16x256xf32>
    %553 = arith.addf %550, %552 : vector<16x256xf32>
    %c0_112 = arith.constant 0 : index
    %c3 = arith.constant 3 : index
    %c0_113 = arith.constant 0 : index
    %c0_114 = arith.constant 0 : index
    %554 = vector.load %arg2[%c0_112, %c3, %c0_113, %c0_114] : memref<1x16x16x256xf32, #tpu.memory_space<vmem>>, vector<1x1x16x256xf32>
    %555 = vector.shape_cast %554 : vector<1x1x16x256xf32> to vector<16x256xf32>
    %556 = vector.shape_cast %553 : vector<16x256xf32> to vector<1x1x16x256xf32>
    tpu.vector_store %arg2[%c0_112, %c3, %c0_113, %c0_114], %556 {strides = array<i32>} : memref<1x16x16x256xf32, #tpu.memory_space<vmem>>, vector<1x1x16x256xf32>,
    %cst_115 = arith.constant 3.750000e-01 : f32
    %557 = vector.broadcast %cst_115 : f32 to vector<16x256xf32>
    %558 = arith.mulf %557, %135 : vector<16x256xf32>
    %cst_116 = arith.constant 6.250000e-01 : f32
    %559 = vector.broadcast %cst_116 : f32 to vector<16x256xf32>
    %560 = arith.mulf %559, %268 : vector<16x256xf32>
    %561 = arith.addf %558, %560 : vector<16x256xf32>
    %c0_117 = arith.constant 0 : index
    %c4 = arith.constant 4 : index
    %c0_118 = arith.constant 0 : index
    %c0_119 = arith.constant 0 : index
    %562 = vector.load %arg2[%c0_117, %c4, %c0_118, %c0_119] : memref<1x16x16x256xf32, #tpu.memory_space<vmem>>, vector<1x1x16x256xf32>
    %563 = vector.shape_cast %562 : vector<1x1x16x256xf32> to vector<16x256xf32>
    %564 = vector.shape_cast %561 : vector<16x256xf32> to vector<1x1x16x256xf32>
    tpu.vector_store %arg2[%c0_117, %c4, %c0_118, %c0_119], %564 {strides = array<i32>} : memref<1x16x16x256xf32, #tpu.memory_space<vmem>>, vector<1x1x16x256xf32>,
    %cst_120 = arith.constant 1.250000e-01 : f32
    %565 = vector.broadcast %cst_120 : f32 to vector<16x256xf32>
    %566 = arith.mulf %565, %135 : vector<16x256xf32>
    %cst_121 = arith.constant 8.750000e-01 : f32
    %567 = vector.broadcast %cst_121 : f32 to vector<16x256xf32>
    %568 = arith.mulf %567, %268 : vector<16x256xf32>
    %569 = arith.addf %566, %568 : vector<16x256xf32>
    %c0_122 = arith.constant 0 : index
    %c5 = arith.constant 5 : index
    %c0_123 = arith.constant 0 : index
    %c0_124 = arith.constant 0 : index
    %570 = vector.load %arg2[%c0_122, %c5, %c0_123, %c0_124] : memref<1x16x16x256xf32, #tpu.memory_space<vmem>>, vector<1x1x16x256xf32>
    %571 = vector.shape_cast %570 : vector<1x1x16x256xf32> to vector<16x256xf32>
    %572 = vector.shape_cast %569 : vector<16x256xf32> to vector<1x1x16x256xf32>
    tpu.vector_store %arg2[%c0_122, %c5, %c0_123, %c0_124], %572 {strides = array<i32>} : memref<1x16x16x256xf32, #tpu.memory_space<vmem>>, vector<1x1x16x256xf32>,
    %cst_125 = arith.constant 8.750000e-01 : f32
    %573 = vector.broadcast %cst_125 : f32 to vector<16x256xf32>
    %574 = arith.mulf %573, %268 : vector<16x256xf32>
    %cst_126 = arith.constant 1.250000e-01 : f32
    %575 = vector.broadcast %cst_126 : f32 to vector<16x256xf32>
    %576 = arith.mulf %575, %401 : vector<16x256xf32>
    %577 = arith.addf %574, %576 : vector<16x256xf32>
    %c0_127 = arith.constant 0 : index
    %c6 = arith.constant 6 : index
    %c0_128 = arith.constant 0 : index
    %c0_129 = arith.constant 0 : index
    %578 = vector.load %arg2[%c0_127, %c6, %c0_128, %c0_129] : memref<1x16x16x256xf32, #tpu.memory_space<vmem>>, vector<1x1x16x256xf32>
    %579 = vector.shape_cast %578 : vector<1x1x16x256xf32> to vector<16x256xf32>
    %580 = vector.shape_cast %577 : vector<16x256xf32> to vector<1x1x16x256xf32>
    tpu.vector_store %arg2[%c0_127, %c6, %c0_128, %c0_129], %580 {strides = array<i32>} : memref<1x16x16x256xf32, #tpu.memory_space<vmem>>, vector<1x1x16x256xf32>,
    %cst_130 = arith.constant 6.250000e-01 : f32
    %581 = vector.broadcast %cst_130 : f32 to vector<16x256xf32>
    %582 = arith.mulf %581, %268 : vector<16x256xf32>
    %cst_131 = arith.constant 3.750000e-01 : f32
    %583 = vector.broadcast %cst_131 : f32 to vector<16x256xf32>
    %584 = arith.mulf %583, %401 : vector<16x256xf32>
    %585 = arith.addf %582, %584 : vector<16x256xf32>
    %c0_132 = arith.constant 0 : index
    %c7 = arith.constant 7 : index
    %c0_133 = arith.constant 0 : index
    %c0_134 = arith.constant 0 : index
    %586 = vector.load %arg2[%c0_132, %c7, %c0_133, %c0_134] : memref<1x16x16x256xf32, #tpu.memory_space<vmem>>, vector<1x1x16x256xf32>
    %587 = vector.shape_cast %586 : vector<1x1x16x256xf32> to vector<16x256xf32>
    %588 = vector.shape_cast %585 : vector<16x256xf32> to vector<1x1x16x256xf32>
    tpu.vector_store %arg2[%c0_132, %c7, %c0_133, %c0_134], %588 {strides = array<i32>} : memref<1x16x16x256xf32, #tpu.memory_space<vmem>>, vector<1x1x16x256xf32>,
    %cst_135 = arith.constant 3.750000e-01 : f32
    %589 = vector.broadcast %cst_135 : f32 to vector<16x256xf32>
    %590 = arith.mulf %589, %268 : vector<16x256xf32>
    %cst_136 = arith.constant 6.250000e-01 : f32
    %591 = vector.broadcast %cst_136 : f32 to vector<16x256xf32>
    %592 = arith.mulf %591, %401 : vector<16x256xf32>
    %593 = arith.addf %590, %592 : vector<16x256xf32>
    %c0_137 = arith.constant 0 : index
    %c8 = arith.constant 8 : index
    %c0_138 = arith.constant 0 : index
    %c0_139 = arith.constant 0 : index
    %594 = vector.load %arg2[%c0_137, %c8, %c0_138, %c0_139] : memref<1x16x16x256xf32, #tpu.memory_space<vmem>>, vector<1x1x16x256xf32>
    %595 = vector.shape_cast %594 : vector<1x1x16x256xf32> to vector<16x256xf32>
    %596 = vector.shape_cast %593 : vector<16x256xf32> to vector<1x1x16x256xf32>
    tpu.vector_store %arg2[%c0_137, %c8, %c0_138, %c0_139], %596 {strides = array<i32>} : memref<1x16x16x256xf32, #tpu.memory_space<vmem>>, vector<1x1x16x256xf32>,
    %cst_140 = arith.constant 1.250000e-01 : f32
    %597 = vector.broadcast %cst_140 : f32 to vector<16x256xf32>
    %598 = arith.mulf %597, %268 : vector<16x256xf32>
    %cst_141 = arith.constant 8.750000e-01 : f32
    %599 = vector.broadcast %cst_141 : f32 to vector<16x256xf32>
    %600 = arith.mulf %599, %401 : vector<16x256xf32>
    %601 = arith.addf %598, %600 : vector<16x256xf32>
    %c0_142 = arith.constant 0 : index
    %c9 = arith.constant 9 : index
    %c0_143 = arith.constant 0 : index
    %c0_144 = arith.constant 0 : index
    %602 = vector.load %arg2[%c0_142, %c9, %c0_143, %c0_144] : memref<1x16x16x256xf32, #tpu.memory_space<vmem>>, vector<1x1x16x256xf32>
    %603 = vector.shape_cast %602 : vector<1x1x16x256xf32> to vector<16x256xf32>
    %604 = vector.shape_cast %601 : vector<16x256xf32> to vector<1x1x16x256xf32>
    tpu.vector_store %arg2[%c0_142, %c9, %c0_143, %c0_144], %604 {strides = array<i32>} : memref<1x16x16x256xf32, #tpu.memory_space<vmem>>, vector<1x1x16x256xf32>,
    %cst_145 = arith.constant 8.750000e-01 : f32
    %605 = vector.broadcast %cst_145 : f32 to vector<16x256xf32>
    %606 = arith.mulf %605, %401 : vector<16x256xf32>
    %cst_146 = arith.constant 1.250000e-01 : f32
    %607 = vector.broadcast %cst_146 : f32 to vector<16x256xf32>
    %608 = arith.mulf %607, %534 : vector<16x256xf32>
    %609 = arith.addf %606, %608 : vector<16x256xf32>
    %c0_147 = arith.constant 0 : index
    %c10 = arith.constant 10 : index
    %c0_148 = arith.constant 0 : index
    %c0_149 = arith.constant 0 : index
    %610 = vector.load %arg2[%c0_147, %c10, %c0_148, %c0_149] : memref<1x16x16x256xf32, #tpu.memory_space<vmem>>, vector<1x1x16x256xf32>
    %611 = vector.shape_cast %610 : vector<1x1x16x256xf32> to vector<16x256xf32>
    %612 = vector.shape_cast %609 : vector<16x256xf32> to vector<1x1x16x256xf32>
    tpu.vector_store %arg2[%c0_147, %c10, %c0_148, %c0_149], %612 {strides = array<i32>} : memref<1x16x16x256xf32, #tpu.memory_space<vmem>>, vector<1x1x16x256xf32>,
    %cst_150 = arith.constant 6.250000e-01 : f32
    %613 = vector.broadcast %cst_150 : f32 to vector<16x256xf32>
    %614 = arith.mulf %613, %401 : vector<16x256xf32>
    %cst_151 = arith.constant 3.750000e-01 : f32
    %615 = vector.broadcast %cst_151 : f32 to vector<16x256xf32>
    %616 = arith.mulf %615, %534 : vector<16x256xf32>
    %617 = arith.addf %614, %616 : vector<16x256xf32>
    %c0_152 = arith.constant 0 : index
    %c11 = arith.constant 11 : index
    %c0_153 = arith.constant 0 : index
    %c0_154 = arith.constant 0 : index
    %618 = vector.load %arg2[%c0_152, %c11, %c0_153, %c0_154] : memref<1x16x16x256xf32, #tpu.memory_space<vmem>>, vector<1x1x16x256xf32>
    %619 = vector.shape_cast %618 : vector<1x1x16x256xf32> to vector<16x256xf32>
    %620 = vector.shape_cast %617 : vector<16x256xf32> to vector<1x1x16x256xf32>
    tpu.vector_store %arg2[%c0_152, %c11, %c0_153, %c0_154], %620 {strides = array<i32>} : memref<1x16x16x256xf32, #tpu.memory_space<vmem>>, vector<1x1x16x256xf32>,
    %cst_155 = arith.constant 3.750000e-01 : f32
    %621 = vector.broadcast %cst_155 : f32 to vector<16x256xf32>
    %622 = arith.mulf %621, %401 : vector<16x256xf32>
    %cst_156 = arith.constant 6.250000e-01 : f32
    %623 = vector.broadcast %cst_156 : f32 to vector<16x256xf32>
    %624 = arith.mulf %623, %534 : vector<16x256xf32>
    %625 = arith.addf %622, %624 : vector<16x256xf32>
    %c0_157 = arith.constant 0 : index
    %c12 = arith.constant 12 : index
    %c0_158 = arith.constant 0 : index
    %c0_159 = arith.constant 0 : index
    %626 = vector.load %arg2[%c0_157, %c12, %c0_158, %c0_159] : memref<1x16x16x256xf32, #tpu.memory_space<vmem>>, vector<1x1x16x256xf32>
    %627 = vector.shape_cast %626 : vector<1x1x16x256xf32> to vector<16x256xf32>
    %628 = vector.shape_cast %625 : vector<16x256xf32> to vector<1x1x16x256xf32>
    tpu.vector_store %arg2[%c0_157, %c12, %c0_158, %c0_159], %628 {strides = array<i32>} : memref<1x16x16x256xf32, #tpu.memory_space<vmem>>, vector<1x1x16x256xf32>,
    %cst_160 = arith.constant 1.250000e-01 : f32
    %629 = vector.broadcast %cst_160 : f32 to vector<16x256xf32>
    %630 = arith.mulf %629, %401 : vector<16x256xf32>
    %cst_161 = arith.constant 8.750000e-01 : f32
    %631 = vector.broadcast %cst_161 : f32 to vector<16x256xf32>
    %632 = arith.mulf %631, %534 : vector<16x256xf32>
    %633 = arith.addf %630, %632 : vector<16x256xf32>
    %c0_162 = arith.constant 0 : index
    %c13 = arith.constant 13 : index
    %c0_163 = arith.constant 0 : index
    %c0_164 = arith.constant 0 : index
    %634 = vector.load %arg2[%c0_162, %c13, %c0_163, %c0_164] : memref<1x16x16x256xf32, #tpu.memory_space<vmem>>, vector<1x1x16x256xf32>
    %635 = vector.shape_cast %634 : vector<1x1x16x256xf32> to vector<16x256xf32>
    %636 = vector.shape_cast %633 : vector<16x256xf32> to vector<1x1x16x256xf32>
    tpu.vector_store %arg2[%c0_162, %c13, %c0_163, %c0_164], %636 {strides = array<i32>} : memref<1x16x16x256xf32, #tpu.memory_space<vmem>>, vector<1x1x16x256xf32>,
    %c0_165 = arith.constant 0 : index
    %c14 = arith.constant 14 : index
    %c0_166 = arith.constant 0 : index
    %c0_167 = arith.constant 0 : index
    %637 = vector.load %arg2[%c0_165, %c14, %c0_166, %c0_167] : memref<1x16x16x256xf32, #tpu.memory_space<vmem>>, vector<1x1x16x256xf32>
    %638 = vector.shape_cast %637 : vector<1x1x16x256xf32> to vector<16x256xf32>
    %639 = vector.shape_cast %534 : vector<16x256xf32> to vector<1x1x16x256xf32>
    tpu.vector_store %arg2[%c0_165, %c14, %c0_166, %c0_167], %639 {strides = array<i32>} : memref<1x16x16x256xf32, #tpu.memory_space<vmem>>, vector<1x1x16x256xf32>,
    %c0_168 = arith.constant 0 : index
    %c15 = arith.constant 15 : index
    %c0_169 = arith.constant 0 : index
    %c0_170 = arith.constant 0 : index
    %640 = vector.load %arg2[%c0_168, %c15, %c0_169, %c0_170] : memref<1x16x16x256xf32, #tpu.memory_space<vmem>>, vector<1x1x16x256xf32>
    %641 = vector.shape_cast %640 : vector<1x1x16x256xf32> to vector<16x256xf32>
    %642 = vector.shape_cast %534 : vector<16x256xf32> to vector<1x1x16x256xf32>
    tpu.vector_store %arg2[%c0_168, %c15, %c0_169, %c0_170], %642 {strides = array<i32>} : memref<1x16x16x256xf32, #tpu.memory_space<vmem>>, vector<1x1x16x256xf32>,
    return
  }
  func.func @transform_0(%arg0: i32) -> (i32, i32, i32, i32) {
    %c0_i32 = arith.constant 0 : i32
    %c0_i32_0 = arith.constant 0 : i32
    %c0_i32_1 = arith.constant 0 : i32
    %c0_i32_2 = arith.constant 0 : i32
    return %arg0, %c0_i32, %c0_i32_0, %c0_i32_1 : i32, i32, i32, i32
  }
  func.func @transform_1(%arg0: i32) -> (i32, i32, i32, i32) {
    %c0_i32 = arith.constant 0 : i32
    %c0_i32_0 = arith.constant 0 : i32
    %c0_i32_1 = arith.constant 0 : i32
    %c0_i32_2 = arith.constant 0 : i32
    return %arg0, %c0_i32, %c0_i32_0, %c0_i32_1 : i32, i32, i32, i32
  }
}

</mosaic_0001>

<bundles_post_ra>
// kernel: _lambda_.3
= control target key start
LH: loop header
LB: loop body
LE: loop exit
PB: predicated region body
PF: predicated region fallthrough
CT: control target
= control target key end

     0   :  { %s1282_s6 = smov 0   ;;  %s1941_s0 = inlined_call_operand.vmem [shape: bf16[2,4,4,256], index: 0, kind: input, shape index: {}]   ;;  %s1942_s1 = inlined_call_operand.vmem [shape: f32[2,16,16,256], index: 1, kind: output, shape index: {}]  }
   0x1 LB: > { %s1158_s7 = sadd.s32 4294967295, %s1270_s6   ;;  %p1162_p0 = scmp.ge.s32.totalorder %s1270_s6, 1  ;;  %s1270_s6 = sphi %s1282_s6, %s11_s6  }
   0x2   : > { %p87_p1 = scmp.lt.s32.totalorder %s1270_s6, 3 }
   0x4   : > { %p88_p2 = pnand %p1162_p0, %p87_p1 }
   0x5   : > { %p107_p3 = scmp.lt.s32.totalorder (!%p88_p2), %s1158_s7, 1  ;;  %v150_v0 = vlaneseq (!%p88_p2)  ;;  %vm295_vm0 = vcmask (!%p88_p2), 1041408   ;;  %vm298_vm1 = vcmask (!%p88_p2), 1042432   ;;  %vm301_vm2 = vcmask (!%p88_p2), 1043456  }
   0x6   : > { %91 = sbr.rel (%p88_p2) target bundleno = 117 (0x75), region = 24  ;;  %vm304_vm3 = vcmask (!%p88_p2), 1044480   ;;  %vm307_vm4 = vcmask (!%p88_p2), 1045504   ;;  %vm294_vm5 = vcmask (!%p88_p2), 1040384   ;;  %vm310_vm6 = vcmask (!%p88_p2), 1046528  }
   0x7   : > { %v151_v1 = vshrl.u32 (!%p88_p2), %v150_v0, 7 }
   0x9   : > { %v1296_v3 = vsub.s32 (!%p88_p2), 0, %v151_v1  ;;  %v1298_v4 = vsub.s32 (!%p88_p2), 4, %v151_v1  ;;  %v1300_v5 = vsub.s32 (!%p88_p2), 3, %v151_v1  ;;  %v1302_v6 = vsub.s32 (!%p88_p2), 7, %v151_v1 }
   0xa   : > { %v1304_v9 = vsub.s32 (!%p88_p2), 1, %v151_v1  ;;  %v1306_v10 = vsub.s32 (!%p88_p2), 5, %v151_v1  ;;  %v1308_v11 = vsub.s32 (!%p88_p2), 2, %v151_v1  ;;  %v1310_v12 = vsub.s32 (!%p88_p2), 6, %v151_v1 }
   0xd   : > { %s1944_s7 = smov (!%p107_p3, %s1158_s7), 1 }
   0xe   : > { %s1245_s8 = sshll.u32 %s1944_s7, 4  ;;  %s1246_s12 = sshll.u32 %s1944_s7, 9 }
   0xf   : > { %s111_s11 = scalar_lea.vmem %s1941_s0, %s1245_s8  ;;  %s1379_s15 = scalar_lea.vmem %s1942_s1, %s1246_s12 }
  0x10   : > { %v1248_v2 = vld [vmem:[%s111_s11] sm:$0xff]   ;;  %v1255_v7 = vld [vmem:[%s111_s11 + $0x8] sm:$0xff]  }
  0x11   : > { %v1249_v8 = vunpack.c.l.bf16 %v1248_v2  ;;  %v1312_v13 = vunpack.c.h.bf16 %v1248_v2  ;;  %v1314_v14 = vunpack.c.l.bf16 %v1255_v7  ;;  %v1316_v15 = vunpack.c.h.bf16 %v1255_v7 }
  0x13   : > { %v125_v16 = vmul.f32 0.875, %v1249_v8  ;;  %v126_v17 = vmul.f32 0.125, %v1249_v8  ;;  %v132_v18 = vmul.f32 0.625, %v1249_v8  ;;  %v133_v19 = vmul.f32 0.375, %v1249_v8 }
  0x14   : > { %v153_v20 = vrot.slane %v1249_v8, %v1296_v3  ;;  %v157_v21 = vrot.slane %v1249_v8, %v1298_v4  ;;  %v1321_v22 = vrot.slane %v1249_v8, %v1300_v5  ;;  %v1324_v23 = vrot.slane %v1249_v8, %v1302_v6 }
  0x15   : > { %v1167_v24 = vrot.slane %v126_v17, 9  ;;  %v1168_v25 = vrot.slane %v133_v19, 9  ;;  %v1169_v26 = vrot.slane %v132_v18, 9  ;;  %v1170_v27 = vrot.slane %v125_v16, 9 }
  0x16   : > { %v1327_v28 = vmul.f32 0.875, %v1312_v13  ;;  %v1330_v29 = vmul.f32 0.125, %v1312_v13  ;;  %v1333_v30 = vmul.f32 0.625, %v1312_v13  ;;  %v335_v31 = vmul.f32 0.375, %v1312_v13 }
  0x17   : > { %v131_v32 = vadd.f32 %v1167_v24, %v125_v16  ;;  %v1336_v33 = vadd.f32 %v1168_v25, %v132_v18  ;;  %v1338_v34 = vadd.f32 %v1169_v26, %v133_v19  ;;  %v1340_v35 = vadd.f32 %v1170_v27, %v126_v17 }
  0x18   : > { %v1171_v36 = vrot.slane %v1330_v29, 9  ;;  %v1172_v37 = vrot.slane %v335_v31, 9  ;;  %v1173_v38 = vrot.slane %v1333_v30, 9  ;;  %v1174_v39 = vrot.slane %v1327_v28, 9 }
  0x19   : > { %v164_v40 = vrot.slane %v131_v32, %v1296_v3  ;;  %v175_v41 = vrot.slane %v1336_v33, %v1296_v3  ;;  %v186_v42 = vrot.slane %v1338_v34, %v1296_v3  ;;  %v197_v43 = vrot.slane %v1340_v35, %v1296_v3 }
  0x1a   : > { %v207_v44 = vrot.slane %v131_v32, %v1304_v9  ;;  %v217_v45 = vrot.slane %v1336_v33, %v1304_v9  ;;  %v168_v46 = vrot.slane %v131_v32, %v1298_v4  ;;  %v179_v47 = vrot.slane %v1336_v33, %v1298_v4 }
  0x1b   : > { %v296_v48 = vsel %vm295_vm0, %v153_v20, %v164_v40  ;;  %v190_v49 = vrot.slane %v1338_v34, %v1298_v4  ;;  %v201_v50 = vrot.slane %v1340_v35, %v1298_v4  ;;  %v211_v51 = vrot.slane %v131_v32, %v1306_v10 }
  0x1c   : > { %v299_v52 = vsel %vm298_vm1, %v296_v48, %v175_v41  ;;  %v221_v53 = vrot.slane %v1336_v33, %v1306_v10  ;;  %v297_v54 = vsel %vm295_vm0, %v157_v21, %v168_v46  ;;  %v227_v55 = vrot.slane %v1338_v34, %v1304_v9 }
  0x1d   : > { %v302_v56 = vsel %vm301_vm2, %v299_v52, %v186_v42  ;;  %v300_v57 = vsel %vm298_vm1, %v297_v54, %v179_v47  ;;  %v237_v58 = vrot.slane %v1340_v35, %v1304_v9  ;;  %v247_v59 = vrot.slane %v131_v32, %v1308_v11 }
  0x1e   : > { %v305_v60 = vsel %vm304_vm3, %v302_v56, %v197_v43  ;;  %v303_v61 = vsel %vm301_vm2, %v300_v57, %v190_v49  ;;  %v257_v62 = vrot.slane %v1336_v33, %v1308_v11  ;;  %v267_v63 = vrot.slane %v1338_v34, %v1308_v11 }
  0x1f   : > { %v308_v0 = vsel %vm307_vm4, %v305_v60, %v207_v44  ;;  %v306_v1 = vsel %vm304_vm3, %v303_v61, %v201_v50  ;;  %v277_v2 = vrot.slane %v1340_v35, %v1308_v11  ;;  %v313_v7 = vsel %vm294_vm5, %v227_v55, %v237_v58 }
  0x20   : > { %v1393_v8 = vsel %vm310_vm6, %v308_v0, %v217_v45  ;;  %v309_v16 = vsel %vm307_vm4, %v306_v1, %v211_v51  ;;  %v315_v17 = vsel %vm295_vm0, %v313_v7, %v247_v59  ;;  %v231_v18 = vrot.slane %v1338_v34, %v1306_v10 }
  0x21   : > { %912 = vst [vmem:[%s1379_s15] sm:$0xff] %v1393_v8  ;;  %1183 = vst [vmem:[%s1379_s15 + $0x20] sm:$0xff] %v1393_v8  ;;  %v1404_v19 = vsel %vm310_vm6, %v309_v16, %v221_v53  ;;  %v317_v20 = vsel %vm298_vm1, %v315_v17, %v257_v62  ;;  %v241_v21 = vrot.slane %v1340_v35, %v1306_v10  ;;  %v921_v50 = vmul.f32 0.875, %v1393_v8 }
  0x22   : > { %v251_v24 = vrot.slane %v131_v32, %v1310_v12  ;;  %913 = vst [vmem:[%s1379_s15 + $0x8] sm:$0xff] %v1404_v19  ;;  %1184 = vst [vmem:[%s1379_s15 + $0x28] sm:$0xff] %v1404_v19  ;;  %v319_v25 = vsel %vm301_vm2, %v317_v20, %v267_v63  ;;  %v261_v26 = vrot.slane %v1336_v33, %v1310_v12  ;;  %v922_v62 = vmul.f32 0.875, %v1404_v19 }
  0x23   : > { %v271_v27 = vrot.slane %v1338_v34, %v1310_v12  ;;  %v281_v40 = vrot.slane %v1340_v35, %v1310_v12  ;;  %v321_v41 = vsel %vm304_vm3, %v319_v25, %v277_v2  ;;  %v314_v32 = vsel %vm294_vm5, %v231_v18, %v241_v21 }
  0x24   : > { %v1424_v42 = vadd.f32 %v1171_v36, %v1327_v28  ;;  %v1427_v43 = vadd.f32 %v1172_v37, %v1333_v30  ;;  %v323_v33 = vsel %vm307_vm4, %v321_v41, %v1321_v22  ;;  %v316_v44 = vsel %vm295_vm0, %v314_v32, %v251_v24 }
  0x25   : > { %v1432_v45 = vadd.f32 %v1173_v38, %v335_v31  ;;  %v1435_v34 = vadd.f32 %v1174_v39, %v1330_v29  ;;  %v1439_v35 = vsel %vm310_vm6, %v323_v33, %v1321_v22  ;;  %v318_v28 = vsel %vm298_vm1, %v316_v44, %v261_v26 }
  0x26   : > { %v355_v30 = vrot.slane %v1312_v13, %v1296_v3  ;;  %v366_v36 = vrot.slane %v1424_v42, %v1296_v3  ;;  %914 = vst [vmem:[%s1379_s15 + $0x10] sm:$0xff] %v1439_v35  ;;  %1185 = vst [vmem:[%s1379_s15 + $0x30] sm:$0xff] %v1439_v35  ;;  %v320_v31 = vsel %vm301_vm2, %v318_v28, %v271_v27  ;;  %v923_v41 = vmul.f32 0.875, %v1439_v35 }
  0x27   : > { %v377_v29 = vrot.slane %v1427_v43, %v1296_v3  ;;  %v388_v22 = vrot.slane %v1432_v45, %v1296_v3  ;;  %v399_v37 = vrot.slane %v1435_v34, %v1296_v3  ;;  %v322_v38 = vsel %vm304_vm3, %v320_v31, %v281_v40 }
  0x28   : > { %v409_v39 = vrot.slane %v1424_v42, %v1304_v9  ;;  %v419_v46 = vrot.slane %v1427_v43, %v1304_v9  ;;  %v496_v47 = vsel %vm295_vm0, %v355_v30, %v366_v36  ;;  %v324_v48 = vsel %vm307_vm4, %v322_v38, %v1324_v23 }
  0x29   : > { %v498_v49 = vsel %vm298_vm1, %v496_v47, %v377_v29  ;;  %v359_v51 = vrot.slane %v1312_v13, %v1298_v4  ;;  %v1471_v52 = vsel %vm310_vm6, %v324_v48, %v1324_v23  ;;  %v370_v54 = vrot.slane %v1424_v42, %v1298_v4 }
  0x2a   : > { %v500_v53 = vsel %vm301_vm2, %v498_v49, %v388_v22  ;;  %v381_v55 = vrot.slane %v1427_v43, %v1298_v4  ;;  %915 = vst [vmem:[%s1379_s15 + $0x18] sm:$0xff] %v1471_v52  ;;  %1186 = vst [vmem:[%s1379_s15 + $0x38] sm:$0xff] %v1471_v52  ;;  %v392_v57 = vrot.slane %v1432_v45, %v1298_v4  ;;  %v924_v48 = vmul.f32 0.875, %v1471_v52 }
  0x2b   : > { %v502_v56 = vsel %vm304_vm3, %v500_v53, %v399_v37  ;;  %v403_v23 = vrot.slane %v1435_v34, %v1298_v4  ;;  %v413_v58 = vrot.slane %v1424_v42, %v1306_v10  ;;  %v423_v60 = vrot.slane %v1427_v43, %v1306_v10 }
  0x2c   : > { %v504_v59 = vsel %vm307_vm4, %v502_v56, %v409_v39  ;;  %v497_v61 = vsel %vm295_vm0, %v359_v51, %v370_v54  ;;  %v429_v1 = vrot.slane %v1432_v45, %v1304_v9  ;;  %v439_v2 = vrot.slane %v1435_v34, %v1304_v9 }
  0x2d   : > { %v1495_v63 = vsel %vm310_vm6, %v504_v59, %v419_v46  ;;  %v499_v0 = vsel %vm298_vm1, %v497_v61, %v381_v55  ;;  %v449_v17 = vrot.slane %v1424_v42, %v1308_v11  ;;  %v459_v18 = vrot.slane %v1427_v43, %v1308_v11 }
  0x2e   : > { %v1503_v7 = vmul.f32 0.125, %v1495_v63  ;;  %v501_v16 = vsel %vm301_vm2, %v499_v0, %v392_v57  ;;  %v469_v21 = vrot.slane %v1432_v45, %v1308_v11  ;;  %v479_v24 = vrot.slane %v1435_v34, %v1308_v11 }
  0x2f   : > { %v503_v20 = vsel %vm304_vm3, %v501_v16, %v403_v23  ;;  %v489_v25 = vrot.slane %v1312_v13, %v1300_v5  ;;  %v508_v40 = vsel %vm294_vm5, %v429_v1, %v439_v2  ;;  %v433_v44 = vrot.slane %v1432_v45, %v1306_v10 }
  0x30   : > { %v929_v26 = vadd.f32 %v1503_v7, %v921_v50  ;;  %v505_v27 = vsel %vm307_vm4, %v503_v20, %v413_v58  ;;  %v510_v33 = vsel %vm295_vm0, %v508_v40, %v449_v17  ;;  %v443_v28 = vrot.slane %v1435_v34, %v1306_v10 }
  0x31   : > { %v507_v32 = vsel %vm310_vm6, %v505_v27, %v423_v60  ;;  %v512_v36 = vsel %vm298_vm1, %v510_v33, %v459_v18  ;;  %v453_v31 = vrot.slane %v1424_v42, %v1310_v12  ;;  %v463_v29 = vrot.slane %v1427_v43, %v1310_v12 }
  0x32   : > { %1187 = vst [vmem:[%s1379_s15 + $0x40] sm:$0xff] %v929_v26  ;;  %v1528_v30 = vmul.f32 0.125, %v507_v32  ;;  %v514_v22 = vsel %vm301_vm2, %v512_v36, %v469_v21  ;;  %v473_v37 = vrot.slane %v1432_v45, %v1310_v12  ;;  %v483_v38 = vrot.slane %v1435_v34, %v1310_v12 }
  0x33   : > { %v493_v39 = vrot.slane %v1312_v13, %v1302_v6  ;;  %v516_v47 = vsel %vm304_vm3, %v514_v22, %v479_v24  ;;  %v509_v42 = vsel %vm294_vm5, %v433_v44, %v443_v28  ;;  %v938_v45 = vmul.f32 0.625, %v1393_v8 }
  0x34   : > { %v930_v46 = vadd.f32 %v1528_v30, %v922_v62  ;;  %v518_v43 = vsel %vm307_vm4, %v516_v47, %v489_v25  ;;  %v511_v49 = vsel %vm295_vm0, %v509_v42, %v453_v31  ;;  %v1550_v50 = vmul.f32 0.375, %v1495_v63 }
  0x35   : > { %v520_v13 = vsel %vm310_vm6, %v518_v43, %v489_v25  ;;  %v513_v34 = vsel %vm298_vm1, %v511_v49, %v463_v29  ;;  %v939_v51 = vmul.f32 0.625, %v1404_v19  ;;  %v1556_v53 = vmul.f32 0.375, %v507_v32 }
  0x36   : > { %1188 = vst [vmem:[%s1379_s15 + $0x48] sm:$0xff] %v930_v46  ;;  %v1558_v54 = vmul.f32 0.125, %v520_v13  ;;  %v515_v55 = vsel %vm301_vm2, %v513_v34, %v473_v37  ;;  %v946_v56 = vadd.f32 %v1550_v50, %v938_v45  ;;  %v940_v57 = vmul.f32 0.625, %v1439_v35 }
  0x37   : > { %v517_v23 = vsel %vm304_vm3, %v515_v55, %v483_v38  ;;  %v947_v58 = vadd.f32 %v1556_v53, %v939_v51  ;;  %v1565_v59 = vmul.f32 0.375, %v520_v13  ;;  %v941_v60 = vmul.f32 0.625, %v1471_v52 }
  0x38   : > { %v931_v61 = vadd.f32 %v1558_v54, %v923_v41  ;;  %v519_v62 = vsel %vm307_vm4, %v517_v23, %v493_v39  ;;  %1191 = vst [vmem:[%s1379_s15 + $0x60] sm:$0xff] %v946_v56  ;;  %v955_v0 = vmul.f32 0.375, %v1393_v8  ;;  %v1573_v1 = vmul.f32 0.625, %v1495_v63 }
  0x39   : > { %v521_v2 = vsel %vm310_vm6, %v519_v62, %v493_v39  ;;  %1192 = vst [vmem:[%s1379_s15 + $0x68] sm:$0xff] %v947_v58  ;;  %v948_v16 = vadd.f32 %v1565_v59, %v940_v57  ;;  %v956_v17 = vmul.f32 0.375, %v1404_v19  ;;  %v1579_v18 = vmul.f32 0.625, %v507_v32 }
  0x3a   : > { %1189 = vst [vmem:[%s1379_s15 + $0x50] sm:$0xff] %v931_v61  ;;  %v1582_v20 = vmul.f32 0.125, %v521_v2  ;;  %v1584_v21 = vmul.f32 0.375, %v521_v2  ;;  %v963_v24 = vadd.f32 %v1573_v1, %v955_v0  ;;  %v957_v25 = vmul.f32 0.375, %v1439_v35 }
  0x3b   : > { %1193 = vst [vmem:[%s1379_s15 + $0x70] sm:$0xff] %v948_v16  ;;  %v964_v26 = vadd.f32 %v1579_v18, %v956_v17  ;;  %v1590_v27 = vmul.f32 0.625, %v520_v13  ;;  %v958_v40 = vmul.f32 0.375, %v1471_v52  ;;  %v1593_v41 = vmul.f32 0.625, %v521_v2 }
  0x3c   : > { %v932_v33 = vadd.f32 %v1582_v20, %v924_v48  ;;  %v949_v44 = vadd.f32 %v1584_v21, %v941_v60  ;;  %1195 = vst [vmem:[%s1379_s15 + $0x80] sm:$0xff] %v963_v24  ;;  %v972_v28 = vmul.f32 0.125, %v1393_v8  ;;  %v1600_v36 = vmul.f32 0.875, %v1495_v63 }
  0x3d   : > { %1196 = vst [vmem:[%s1379_s15 + $0x88] sm:$0xff] %v964_v26  ;;  %v965_v31 = vadd.f32 %v1590_v27, %v957_v25  ;;  %v966_v29 = vadd.f32 %v1593_v41, %v958_v40  ;;  %v973_v22 = vmul.f32 0.125, %v1404_v19  ;;  %v1606_v37 = vmul.f32 0.875, %v507_v32 }
  0x3e   : > { %1190 = vst [vmem:[%s1379_s15 + $0x58] sm:$0xff] %v932_v33  ;;  %1194 = vst [vmem:[%s1379_s15 + $0x78] sm:$0xff] %v949_v44  ;;  %v980_v38 = vadd.f32 %v1600_v36, %v972_v28  ;;  %v974_v8 = vmul.f32 0.125, %v1439_v35  ;;  %v1612_v39 = vmul.f32 0.875, %v520_v13  ;;  %v975_v63 = vmul.f32 0.125, %v1471_v52 }
  0x3f   : > { %1197 = vst [vmem:[%s1379_s15 + $0x90] sm:$0xff] %v965_v31  ;;  %1198 = vst [vmem:[%s1379_s15 + $0x98] sm:$0xff] %v966_v29  ;;  %v981_v46 = vadd.f32 %v1606_v37, %v973_v22  ;;  %v1618_v47 = vmul.f32 0.875, %v521_v2  ;;  %v522_v19 = vmul.f32 0.875, %v1314_v14  ;;  %v523_v32 = vmul.f32 0.125, %v1314_v14 }
  0x40   : > { %1199 = vst [vmem:[%s1379_s15 + $0xa0] sm:$0xff] %v980_v38  ;;  %v982_v42 = vadd.f32 %v1612_v39, %v974_v8  ;;  %v529_v35 = vmul.f32 0.625, %v1314_v14  ;;  %v530_v48 = vmul.f32 0.375, %v1314_v14  ;;  %v550_v52 = vrot.slane %v1314_v14, %v1296_v3 }
  0x41   : > { %1200 = vst [vmem:[%s1379_s15 + $0xa8] sm:$0xff] %v981_v46  ;;  %v983_v43 = vadd.f32 %v1618_v47, %v975_v63  ;;  %v1175_v49 = vrot.slane %v523_v32, 9  ;;  %v1178_v45 = vrot.slane %v522_v19, 9  ;;  %v554_v13 = vrot.slane %v1314_v14, %v1298_v4 }
  0x42   : > { %1201 = vst [vmem:[%s1379_s15 + $0xb0] sm:$0xff] %v982_v42  ;;  %v1176_v34 = vrot.slane %v530_v48, 9  ;;  %v1177_v51 = vrot.slane %v529_v35, 9  ;;  %v684_v55 = vrot.slane %v1314_v14, %v1300_v5  ;;  %v1637_v56 = vrot.slane %v1314_v14, %v1302_v6 }
  0x43   : > { %1202 = vst [vmem:[%s1379_s15 + $0xb8] sm:$0xff] %v983_v43  ;;  %v528_v57 = vadd.f32 %v1175_v49, %v522_v19  ;;  %v1640_v23 = vadd.f32 %v1178_v45, %v523_v32  ;;  %v1643_v58 = vmul.f32 0.875, %v1316_v15  ;;  %v1646_v60 = vmul.f32 0.125, %v1316_v15 }
  0x44   : > { %v535_v61 = vadd.f32 %v1176_v34, %v529_v35  ;;  %v1648_v62 = vadd.f32 %v1177_v51, %v530_v48  ;;  %v1651_v0 = vmul.f32 0.625, %v1316_v15  ;;  %v1654_v2 = vmul.f32 0.375, %v1316_v15 }
  0x45   : > { %v561_v14 = vrot.slane %v528_v57, %v1296_v3  ;;  %v594_v16 = vrot.slane %v1640_v23, %v1296_v3  ;;  %v604_v17 = vrot.slane %v528_v57, %v1304_v9  ;;  %v565_v24 = vrot.slane %v528_v57, %v1298_v4 }
  0x46   : > { %v572_v25 = vrot.slane %v535_v61, %v1296_v3  ;;  %v583_v26 = vrot.slane %v1648_v62, %v1296_v3  ;;  %v614_v40 = vrot.slane %v535_v61, %v1304_v9  ;;  %v576_v33 = vrot.slane %v535_v61, %v1298_v4 }
  0x47   : > { %v691_v44 = vsel %vm295_vm0, %v550_v52, %v561_v14  ;;  %v587_v28 = vrot.slane %v1648_v62, %v1298_v4  ;;  %v598_v31 = vrot.slane %v1640_v23, %v1298_v4  ;;  %v608_v29 = vrot.slane %v528_v57, %v1306_v10 }
  0x48   : > { %v693_v22 = vsel %vm298_vm1, %v691_v44, %v572_v25  ;;  %v618_v38 = vrot.slane %v535_v61, %v1306_v10  ;;  %v692_v8 = vsel %vm295_vm0, %v554_v13, %v565_v24  ;;  %v624_v63 = vrot.slane %v1648_v62, %v1304_v9 }
  0x49   : > { %v695_v46 = vsel %vm301_vm2, %v693_v22, %v583_v26  ;;  %v694_v19 = vsel %vm298_vm1, %v692_v8, %v576_v33  ;;  %v634_v32 = vrot.slane %v1640_v23, %v1304_v9  ;;  %v644_v42 = vrot.slane %v528_v57, %v1308_v11 }
  0x4a   : > { %v697_v35 = vsel %vm304_vm3, %v695_v46, %v594_v16  ;;  %v696_v48 = vsel %vm301_vm2, %v694_v19, %v587_v28  ;;  %v654_v52 = vrot.slane %v535_v61, %v1308_v11  ;;  %v664_v43 = vrot.slane %v1648_v62, %v1308_v11 }
  0x4b   : > { %v699_v49 = vsel %vm307_vm4, %v697_v35, %v604_v17  ;;  %v698_v45 = vsel %vm304_vm3, %v696_v48, %v598_v31  ;;  %v674_v13 = vrot.slane %v1640_v23, %v1308_v11  ;;  %v703_v34 = vsel %vm294_vm5, %v624_v63, %v634_v32 }
  0x4c   : > { %v701_v51 = vsel %vm310_vm6, %v699_v49, %v614_v40  ;;  %v700_v14 = vsel %vm307_vm4, %v698_v45, %v608_v29  ;;  %v705_v16 = vsel %vm295_vm0, %v703_v34, %v644_v42  ;;  %v628_v24 = vrot.slane %v1648_v62, %v1306_v10 }
  0x4d   : > { %v1697_v25 = vmul.f32 0.125, %v701_v51  ;;  %v702_v17 = vsel %vm310_vm6, %v700_v14, %v618_v38  ;;  %v707_v26 = vsel %vm298_vm1, %v705_v16, %v654_v52  ;;  %v638_v33 = vrot.slane %v1640_v23, %v1306_v10 }
  0x4e   : > { %v1703_v44 = vmul.f32 0.125, %v702_v17  ;;  %v709_v40 = vsel %vm301_vm2, %v707_v26, %v664_v43  ;;  %v648_v28 = vrot.slane %v528_v57, %v1310_v12  ;;  %v658_v31 = vrot.slane %v535_v61, %v1310_v12 }
  0x4f   : > { %v993_v29 = vadd.f32 %v1697_v25, %v1600_v36  ;;  %v711_v22 = vsel %vm304_vm3, %v709_v40, %v674_v13  ;;  %v668_v38 = vrot.slane %v1648_v62, %v1310_v12  ;;  %v678_v8 = vrot.slane %v1640_v23, %v1310_v12 }
  0x50   : > { %v994_v63 = vadd.f32 %v1703_v44, %v1606_v37  ;;  %v713_v46 = vsel %vm307_vm4, %v711_v22, %v684_v55  ;;  %v704_v57 = vsel %vm294_vm5, %v628_v24, %v638_v33  ;;  %v1719_v19 = vmul.f32 0.375, %v701_v51 }
  0x51   : > { %1203 = vst [vmem:[%s1379_s15 + $0xc0] sm:$0xff] %v993_v29  ;;  %v715_v36 = vsel %vm310_vm6, %v713_v46, %v684_v55  ;;  %v706_v61 = vsel %vm295_vm0, %v704_v57, %v648_v28  ;;  %v1724_v32 = vmul.f32 0.375, %v702_v17  ;;  %v1726_v62 = vmul.f32 0.625, %v701_v51 }
  0x52   : > { %1204 = vst [vmem:[%s1379_s15 + $0xc8] sm:$0xff] %v994_v63  ;;  %v1729_v37 = vmul.f32 0.125, %v715_v36  ;;  %v708_v23 = vsel %vm298_vm1, %v706_v61, %v658_v31  ;;  %v1006_v42 = vadd.f32 %v1719_v19, %v1573_v1  ;;  %v1734_v35 = vmul.f32 0.375, %v715_v36 }
  0x53   : > { %v710_v55 = vsel %vm301_vm2, %v708_v23, %v668_v38  ;;  %v1007_v48 = vadd.f32 %v1724_v32, %v1579_v18  ;;  %v1019_v52 = vadd.f32 %v1726_v62, %v1550_v50  ;;  %v1741_v43 = vmul.f32 0.625, %v702_v17 }
  0x54   : > { %v995_v49 = vadd.f32 %v1729_v37, %v1612_v39  ;;  %v712_v45 = vsel %vm304_vm3, %v710_v55, %v678_v8  ;;  %1207 = vst [vmem:[%s1379_s15 + $0xe0] sm:$0xff] %v1006_v42  ;;  %v1008_v1 = vadd.f32 %v1734_v35, %v1590_v27  ;;  %v1749_v13 = vmul.f32 0.625, %v715_v36 }
  0x55   : > { %v714_v18 = vsel %vm307_vm4, %v712_v45, %v1637_v56  ;;  %1208 = vst [vmem:[%s1379_s15 + $0xe8] sm:$0xff] %v1007_v48  ;;  %1211 = vst [vmem:[%s1379_s15 + $0x100] sm:$0xff] %v1019_v52  ;;  %v1020_v50 = vadd.f32 %v1741_v43, %v1556_v53  ;;  %v1757_v34 = vmul.f32 0.875, %v701_v51  ;;  %v1759_v39 = vmul.f32 0.875, %v702_v17 }
  0x56   : > { %1205 = vst [vmem:[%s1379_s15 + $0xd0] sm:$0xff] %v995_v49  ;;  %v716_v27 = vsel %vm310_vm6, %v714_v18, %v1637_v56  ;;  %1209 = vst [vmem:[%s1379_s15 + $0xf0] sm:$0xff] %v1008_v1  ;;  %v1021_v14 = vadd.f32 %v1749_v13, %v1565_v59  ;;  %v1767_v16 = vmul.f32 0.875, %v715_v36  ;;  %v1179_v24 = vrot.slane %v1646_v60, 9 }
  0x57   : > { %v1770_v26 = vmul.f32 0.125, %v716_v27  ;;  %v1772_v53 = vmul.f32 0.375, %v716_v27  ;;  %1212 = vst [vmem:[%s1379_s15 + $0x108] sm:$0xff] %v1020_v50  ;;  %v1775_v51 = vmul.f32 0.625, %v716_v27  ;;  %v1032_v56 = vadd.f32 %v1757_v34, %v1503_v7 }
  0x58   : > { %1213 = vst [vmem:[%s1379_s15 + $0x110] sm:$0xff] %v1021_v14  ;;  %v1033_v59 = vadd.f32 %v1759_v39, %v1528_v30  ;;  %v1034_v17 = vadd.f32 %v1767_v16, %v1558_v54  ;;  %v1784_v33 = vmul.f32 0.875, %v716_v27  ;;  %v1787_v40 = vadd.f32 %v1179_v24, %v1643_v58 }
  0x59   : > { %v996_v28 = vadd.f32 %v1770_v26, %v1618_v47  ;;  %v1009_v7 = vadd.f32 %v1772_v53, %v1593_v41  ;;  %v1022_v31 = vadd.f32 %v1775_v51, %v1584_v21  ;;  %1215 = vst [vmem:[%s1379_s15 + $0x120] sm:$0xff] %v1032_v56  ;;  %v1180_v30 = vrot.slane %v1654_v2, 9 }
  0x5a   : > { %1216 = vst [vmem:[%s1379_s15 + $0x128] sm:$0xff] %v1033_v59  ;;  %1217 = vst [vmem:[%s1379_s15 + $0x130] sm:$0xff] %v1034_v17  ;;  %v1035_v54 = vadd.f32 %v1784_v33, %v1582_v20  ;;  %v1181_v29 = vrot.slane %v1651_v0, 9  ;;  %v1182_v22 = vrot.slane %v1643_v58, 9  ;;  %v745_v47 = vrot.slane %v1316_v15, %v1296_v3 }
  0x5b   : > { %1206 = vst [vmem:[%s1379_s15 + $0xd8] sm:$0xff] %v996_v28  ;;  %1210 = vst [vmem:[%s1379_s15 + $0xf8] sm:$0xff] %v1009_v7  ;;  %v1809_v21 = vadd.f32 %v1180_v30, %v1651_v0  ;;  %v756_v41 = vrot.slane %v1787_v40, %v1296_v3  ;;  %v799_v38 = vrot.slane %v1787_v40, %v1304_v9 }
  0x5c   : > { %1214 = vst [vmem:[%s1379_s15 + $0x118] sm:$0xff] %v1022_v31  ;;  %v749_v20 = vrot.slane %v1316_v15, %v1298_v4  ;;  %1218 = vst [vmem:[%s1379_s15 + $0x138] sm:$0xff] %v1035_v54  ;;  %v1819_v58 = vadd.f32 %v1181_v29, %v1654_v2  ;;  %v1822_v8 = vadd.f32 %v1182_v22, %v1646_v60 }
  0x5d   : > { %v760_v0 = vrot.slane %v1787_v40, %v1298_v4  ;;  %v803_v63 = vrot.slane %v1787_v40, %v1306_v10  ;;  %v767_v46 = vrot.slane %v1809_v21, %v1296_v3  ;;  %v809_v57 = vrot.slane %v1809_v21, %v1304_v9 }
  0x5e   : > { %v886_v36 = vsel %vm295_vm0, %v745_v47, %v756_v41  ;;  %v771_v2 = vrot.slane %v1809_v21, %v1298_v4  ;;  %v778_v60 = vrot.slane %v1819_v58, %v1296_v3  ;;  %v789_v61 = vrot.slane %v1822_v8, %v1296_v3 }
  0x5f   : > { %v782_v23 = vrot.slane %v1819_v58, %v1298_v4  ;;  %v793_v42 = vrot.slane %v1822_v8, %v1298_v4  ;;  %v888_v55 = vsel %vm298_vm1, %v886_v36, %v767_v46  ;;  %v813_v48 = vrot.slane %v1809_v21, %v1306_v10 }
  0x60   : > { %v887_v52 = vsel %vm295_vm0, %v749_v20, %v760_v0  ;;  %v819_v49 = vrot.slane %v1819_v58, %v1304_v9  ;;  %v890_v45 = vsel %vm301_vm2, %v888_v55, %v778_v60  ;;  %v829_v1 = vrot.slane %v1822_v8, %v1304_v9 }
  0x61   : > { %v889_v3 = vsel %vm298_vm1, %v887_v52, %v771_v2  ;;  %v839_v4 = vrot.slane %v1787_v40, %v1308_v11  ;;  %v892_v18 = vsel %vm304_vm3, %v890_v45, %v789_v61  ;;  %v849_v27 = vrot.slane %v1809_v21, %v1308_v11 }
  0x62   : > { %v891_v50 = vsel %vm301_vm2, %v889_v3, %v782_v23  ;;  %v859_v14 = vrot.slane %v1819_v58, %v1308_v11  ;;  %v894_v24 = vsel %vm307_vm4, %v892_v18, %v799_v38  ;;  %v869_v56 = vrot.slane %v1822_v8, %v1308_v11 }
  0x63   : > { %v893_v9 = vsel %vm304_vm3, %v891_v50, %v793_v42  ;;  %v879_v59 = vrot.slane %v1316_v15, %v1300_v5  ;;  %v896_v17 = vsel %vm310_vm6, %v894_v24, %v809_v57  ;;  %v898_v7 = vsel %vm294_vm5, %v819_v49, %v829_v1 }
  0x64   : > { %v895_v28 = vsel %vm307_vm4, %v893_v9, %v803_v63  ;;  %v823_v31 = vrot.slane %v1819_v58, %v1306_v10  ;;  %v1041_v30 = vmul.f32 0.125, %v896_v17  ;;  %1235 = vst [vmem:[%s1379_s15 + $0x1c0] sm:$0xff] %v896_v17  ;;  %1239 = vst [vmem:[%s1379_s15 + $0x1e0] sm:$0xff] %v896_v17  ;;  %v900_v29 = vsel %vm295_vm0, %v898_v7, %v839_v4 }
  0x65   : > { %v897_v54 = vsel %vm310_vm6, %v895_v28, %v813_v48  ;;  %v833_v5 = vrot.slane %v1822_v8, %v1306_v10  ;;  %v902_v22 = vsel %vm298_vm1, %v900_v29, %v849_v27  ;;  %v843_v47 = vrot.slane %v1787_v40, %v1310_v12 }
  0x66   : > { %v1042_v11 = vmul.f32 0.125, %v897_v54  ;;  %1236 = vst [vmem:[%s1379_s15 + $0x1c8] sm:$0xff] %v897_v54  ;;  %1240 = vst [vmem:[%s1379_s15 + $0x1e8] sm:$0xff] %v897_v54  ;;  %v853_v41 = vrot.slane %v1809_v21, %v1310_v12  ;;  %v1045_v38 = vadd.f32 %v1041_v30, %v1757_v34  ;;  %v904_v20 = vsel %vm301_vm2, %v902_v22, %v859_v14 }
  0x67   : > { %v863_v0 = vrot.slane %v1819_v58, %v1310_v12  ;;  %v873_v10 = vrot.slane %v1822_v8, %v1310_v12  ;;  %v906_v46 = vsel %vm304_vm3, %v904_v20, %v869_v56  ;;  %v883_v40 = vrot.slane %v1316_v15, %v1302_v6 }
  0x68   : > { %v1046_v63 = vadd.f32 %v1042_v11, %v1759_v39  ;;  %v899_v21 = vsel %vm294_vm5, %v823_v31, %v833_v5  ;;  %1219 = vst [vmem:[%s1379_s15 + $0x140] sm:$0xff] %v1045_v38  ;;  %v908_v34 = vsel %vm307_vm4, %v906_v46, %v879_v59  ;;  %v1054_v58 = vmul.f32 0.375, %v896_v17 }
  0x69   : > { %v901_v57 = vsel %vm295_vm0, %v899_v21, %v843_v47  ;;  %v1055_v36 = vmul.f32 0.375, %v897_v54  ;;  %v910_v12 = vsel %vm310_vm6, %v908_v34, %v879_v59  ;;  %v1067_v8 = vmul.f32 0.625, %v896_v17 }
  0x6a   : > { %1220 = vst [vmem:[%s1379_s15 + $0x148] sm:$0xff] %v1046_v63  ;;  %v903_v39 = vsel %vm298_vm1, %v901_v57, %v853_v41  ;;  %v1068_v2 = vmul.f32 0.625, %v897_v54  ;;  %v1043_v60 = vmul.f32 0.125, %v910_v12  ;;  %1237 = vst [vmem:[%s1379_s15 + $0x1d0] sm:$0xff] %v910_v12  ;;  %v1058_v15 = vadd.f32 %v1054_v58, %v1726_v62 }
  0x6b   : > { %1241 = vst [vmem:[%s1379_s15 + $0x1f0] sm:$0xff] %v910_v12  ;;  %v905_v6 = vsel %vm301_vm2, %v903_v39, %v863_v0  ;;  %v1059_v61 = vadd.f32 %v1055_v36, %v1741_v43  ;;  %v1056_v42 = vmul.f32 0.375, %v910_v12  ;;  %v1071_v55 = vadd.f32 %v1067_v8, %v1719_v19 }
  0x6c   : > { %v907_v23 = vsel %vm304_vm3, %v905_v6, %v873_v10  ;;  %v1072_v48 = vadd.f32 %v1068_v2, %v1724_v32  ;;  %v1047_v52 = vadd.f32 %v1043_v60, %v1767_v16  ;;  %1223 = vst [vmem:[%s1379_s15 + $0x160] sm:$0xff] %v1058_v15  ;;  %v1069_v62 = vmul.f32 0.625, %v910_v12 }
  0x6d   : > { %v909_v49 = vsel %vm307_vm4, %v907_v23, %v883_v40  ;;  %1224 = vst [vmem:[%s1379_s15 + $0x168] sm:$0xff] %v1059_v61  ;;  %v1080_v45 = vmul.f32 0.875, %v896_v17  ;;  %v1060_v3 = vadd.f32 %v1056_v42, %v1749_v13  ;;  %1227 = vst [vmem:[%s1379_s15 + $0x180] sm:$0xff] %v1071_v55  ;;  %v1081_v19 = vmul.f32 0.875, %v897_v54 }
  0x6e   : > { %v911_v43 = vsel %vm310_vm6, %v909_v49, %v883_v40  ;;  %1228 = vst [vmem:[%s1379_s15 + $0x188] sm:$0xff] %v1072_v48  ;;  %v1082_v1 = vmul.f32 0.875, %v910_v12  ;;  %1221 = vst [vmem:[%s1379_s15 + $0x150] sm:$0xff] %v1047_v52  ;;  %v1073_v4 = vadd.f32 %v1069_v62, %v1734_v35 }
  0x6f   : > { %v1044_v32 = vmul.f32 0.125, %v911_v43  ;;  %1238 = vst [vmem:[%s1379_s15 + $0x1d8] sm:$0xff] %v911_v43  ;;  %1242 = vst [vmem:[%s1379_s15 + $0x1f8] sm:$0xff] %v911_v43  ;;  %v1057_v16 = vmul.f32 0.375, %v911_v43  ;;  %v1070_v18 = vmul.f32 0.625, %v911_v43  ;;  %v1084_v13 = vadd.f32 %v1080_v45, %v1697_v25 }
  0x70   : > { %1225 = vst [vmem:[%s1379_s15 + $0x170] sm:$0xff] %v1060_v3  ;;  %v1085_v50 = vadd.f32 %v1081_v19, %v1703_v44  ;;  %v1086_v27 = vadd.f32 %v1082_v1, %v1729_v37  ;;  %v1083_v14 = vmul.f32 0.875, %v911_v43  ;;  %1229 = vst [vmem:[%s1379_s15 + $0x190] sm:$0xff] %v1073_v4 }
  0x71   : > { %v1048_v24 = vadd.f32 %v1044_v32, %v1784_v33  ;;  %v1061_v9 = vadd.f32 %v1057_v16, %v1775_v51  ;;  %v1074_v56 = vadd.f32 %v1070_v18, %v1772_v53  ;;  %1231 = vst [vmem:[%s1379_s15 + $0x1a0] sm:$0xff] %v1084_v13 }
  0x72   : > { %1232 = vst [vmem:[%s1379_s15 + $0x1a8] sm:$0xff] %v1085_v50  ;;  %1233 = vst [vmem:[%s1379_s15 + $0x1b0] sm:$0xff] %v1086_v27  ;;  %v1087_v35 = vadd.f32 %v1083_v14, %v1770_v26 }
  0x73   : > { %1222 = vst [vmem:[%s1379_s15 + $0x158] sm:$0xff] %v1048_v24  ;;  %1226 = vst [vmem:[%s1379_s15 + $0x178] sm:$0xff] %v1061_v9 }
  0x74   : > { %1230 = vst [vmem:[%s1379_s15 + $0x198] sm:$0xff] %v1074_v56  ;;  %1234 = vst [vmem:[%s1379_s15 + $0x1b8] sm:$0xff] %v1087_v35 }
  0x75 PF: > { %s11_s6 = sadd.s32 1, %s1270_s6  }
  0x76   : > { %p8_p4 = scmp.ge.s32.totalorder %s11_s6, 4  }
  0x78   :  { %10 = sbr.rel (!%p8_p4) target bundleno = 1 (0x1), region = 69 }

// kernel: _lambda_.2
= control target key start
LH: loop header
LB: loop body
LE: loop exit
PB: predicated region body
PF: predicated region fallthrough
CT: control target
= control target key end

     0   :  { %s2334_s18 = smov 0   ;;  %s2924_s0 = inlined_call_operand.vmem [shape: bf16[2,6,6,128], index: 0, kind: input, shape index: {}]   ;;  %s2925_s1 = inlined_call_operand.vmem [shape: bf16[1152,128], index: 1, kind: input, shape index: {}]   ;;  %s2926_s2 = inlined_call_operand.vmem [shape: f32[1,128], index: 2, kind: input, shape index: {}]   ;;  %s2927_s3 = inlined_call_operand.vmem [shape: bf16[128,256], index: 3, kind: input, shape index: {}]   ;;  %s2928_s4 = inlined_call_operand.vmem [shape: f32[1,256], index: 4, kind: input, shape index: {}]   ;;  %s2929_s5 = inlined_call_operand.vmem [shape: bf16[2,4,4,256], index: 5, kind: output, shape index: {}]  }
   0x1 LB: > { %s1799_s19 = sadd.s32 4294967295, %s2298_s18   ;;  %p1803_p0 = scmp.ge.s32.totalorder %s2298_s18, 1  ;;  %s2298_s18 = sphi %s2334_s18, %s15_s18  }
   0x2   : > { %p187_p1 = scmp.lt.s32.totalorder %s2298_s18, 3 }
   0x4   : > { %p188_p2 = pnand %p1803_p0, %p187_p1 }
   0x5   : > { %v2191_v0 = vld [vmem:[%s2925_s1 + $0x40] sm:$0xff] (!%p188_p2)   ;;  %v2300_v1 = vmov (!%p188_p2), 0.0   ;;  %v2193_v3 = vld [vmem:[%s2925_s1 + $0x48] sm:$0xff] (!%p188_p2)   ;;  %vm2301_vm0 = vmmov (!%p188_p2), 0   ;;  %p215_p3 = scmp.lt.s32.totalorder (!%p188_p2), %s1799_s19, 1  ;;  %v2195_v5 = vld [vmem:[%s2925_s1 + $0x50] sm:$0xff] (!%p188_p2)   ;;  %v255_v10 = vlaneseq (!%p188_p2) }
   0x6   : > { %191 = sbr.rel (%p188_p2) target bundleno = 615 (0x267), region = 40  ;;  %1998 = vmatprep.subr.bf16.mxu0 (!%p188_p2), %v2300_v1  ;;  %2018 = vmatprep.subr.bf16.mxu1 (!%p188_p2), %v2300_v1  ;;  %v2192_v2 = vld [vmem:[%s2925_s1] sm:$0xff] (!%p188_p2)   ;;  %v2194_v4 = vld [vmem:[%s2925_s1 + $0x8] sm:$0xff] (!%p188_p2)   ;;  %v2196_v6 = vld [vmem:[%s2925_s1 + $0x10] sm:$0xff] (!%p188_p2)   ;;  %v2302_v15 = vmov (!%p188_p2), 1983009808  }
   0x7   : > { %1999 = vmatpush3.bf16.msra.mxu0 (!%p188_p2), %v2191_v0  ;;  %2014 = vmatprep.mubr.msk.bf16.mxu0 (!%p188_p2), %vm2301_vm0, %v2300_v1  ;;  %v2197_v7 = vld [vmem:[%s2925_s1 + $0x58] sm:$0xff] (!%p188_p2)   ;;  %v2199_v9 = vld [vmem:[%s2925_s1 + $0x60] sm:$0xff] (!%p188_p2)   ;;  %v2201_v12 = vld [vmem:[%s2925_s1 + $0x68] sm:$0xff] (!%p188_p2)   ;;  %v253_v16 = vunpack.c.l.s4 (!%p188_p2), %v2302_v15  ;;  %v2401_v17 = vshrl.u32 (!%p188_p2), %v255_v10, 7  ;;  %vm284_vm1 = vsmask.f32 (!%p188_p2), 1280 }
   0x8   : > { %2019 = vmatpush3.bf16.msra.mxu1 (!%p188_p2), %v2192_v2  ;;  %2000 = vmatprep.subr.bf16.mxu0 (!%p188_p2), %v2300_v1  ;;  %v2198_v8 = vld [vmem:[%s2925_s1 + $0x18] sm:$0xff] (!%p188_p2)   ;;  %v2200_v11 = vld [vmem:[%s2925_s1 + $0x20] sm:$0xff] (!%p188_p2)   ;;  %v2202_v13 = vld [vmem:[%s2925_s1 + $0x28] sm:$0xff] (!%p188_p2)   ;;  %vm285_vm2 = vsmask.f32 (!%p188_p2), 3336  ;;  %vm577_vm8 = vcmask (!%p188_p2), 1040384  }
   0x9   : > { %2020 = vmatprep.subr.bf16.mxu1 (!%p188_p2), %v2300_v1  ;;  %2034 = vmatprep.mubr.msk.bf16.mxu1 (!%p188_p2), %vm2301_vm0, %v2300_v1  ;;  %v254_v21 = vunpack.c.0.s8 (!%p188_p2), %v253_v16  ;;  %v2203_v22 = vld [vmem:[%s2925_s1 + $0x70] sm:$0xff] (!%p188_p2)   ;;  %vm287_vm3 = vsmask.f32 (!%p188_p2), 5392  ;;  %v2205_v27 = vld [vmem:[%s2925_s1 + $0x78] sm:$0xff] (!%p188_p2)   ;;  %vm289_vm4 = vsmask.f32 (!%p188_p2), 7448  ;;  %vm286_vm5 = vmor (!%p188_p2), %vm284_vm1, %vm285_vm2 }
   0xa   : > { %v2204_v23 = vld [vmem:[%s2925_s1 + $0x30] sm:$0xff] (!%p188_p2)   ;;  %v2206_v33 = vld [vmem:[%s2925_s1 + $0x38] sm:$0xff] (!%p188_p2)   ;;  %vm2491_vm6 = vmor (!%p188_p2), %vm286_vm5, %vm287_vm3  ;;  %vm578_vm9 = vcmask (!%p188_p2), 1042434   ;;  %vm580_vm11 = vcmask (!%p188_p2), 1044484   ;;  %vm582_vm12 = vcmask (!%p188_p2), 1046534  }
   0xb   : > { %2001 = vmatpush3.bf16.msra.mxu0 (!%p188_p2), %v2193_v3  ;;  %v2424_v26 = vsub.s32 (!%p188_p2), %v254_v21, %v2401_v17  ;;  %vm2501_vm7 = vmor (!%p188_p2), %vm2491_vm6, %vm289_vm4  ;;  %v2209_v49 = vld [vmem:[%s2925_s1 + $0x80] sm:$0xff] (!%p188_p2)   ;;  %v2238_v62 = vld [vmem:[%s2925_s1 + $0x168] sm:$0xff] (!%p188_p2)  }
   0xc   : > { %2021 = vmatpush3.bf16.msra.mxu1 (!%p188_p2), %v2194_v4  ;;  %2002 = vmatprep.subr.bf16.mxu0 (!%p188_p2), %v2300_v1  ;;  %vm579_vm10 = vmor (!%p188_p2), %vm577_vm8, %vm578_vm9 }
   0xd   : > { %s2937_s19 = smov (!%p215_p3, %s1799_s19), 1  ;;  %2022 = vmatprep.subr.bf16.mxu1 %v2300_v1  ;;  %vm581_vm13 = vmor %vm579_vm10, %vm580_vm11 }
   0xe   : > { %s2178_s11 = smul.u32 24, %s2937_s19  ;;  %vm2602_vm14 = vmor %vm581_vm13, %vm582_vm12  ;;  %s1916_s22 = sshll.u32 %s2937_s19, 4 }
   0xf   : > { %2003 = vmatpush3.bf16.msra.mxu0 %v2195_v5  ;;  %s224_s25 = scalar_lea.vmem %s2929_s5, %s1916_s22 }
  0x10   : > { %2023 = vmatpush3.bf16.msra.mxu1 %v2196_v6  ;;  %2004 = vmatprep.subr.bf16.mxu0 %v2300_v1  ;;  %s2391_s20 = scalar_lea.vmem %s2924_s0, %s2178_s11 }
  0x11   : > { %2024 = vmatprep.subr.bf16.mxu1 %v2300_v1  ;;  %v226_v14 = vld [vmem:[%s2391_s20] sm:$0x7]  ;;  %v2405_v18 = vld [vmem:[%s2391_s20 + $0x4] sm:$0x7]  ;;  %v2409_v19 = vld [vmem:[%s2391_s20 + $0x8] sm:$0x7] }
  0x12   : > { %v2412_v20 = vld [vmem:[%s2391_s20 + $0xc] sm:$0x7]  ;;  %v470_v24 = vcombine.low %v226_v14, %v2405_v18  ;;  %v2432_v28 = vld [vmem:[%s2391_s20 + $0x10] sm:$0x7]  ;;  %v2435_v29 = vrot.slane %v226_v14, %v2424_v26  ;;  %v2439_v30 = vrot.slane %v2405_v18, %v2424_v26  ;;  %v2443_v31 = vrot.slane %v2409_v19, %v2424_v26 }
  0x13   : > { %2005 = vmatpush3.bf16.msra.mxu0 %v2197_v7  ;;  %v471_v25 = vcombine.low %v2409_v19, %v2412_v20  ;;  %v2447_v32 = vrot.slane %v2412_v20, %v2424_v26  ;;  %v2454_v34 = vrot.slane %v2432_v28, %v2424_v26 }
  0x14   : > { %2025 = vmatpush3.bf16.msra.mxu1 %v2198_v8  ;;  %2006 = vmatprep.subr.bf16.mxu0 %v2300_v1  ;;  %v2457_v35 = vrot.slane %v470_v24, %v2424_v26  ;;  %v2464_v37 = vcombine.high %v2435_v29, %v2435_v29  ;;  %v2468_v38 = vcombine.high %v2439_v30, %v2439_v30  ;;  %v292_v41 = vshrl.u32 %v2435_v29, 16 }
  0x15   : > { %2026 = vmatprep.subr.bf16.mxu1 %v2300_v1  ;;  %v2460_v36 = vrot.slane %v471_v25, %v2424_v26  ;;  %v2472_v39 = vcombine.high %v2443_v31, %v2443_v31  ;;  %v2476_v40 = vcombine.high %v2447_v32, %v2447_v32  ;;  %v295_v42 = vshll.u32 %v2435_v29, 16 }
  0x16   : > { %v306_v43 = vshrl.u32 %v2439_v30, 16  ;;  %v309_v44 = vshll.u32 %v2439_v30, 16  ;;  %v301_v45 = vshll.u32 %v2464_v37, 16  ;;  %v315_v46 = vshll.u32 %v2468_v38, 16 }
  0x17   : > { %2007 = vmatpush3.bf16.msra.mxu0 %v2199_v9  ;;  %v320_v47 = vshrl.u32 %v2443_v31, 16  ;;  %v323_v48 = vshll.u32 %v2443_v31, 16  ;;  %v294_v50 = vrot.slane %v292_v41, 6  ;;  %v297_v51 = vrot.slane %v295_v42, 7 }
  0x18   : > { %2027 = vmatpush3.bf16.msra.mxu1 %v2200_v11  ;;  %2008 = vmatprep.subr.bf16.mxu0 %v2300_v1  ;;  %v308_v52 = vrot.slane %v306_v43, 6  ;;  %v311_v53 = vrot.slane %v309_v44, 7  ;;  %v303_v54 = vrot.slane %v301_v45, 7  ;;  %v317_v55 = vrot.slane %v315_v46, 7  ;;  %v2210_v11 = vld [vmem:[%s2925_s1 + $0xc0] sm:$0xff]   ;;  %v2212_v46 = vld [vmem:[%s2925_s1 + $0xc8] sm:$0xff]  }
  0x19   : > { %2028 = vmatprep.subr.bf16.mxu1 %v2300_v1  ;;  %v322_v56 = vrot.slane %v320_v47, 6  ;;  %v325_v57 = vrot.slane %v323_v48, 7  ;;  %v298_v58 = vor.u32 %v297_v51, %v294_v50  ;;  %v329_v60 = vshll.u32 %v2472_v39, 16 }
  0x1a   : > { %v312_v59 = vor.u32 %v311_v53, %v308_v52  ;;  %v334_v61 = vshrl.u32 %v2447_v32, 16  ;;  %v337_v0 = vshll.u32 %v2447_v32, 16  ;;  %v343_v2 = vshll.u32 %v2476_v40, 16  ;;  %v2214_v53 = vld [vmem:[%s2925_s1 + $0xd0] sm:$0xff]  }
  0x1b   : > { %2009 = vmatpush3.bf16.msra.mxu0 %v2201_v12  ;;  %v326_v63 = vor.u32 %v325_v57, %v322_v56  ;;  %v2509_v3 = vcombine.high %v2454_v34, %v2454_v34  ;;  %v299_v4 = vrot.slane %v298_v58, 2  ;;  %v331_v6 = vrot.slane %v329_v60, 7  ;;  %v2211_v56 = vld [vmem:[%s2925_s1 + $0x88] sm:$0xff]   ;;  %v2216_v57 = vld [vmem:[%s2925_s1 + $0xd8] sm:$0xff]   ;;  %v2218_v60 = vld [vmem:[%s2925_s1 + $0xe0] sm:$0xff]  }
  0x1c   : > { %2029 = vmatpush3.bf16.msra.mxu1 %v2202_v13  ;;  %2010 = vmatprep.subr.bf16.mxu0 %v2300_v1  ;;  %v313_v5 = vrot.slane %v312_v59, 2  ;;  %v336_v7 = vrot.slane %v334_v61, 6  ;;  %v339_v9 = vrot.slane %v337_v0, 7  ;;  %v860_v10 = vshrl.u32 %v2454_v34, 16  ;;  %v2213_v59 = vld [vmem:[%s2925_s1 + $0x90] sm:$0xff]   ;;  %v2215_v61 = vld [vmem:[%s2925_s1 + $0x98] sm:$0xff]  }
  0x1d   : > { %2030 = vmatprep.subr.bf16.mxu1 %v2300_v1  ;;  %v327_v8 = vrot.slane %v326_v63, 2  ;;  %v304_v12 = vsel %vm2501_vm7, %v299_v4, %v303_v54  ;;  %v863_v14 = vshll.u32 %v2454_v34, 16  ;;  %v869_v15 = vshll.u32 %v2509_v3, 16  ;;  %v2220_v63 = vld [vmem:[%s2925_s1 + $0xe8] sm:$0xff]   ;;  %v2217_v4 = vld [vmem:[%s2925_s1 + $0xa0] sm:$0xff]  }
  0x1e   : > { %v318_v13 = vsel %vm2501_vm7, %v313_v5, %v317_v55  ;;  %v340_v21 = vor.u32 %v339_v9, %v336_v7  ;;  %v1823_v0 = vrot.slane %v2435_v29, 9  ;;  %v2222_v5 = vld [vmem:[%s2925_s1 + $0xf0] sm:$0xff]   ;;  %v590_v7 = vrot.slane %v2468_v38, 7 }
  0x1f   : > { %2011 = vmatpush3.bf16.msra.mxu0 %v2203_v22  ;;  %v332_v16 = vsel %vm2501_vm7, %v327_v8, %v331_v6  ;;  %v345_v22 = vrot.slane %v343_v2, 7  ;;  %v363_v24 = vcombine.low %v304_v12, %v318_v13  ;;  %v865_v25 = vrot.slane %v863_v14, 7  ;;  %v2221_v12 = vld [vmem:[%s2925_s1 + $0xb0] sm:$0xff]  }
  0x20   : > { %2031 = vmatpush3.bf16.msra.mxu1 %v2204_v23  ;;  %2012 = vmatprep.subr.bf16.mxu0 %v2300_v1  ;;  %v862_v23 = vrot.slane %v860_v10, 6  ;;  %v341_v41 = vrot.slane %v340_v21, 2  ;;  %v871_v42 = vrot.slane %v869_v15, 7  ;;  %v586_v2 = vrot.slane %v2464_v37, 7  ;;  %v2223_v21 = vld [vmem:[%s2925_s1 + $0xb8] sm:$0xff]  }
  0x21   : > { %2032 = vmatprep.subr.bf16.mxu1 %v2300_v1  ;;  %v1824_v6 = vrot.slane %v2439_v30, 9  ;;  %v1825_v8 = vrot.slane %v2443_v31, 9  ;;  %v594_v9 = vrot.slane %v2472_v39, 7  ;;  %v742_v29 = vcombine.low %v2405_v18, %v2409_v19  ;;  %v2219_v18 = vld [vmem:[%s2925_s1 + $0xa8] sm:$0xff]  }
  0x22   : > { %v866_v43 = vor.u32 %v865_v25, %v862_v23  ;;  %v346_v45 = vsel %vm2501_vm7, %v341_v41, %v345_v22  ;;  %v743_v37 = vcombine.low %v2412_v20, %v2432_v28  ;;  %v1826_v30 = vrot.slane %v2447_v32, 9  ;;  %v2224_v32 = vld [vmem:[%s2925_s1 + $0xf8] sm:$0xff]   ;;  %v231_v25 = vld [vmem:[%s2391_s20 + $0x14] sm:$0x7] }
  0x23   : > { %2013 = vmatpush3.bf16.msra.mxu0 %v2205_v27  ;;  %v889_v27 = vcombine.low %v318_v13, %v332_v16  ;;  %v364_v47 = vcombine.low %v332_v16, %v346_v45  ;;  %v598_v38 = vrot.slane %v2476_v40, 7  ;;  %v587_v19 = vsel %vm2602_vm14, %v1823_v0, %v586_v2  ;;  %v2228_v16 = vld [vmem:[%s2925_s1 + $0x140] sm:$0xff]  }
  0x24   : > { %2033 = vmatpush3.bf16.msra.mxu1 %v2206_v33  ;;  %2038 = vmatprep.subr.bf16.mxu0 %v2300_v1  ;;  %v486_v33 = vcombine.low %v2457_v35, %v2460_v36  ;;  %v371_v35 = vrot.slane %v363_v24, %v2424_v26  ;;  %v867_v48 = vrot.slane %v866_v43, 2  ;;  %v750_v20 = vrot.slane %v742_v29, %v2424_v26  ;;  %v2230_v24 = vld [vmem:[%s2925_s1 + $0x148] sm:$0xff]   ;;  %v2225_v43 = vld [vmem:[%s2925_s1 + $0x100] sm:$0xff]   ;;  %v2233_v29 = vld [vmem:[%s2925_s1 + $0x118] sm:$0xff]  }
  0x25   : > { %2058 = vmatprep.subr.bf16.mxu1 %v2300_v1  ;;  %v2527_v44 = vrot.slane %v889_v27, %v2424_v26  ;;  %v2542_v50 = vrot.slane %v364_v47, %v2424_v26  ;;  %v757_v31 = vrot.slane %v743_v37, %v2424_v26  ;;  %v2622_v39 = vsel %vm2602_vm14, %v1824_v6, %v590_v7 }
  0x26   : > { %v2546_v51 = vsel %vm2501_vm7, %v867_v48, %v871_v42  ;;  %v2626_v40 = vsel %vm2602_vm14, %v1825_v8, %v594_v9  ;;  %v616_v13 = vcombine.low %v587_v19, %v2622_v39  ;;  %v1144_v27 = vcombine.low %v2432_v28, %v231_v25 }
  0x27   : > { %2035 = vmatmul.mubr.bf16.vlgmr.msra.gmra.mrb[0].mxu1 %v486_v33  ;;  %v890_v52 = vcombine.low %v346_v45, %v2546_v51  ;;  %v379_v54 = vcombine.low %v371_v35, %v2542_v50  ;;  %v758_v15 = vcombine.low %v750_v20, %v757_v31  ;;  %v1251_v33 = vrot.slane %v231_v25, %v2424_v26  ;;  %v2232_v45 = vld [vmem:[%s2925_s1 + $0x150] sm:$0xff]   ;;  %v2237_v20 = vld [vmem:[%s2925_s1 + $0x128] sm:$0xff]   ;;  %v2242_v31 = vld [vmem:[%s2925_s1 + $0x178] sm:$0xff]  }
  0x28   : > { %2059 = vmatpush3.bf16.msra.mxu1 %v2210_v11  ;;  %2074 = vmatprep.mubr.msk.bf16.mxu1 %vm2301_vm0, %v2300_v1  ;;  %v2630_v11 = vsel %vm2602_vm14, %v1826_v30, %v598_v38  ;;  %v624_v22 = vrot.slane %v616_v13, %v2424_v26  ;;  %v1851_v42 = vrot.slane %v2454_v34, 9  ;;  %v2229_v34 = vld [vmem:[%s2925_s1 + $0x108] sm:$0xff]   ;;  %v1018_v10 = vcombine.low %v2622_v39, %v2626_v40  ;;  %v2235_v38 = vld [vmem:[%s2925_s1 + $0x120] sm:$0xff]   ;;  %v2248_v13 = vld [vmem:[%s2925_s1 + $0x1d0] sm:$0xff]  }
  0x29   : > { %2060 = vmatprep.subr.bf16.mxu1 %v2300_v1  ;;  %v2555_v55 = vrot.slane %v890_v52, %v2424_v26  ;;  %2015 = vmatmul.mubr.bf16.vlgmr.msra.gmra.mrb[0].mxu0 %v379_v54  ;;  %v617_v14 = vcombine.low %v2626_v40, %v2630_v11  ;;  %v1252_v28 = vcombine.high %v1251_v33, %v1251_v33  ;;  %v1254_v47 = vshrl.u32 %v1251_v33, 16  ;;  %v2244_v39 = vld [vmem:[%s2925_s1 + $0x1c0] sm:$0xff]   ;;  %v2241_v40 = vld [vmem:[%s2925_s1 + $0x138] sm:$0xff]  }
  0x2a   : > { %2039 = vmatpush3.bf16.msra.mxu0 %v2209_v49  ;;  %2054 = vmatprep.mubr.msk.bf16.mxu0 %vm2301_vm0, %v2300_v1  ;;  %v1257_v35 = vshll.u32 %v1251_v33, 16  ;;  %v1000_v54 = vrot.slane %v2509_v3, 7  ;;  %v2236_v3 = vld [vmem:[%s2925_s1 + $0x160] sm:$0xff]   ;;  %v2258_v25 = vld [vmem:[%s2925_s1 + $0x1f8] sm:$0xff]  }
  0x2b   : > { %v905_v58 = vcombine.low %v2527_v44, %v2555_v55  ;;  %2040 = vmatprep.subr.bf16.mxu0 %v2300_v1  ;;  %v2650_v23 = vrot.slane %v617_v14, %v2424_v26  ;;  %v1256_v49 = vrot.slane %v1254_v47, 6  ;;  %v2245_v14 = vld [vmem:[%s2925_s1 + $0x188] sm:$0xff]   ;;  %v2247_v44 = vld [vmem:[%s2925_s1 + $0x190] sm:$0xff]   ;;  %v2252_v55 = vld [vmem:[%s2925_s1 + $0x1e0] sm:$0xff]  }
  0x2c   : > { %2061 = vmatpush3.bf16.msra.mxu1 %v2212_v46  ;;  %v2671_v46 = vrot.slane %v1144_v27, %v2424_v26  ;;  %v1259_v52 = vrot.slane %v1257_v35, 7  ;;  %v1001_v2 = vsel %vm2602_vm14, %v1851_v42, %v1000_v54  ;;  %v2255_v27 = vld [vmem:[%s2925_s1 + $0x1b0] sm:$0xff]   ;;  %v2261_v42 = vld [vmem:[%s2925_s1 + $0x208] sm:$0xff]   ;;  %v2267_v47 = vld [vmem:[%s2925_s1 + $0x238] sm:$0xff]  }
  0x2d   : > { %2062 = vmatprep.subr.bf16.mxu1 %v2300_v1  ;;  %v632_v41 = vcombine.low %v624_v22, %v2650_v23  ;;  %v1019_v30 = vcombine.low %v2630_v11, %v1001_v2  ;;  %v2246_v11 = vld [vmem:[%s2925_s1 + $0x1c8] sm:$0xff]   ;;  %v2256_v22 = vld [vmem:[%s2925_s1 + $0x1f0] sm:$0xff]  }
  0x2e   : > { %2041 = vmatpush3.bf16.msra.mxu0 %v2211_v56  ;;  %v1152_v48 = vcombine.low %v2460_v36, %v2671_v46  ;;  %v1876_v56 = vrot.slane %v1251_v33, 9  ;;  %v2257_v33 = vld [vmem:[%s2925_s1 + $0x1b8] sm:$0xff]   ;;  %v2265_v46 = vld [vmem:[%s2925_s1 + $0x228] sm:$0xff]  }
  0x2f   : > { %2042 = vmatprep.subr.bf16.mxu0 %v2300_v1  ;;  %v1033_v19 = vrot.slane %v1019_v30, %v2424_v26  ;;  %v2263_v36 = vld [vmem:[%s2925_s1 + $0x218] sm:$0xff]   ;;  %v2268_v35 = vld [vmem:[%s2927_s3] ss:$8 sps:$4 sm:$0xff]   ;;  %v2282_v54 = vld [vmem:[%s2927_s3 + $0x44] ss:$8 sps:$4 sm:$0xff]  }
  0x30   : > { %2063 = vmatpush3.bf16.msra.mxu1 %v2214_v53  ;;  %v1263_v53 = vshll.u32 %v1252_v28, 16 }
  0x31   : > { %2064 = vmatprep.subr.bf16.mxu1 %v2300_v1 }
  0x32   : > { %2043 = vmatpush3.bf16.msra.mxu0 %v2213_v59  ;;  %v1260_v59 = vor.u32 %v1259_v52, %v1256_v49  ;;  %v2274_v49 = vld [vmem:[%s2927_s3 + $0x20] ss:$8 sps:$4 sm:$0xff]   ;;  %v2279_v52 = vld [vmem:[%s2927_s3 + $0x34] ss:$8 sps:$4 sm:$0xff]  }
  0x33   : > { %2044 = vmatprep.subr.bf16.mxu0 %v2300_v1 }
  0x34   : > { %2065 = vmatpush3.bf16.msra.mxu1 %v2216_v57  ;;  %v2234_v57 = vld [vmem:[%s2925_s1 + $0x158] sm:$0xff]   ;;  %v1261_v0 = vrot.slane %v1260_v59, 2 }
  0x35   : > { %2066 = vmatprep.subr.bf16.mxu1 %v2300_v1 }
  0x36   : > { %2045 = vmatpush3.bf16.msra.mxu0 %v2215_v61  ;;  %v1386_v61 = vrot.slane %v1252_v28, 7  ;;  %v2266_v28 = vld [vmem:[%s2925_s1 + $0x230] sm:$0xff]  }
  0x37   : > { %2046 = vmatprep.subr.bf16.mxu0 %v2300_v1 }
  0x38   : > { %2067 = vmatpush3.bf16.msra.mxu1 %v2218_v60  ;;  %v1265_v60 = vrot.slane %v1263_v53, 7  ;;  %v2277_v53 = vld [vmem:[%s2927_s3 + $0x30] ss:$8 sps:$4 sm:$0xff]  }
  0x39   : > { %2068 = vmatprep.subr.bf16.mxu1 %v2300_v1 }
  0x3a   : > { %2047 = vmatpush3.bf16.msra.mxu0 %v2217_v4  ;;  %v1387_v4 = vsel %vm2602_vm14, %v1876_v56, %v1386_v61  ;;  %v2280_v56 = vld [vmem:[%s2927_s3 + $0x40] ss:$8 sps:$4 sm:$0xff]  }
  0x3b   : > { %2048 = vmatprep.subr.bf16.mxu0 %v2300_v1  ;;  %v1404_v6 = vcombine.low %v1001_v2, %v1387_v4 }
  0x3c   : > { %2069 = vmatpush3.bf16.msra.mxu1 %v2220_v63  ;;  %v2231_v63 = vld [vmem:[%s2925_s1 + $0x110] sm:$0xff]  }
  0x3d   : > { %2070 = vmatprep.subr.bf16.mxu1 %v2300_v1  ;;  %v2704_v8 = vrot.slane %v1404_v6, %v2424_v26 }
  0x3e   : > { %2049 = vmatpush3.bf16.msra.mxu0 %v2219_v18  ;;  %v2240_v18 = vld [vmem:[%s2925_s1 + $0x170] sm:$0xff]  }
  0x3f   : > { %2050 = vmatprep.subr.bf16.mxu0 %v2300_v1  ;;  %v1412_v37 = vcombine.low %v2650_v23, %v2704_v8  ;;  %v2276_v23 = vld [vmem:[%s2927_s3 + $0x24] ss:$8 sps:$4 sm:$0xff]  }
  0x40   : > { %2071 = vmatpush3.bf16.msra.mxu1 %v2222_v5  ;;  %v1266_v5 = vsel %vm2501_vm7, %v1261_v0, %v1265_v60  ;;  %v2283_v60 = vld [vmem:[%s2927_s3 + $0x50] ss:$8 sps:$4 sm:$0xff]  }
  0x41   : > { %2072 = vmatprep.subr.bf16.mxu1 %v2300_v1  ;;  %v1283_v7 = vcombine.low %v2546_v51, %v1266_v5  ;;  %v2288_v5 = vld [vmem:[%s2927_s3 + $0x64] ss:$8 sps:$4 sm:$0xff]  }
  0x42   : > { %2051 = vmatpush3.bf16.msra.mxu0 %v2221_v12  ;;  %v2243_v12 = vld [vmem:[%s2925_s1 + $0x180] sm:$0xff]  }
  0x43   : > { %2052 = vmatprep.subr.bf16.mxu0 %v2300_v1  ;;  %v1290_v9 = vrot.slane %v1283_v7, %v2424_v26  ;;  %v2286_v7 = vld [vmem:[%s2927_s3 + $0x60] ss:$8 sps:$4 sm:$0xff]  }
  0x44   : > { %2073 = vmatpush3.bf16.msra.mxu1 %v2224_v32 }
  0x45   : > { %2098 = vmatprep.subr.bf16.mxu1 %v2300_v1  ;;  %v2718_v51 = vcombine.low %v2542_v50, %v1290_v9  ;;  %v1026_v50 = vrot.slane %v1018_v10, %v2424_v26  ;;  %v2239_v26 = vld [vmem:[%s2925_s1 + $0x130] sm:$0xff]  }
  0x46   : > { %2053 = vmatpush3.bf16.msra.mxu0 %v2223_v21  ;;  %v2251_v21 = vld [vmem:[%s2925_s1 + $0x1a0] sm:$0xff]  }
  0x47   : > { %2075 = vmatmul.mubr.bf16.vlgmr.msra.gmra.mrb[4].mxu1 %v758_v15  ;;  %2078 = vmatprep.subr.bf16.mxu0 %v2300_v1  ;;  %v1034_v32 = vcombine.low %v1026_v50, %v1033_v19  ;;  %v2250_v15 = vld [vmem:[%s2925_s1 + $0x1d8] sm:$0xff]  }
  0x48   : > { %2099 = vmatpush3.bf16.msra.mxu1 %v2228_v16  ;;  %2114 = vmatprep.mubr.msk.bf16.mxu1 %vm2301_vm0, %v2300_v1  ;;  %v2254_v16 = vld [vmem:[%s2925_s1 + $0x1e8] sm:$0xff]  }
  0x49   : > { %2100 = vmatprep.subr.bf16.mxu1 %v2300_v1  ;;  %2055 = vmatmul.mubr.bf16.vlgmr.msra.gmra.mrb[4].mxu0 %v632_v41  ;;  %v2260_v41 = vld [vmem:[%s2925_s1 + $0x200] sm:$0xff]  }
  0x4a   : > { %2079 = vmatpush3.bf16.msra.mxu0 %v2225_v43  ;;  %2094 = vmatprep.mubr.msk.bf16.mxu0 %vm2301_vm0, %v2300_v1  ;;  %v2262_v43 = vld [vmem:[%s2925_s1 + $0x210] sm:$0xff]  }
  0x4b   : > { %2080 = vmatprep.subr.bf16.mxu0 %v2300_v1 }
  0x4c   : > { %2101 = vmatpush3.bf16.msra.mxu1 %v2230_v24  ;;  %v2253_v24 = vld [vmem:[%s2925_s1 + $0x1a8] sm:$0xff]  }
  0x4d   : > { %2102 = vmatprep.subr.bf16.mxu1 %v2300_v1 }
  0x4e   : > { %2081 = vmatpush3.bf16.msra.mxu0 %v2229_v34  ;;  %v2270_v34 = vld [vmem:[%s2927_s3 + $0x4] ss:$8 sps:$4 sm:$0xff]  }
  0x4f   : > { %2082 = vmatprep.subr.bf16.mxu0 %v2300_v1 }
  0x50   : > { %2103 = vmatpush3.bf16.msra.mxu1 %v2232_v45  ;;  %v2264_v45 = vld [vmem:[%s2925_s1 + $0x220] sm:$0xff]  }
  0x51   : > { %2104 = vmatprep.subr.bf16.mxu1 %v2300_v1 }
  0x52   : > { %2083 = vmatpush3.bf16.msra.mxu0 %v2231_v63 }
  0x53   : > { %2084 = vmatprep.subr.bf16.mxu0 %v2300_v1 }
  0x54   : > { %2105 = vmatpush3.bf16.msra.mxu1 %v2234_v57  ;;  %v2285_v57 = vld [vmem:[%s2927_s3 + $0x54] ss:$8 sps:$4 sm:$0xff]  }
  0x55   : > { %2106 = vmatprep.subr.bf16.mxu1 %v2300_v1 }
  0x56   : > { %2085 = vmatpush3.bf16.msra.mxu0 %v2233_v29  ;;  %v2291_v29 = vld [vmem:[%s2927_s3 + $0x74] ss:$8 sps:$4 sm:$0xff]  }
  0x57   : > { %2086 = vmatprep.subr.bf16.mxu0 %v2300_v1 }
  0x58   : > { %2107 = vmatpush3.bf16.msra.mxu1 %v2236_v3 }
  0x59   : > { %2108 = vmatprep.subr.bf16.mxu1 %v2300_v1 }
  0x5a   : > { %2087 = vmatpush3.bf16.msra.mxu0 %v2235_v38 }
  0x5b   : > { %2088 = vmatprep.subr.bf16.mxu0 %v2300_v1 }
  0x5c   : > { %2109 = vmatpush3.bf16.msra.mxu1 %v2238_v62  ;;  %v2289_v62 = vld [vmem:[%s2927_s3 + $0x70] ss:$8 sps:$4 sm:$0xff]  }
  0x5d   : > { %2110 = vmatprep.subr.bf16.mxu1 %v2300_v1 }
  0x5e   : > { %2089 = vmatpush3.bf16.msra.mxu0 %v2237_v20 }
  0x5f   : > { %2090 = vmatprep.subr.bf16.mxu0 %v2300_v1 }
  0x60   : > { %2111 = vmatpush3.bf16.msra.mxu1 %v2240_v18 }
  0x61   : > { %2112 = vmatprep.subr.bf16.mxu1 %v2300_v1 }
  0x62   : > { %2091 = vmatpush3.bf16.msra.mxu0 %v2239_v26 }
  0x63   : > { %2092 = vmatprep.subr.bf16.mxu0 %v2300_v1 }
  0x64   : > { %2113 = vmatpush3.bf16.msra.mxu1 %v2242_v31 }
  0x65   : > { %2138 = vmatprep.subr.bf16.mxu1 %v2300_v1 }
  0x66   : > { %2093 = vmatpush3.bf16.msra.mxu0 %v2241_v40 }
  0x67   : > { %2115 = vmatmul.mubr.bf16.vlgmr.msra.gmra.mrb[8].mxu1 %v1034_v32  ;;  %2118 = vmatprep.subr.bf16.mxu0 %v2300_v1 }
  0x68   : > { %2139 = vmatpush3.bf16.msra.mxu1 %v2244_v39  ;;  %2154 = vmatprep.mubr.msk.bf16.mxu1 %vm2301_vm0, %v2300_v1 }
  0x69   : > { %2140 = vmatprep.subr.bf16.mxu1 %v2300_v1  ;;  %2095 = vmatmul.mubr.bf16.vlgmr.msra.gmra.mrb[8].mxu0 %v905_v58  ;;  %v2249_v58 = vld [vmem:[%s2925_s1 + $0x198] sm:$0xff]  }
  0x6a   : > { %2119 = vmatpush3.bf16.msra.mxu0 %v2243_v12  ;;  %2134 = vmatprep.mubr.msk.bf16.mxu0 %vm2301_vm0, %v2300_v1 }
  0x6b   : > { %2120 = vmatprep.subr.bf16.mxu0 %v2300_v1 }
  0x6c   : > { %2141 = vmatpush3.bf16.msra.mxu1 %v2246_v11 }
  0x6d   : > { %2142 = vmatprep.subr.bf16.mxu1 %v2300_v1 }
  0x6e   : > { %2121 = vmatpush3.bf16.msra.mxu0 %v2245_v14 }
  0x6f   : > { %2122 = vmatprep.subr.bf16.mxu0 %v2300_v1 }
  0x70   : > { %2143 = vmatpush3.bf16.msra.mxu1 %v2248_v13 }
  0x71   : > { %2144 = vmatprep.subr.bf16.mxu1 %v2300_v1 }
  0x72   : > { %2123 = vmatpush3.bf16.msra.mxu0 %v2247_v44 }
  0x73   : > { %2124 = vmatprep.subr.bf16.mxu0 %v2300_v1 }
  0x74   : > { %2145 = vmatpush3.bf16.msra.mxu1 %v2250_v15 }
  0x75   : > { %2146 = vmatprep.subr.bf16.mxu1 %v2300_v1 }
  0x76   : > { %2125 = vmatpush3.bf16.msra.mxu0 %v2249_v58 }
  0x77   : > { %2126 = vmatprep.subr.bf16.mxu0 %v2300_v1 }
  0x78   : > { %2147 = vmatpush3.bf16.msra.mxu1 %v2252_v55 }
  0x79   : > { %2148 = vmatprep.subr.bf16.mxu1 %v2300_v1 }
  0x7a   : > { %2127 = vmatpush3.bf16.msra.mxu0 %v2251_v21 }
  0x7b   : > { %2128 = vmatprep.subr.bf16.mxu0 %v2300_v1 }
  0x7c   : > { %2149 = vmatpush3.bf16.msra.mxu1 %v2254_v16 }
  0x7d   : > { %2150 = vmatprep.subr.bf16.mxu1 %v2300_v1 }
  0x7e   : > { %2129 = vmatpush3.bf16.msra.mxu0 %v2253_v24 }
  0x7f   : > { %2130 = vmatprep.subr.bf16.mxu0 %v2300_v1 }
  0x80   : > { %2151 = vmatpush3.bf16.msra.mxu1 %v2256_v22 }
  0x81   : > { %2152 = vmatprep.subr.bf16.mxu1 %v2300_v1 }
  0x82   : > { %2131 = vmatpush3.bf16.msra.mxu0 %v2255_v27 }
  0x83   : > { %2132 = vmatprep.subr.bf16.mxu0 %v2300_v1 }
  0x84   : > { %2153 = vmatpush3.bf16.msra.mxu1 %v2258_v25 }
  0x85   : > { %1625 = vmatprep.subr.bf16.mxu1 %v2270_v34  ;;  %v1885_v34 = vld [vmem:[%s2926_s2] ss:$0 sm:$0xff] }
  0x86   : > { %2133 = vmatpush3.bf16.msra.mxu0 %v2257_v33 }
  0x87   : > { %2155 = vmatmul.mubr.bf16.vlgmr.msra.gmra.mrb[12].mxu1 %v2718_v51  ;;  %2158 = vmatprep.subr.bf16.mxu0 %v2300_v1 }
  0x88   : > { %1626 = vmatpush1.bf16.msra.mxu1 %v2268_v35 }
  0x89   : > { %2135 = vmatmul.mubr.bf16.vlgmr.msra.gmra.mrb[12].mxu0 %v1152_v48  ;;  %v2273_v48 = vld [vmem:[%s2927_s3 + $0x14] ss:$8 sps:$4 sm:$0xff]  }
  0x8a   : > { %2159 = vmatpush3.bf16.msra.mxu0 %v2260_v41  ;;  %2174 = vmatprep.mubr.msk.bf16.mxu0 %vm2301_vm0, %v2300_v1 }
  0x8b   : > { %2160 = vmatprep.subr.bf16.mxu0 %v2300_v1  ;;  %1627 = vmatprep.subr.bf16.mxu1 %v2273_v48 }
  0x8e   : > { %2161 = vmatpush3.bf16.msra.mxu0 %v2261_v42 }
  0x8f   : > { %2162 = vmatprep.subr.bf16.mxu0 %v2300_v1 }
  0x92   : > { %2163 = vmatpush3.bf16.msra.mxu0 %v2262_v43 }
  0x93   : > { %2164 = vmatprep.subr.bf16.mxu0 %v2300_v1 }
  0x96   : > { %2165 = vmatpush3.bf16.msra.mxu0 %v2263_v36 }
  0x97   : > { %2166 = vmatprep.subr.bf16.mxu0 %v2300_v1 }
  0x9a   : > { %2167 = vmatpush3.bf16.msra.mxu0 %v2264_v45 }
  0x9b   : > { %2168 = vmatprep.subr.bf16.mxu0 %v2300_v1 }
  0x9e   : > { %2169 = vmatpush3.bf16.msra.mxu0 %v2265_v46 }
  0x9f   : > { %2170 = vmatprep.subr.bf16.mxu0 %v2300_v1 }
  0xa2   : > { %2171 = vmatpush3.bf16.msra.mxu0 %v2266_v28 }
  0xa3   : > { %2172 = vmatprep.subr.bf16.mxu0 %v2300_v1  ;;  %v2271_v1 = vld [vmem:[%s2927_s3 + $0x10] ss:$8 sps:$4 sm:$0xff]  }
  0xa4   : > { %1628 = vmatpush1.bf16.msra.mxu1 %v2271_v1 }
  0xa5   : > { %1629 = vmatprep.subr.bf16.mxu1 %v2276_v23 }
  0xa6   : > { %2173 = vmatpush3.bf16.msra.mxu0 %v2267_v47 }
  0xa8   : > { %1630 = vmatpush1.bf16.msra.mxu1 %v2274_v49 }
  0xa9   : > { %2175 = vmatmul.mubr.bf16.vlgmr.msra.gmra.mrb[16].mxu0 %v1412_v37  ;;  %1631 = vmatprep.subr.bf16.mxu1 %v2279_v52  ;;  %v2303_v37 = vmov 0  }
  0xaa   : > { %1657 = vmatprep.mubr.bf16.mxu1 %v2303_v37 }
  0xac   : > { %1632 = vmatpush1.bf16.msra.mxu1 %v2277_v53 }
  0xad   : > { %1633 = vmatprep.subr.bf16.mxu1 %v2282_v54 }
  0xb0   : > { %1634 = vmatpush1.bf16.msra.mxu1 %v2280_v56 }
  0xb1   : > { %1635 = vmatprep.subr.bf16.mxu1 %v2285_v57 }
  0xb4   : > { %1636 = vmatpush1.bf16.msra.mxu1 %v2283_v60  ;;  %v1537_v60 = vsub.s32 0, %v2401_v17 }
  0xb5   : > { %1637 = vmatprep.subr.bf16.mxu1 %v2288_v5 }
  0xb8   : > { %1638 = vmatpush1.bf16.msra.mxu1 %v2286_v7 }
  0xb9   : > { %1639 = vmatprep.subr.bf16.mxu1 %v2291_v29 }
  0xbc   : > { %1640 = vmatpush1.bf16.msra.mxu1 %v2289_v62 }
  0xfa   : > { %v570_v59 = vpop.f32.mrb[0].mxu1 }
  0xfb   : > { %v2036_v61 = vpop.f32.mrb[1].mxu1 }
  0xfc   : > { %v573_v63 = vpop.f32.mrb[2].mxu1  ;;  %v463_v0 = vpop.f32.mrb[0].mxu0  ;;  %v1533_v61 = vld [vmem:[%s2928_s4] sm:$0x3] }
  0xfd   : > { %v2037_v3 = vpop.f32.mrb[3].mxu1  ;;  %v571_v2 = vadd.f32 %v570_v59, %v463_v0  ;;  %v2016_v4 = vpop.f32.mrb[1].mxu0 }
  0xfe   : > { %v466_v6 = vpop.f32.mrb[2].mxu0  ;;  %v1538_v3 = vrot.slane %v1533_v61, %v1537_v60 }
  0xff   : > { %v574_v8 = vadd.f32 %v573_v63, %v466_v6  ;;  %v2017_v9 = vpop.f32.mrb[3].mxu0  ;;  %v1541_v63 = vsub.s32 1, %v2401_v17 }
 0x101   : > { %v1542_v0 = vrot.slane %v1533_v61, %v1541_v63 }
 0x11a   : > { %v842_v51 = vpop.f32.mrb[4].mxu1 }
 0x11b   : > { %v2076_v10 = vpop.f32.mrb[5].mxu1 }
 0x11c   : > { %v845_v30 = vpop.f32.mrb[6].mxu1  ;;  %v716_v18 = vpop.f32.mrb[4].mxu0 }
 0x11d   : > { %v2077_v38 = vpop.f32.mrb[7].mxu1  ;;  %v723_v50 = vadd.f32 %v716_v18, %v571_v2  ;;  %v2056_v19 = vpop.f32.mrb[5].mxu0 }
 0x11e   : > { %v719_v20 = vpop.f32.mrb[6].mxu0 }
 0x11f   : > { %v724_v31 = vadd.f32 %v719_v20, %v574_v8  ;;  %v849_v32 = vadd.f32 %v842_v51, %v723_v50  ;;  %v2057_v26 = vpop.f32.mrb[7].mxu0 }
 0x121   : > { %v850_v39 = vadd.f32 %v845_v30, %v724_v31 }
 0x13a   : > { %v1118_v40 = vpop.f32.mrb[8].mxu1 }
 0x13b   : > { %v2116_v11 = vpop.f32.mrb[9].mxu1 }
 0x13c   : > { %v1121_v12 = vpop.f32.mrb[10].mxu1  ;;  %v989_v14 = vpop.f32.mrb[8].mxu0 }
 0x13d   : > { %v2117_v13 = vpop.f32.mrb[11].mxu1  ;;  %v996_v15 = vadd.f32 %v989_v14, %v849_v32  ;;  %v2096_v44 = vpop.f32.mrb[9].mxu0 }
 0x13e   : > { %v992_v55 = vpop.f32.mrb[10].mxu0 }
 0x13f   : > { %v997_v58 = vadd.f32 %v992_v55, %v850_v39  ;;  %v1125_v16 = vadd.f32 %v1118_v40, %v996_v15  ;;  %v2097_v21 = vpop.f32.mrb[11].mxu0 }
 0x141   : > { %v1126_v22 = vadd.f32 %v1121_v12, %v997_v58 }
 0x15a   : > { %v1375_v24 = vpop.f32.mrb[12].mxu1 }
 0x15b   : > { %v2156_v25 = vpop.f32.mrb[13].mxu1 }
 0x15c   : > { %v1378_v27 = vpop.f32.mrb[14].mxu1  ;;  %v1236_v41 = vpop.f32.mrb[12].mxu0 }
 0x15d   : > { %v2157_v33 = vpop.f32.mrb[15].mxu1  ;;  %v1243_v42 = vadd.f32 %v1236_v41, %v1125_v16  ;;  %v2136_v43 = vpop.f32.mrb[13].mxu0 }
 0x15e   : > { %v1239_v36 = vpop.f32.mrb[14].mxu0 }
 0x15f   : > { %v1244_v45 = vadd.f32 %v1239_v36, %v1126_v22  ;;  %v1382_v46 = vadd.f32 %v1375_v24, %v1243_v42  ;;  %v2137_v28 = vpop.f32.mrb[15].mxu0 }
 0x161   : > { %v1383_v47 = vadd.f32 %v1378_v27, %v1244_v45 }
 0x17c   : > { %v1496_v35 = vpop.f32.mrb[16].mxu0 }
 0x17d   : > { %v1503_v48 = vadd.f32 %v1496_v35, %v1382_v46  ;;  %v2176_v1 = vpop.f32.mrb[17].mxu0 }
 0x17e   : > { %v1499_v23 = vpop.f32.mrb[18].mxu0 }
 0x17f   : > { %v1512_v49 = vadd.f32 %v1885_v34, %v1503_v48  ;;  %v1504_v52 = vadd.f32 %v1499_v23, %v1383_v47  ;;  %v2177_v53 = vpop.f32.mrb[19].mxu0 }
 0x181   : > { %v1513_v54 = vadd.f32 %v1885_v34, %v1504_v52  ;;  %v1514_v56 = vmax.f32 %v1512_v49, 0.0 }
 0x183   : > { %v1515_v57 = vmax.f32 %v1513_v54, 0.0 }
 0x185   : > { %v1516_v59 = vpack.c.bf16 %v1515_v57, %v1514_v56 }
 0x187   : > { %1658 = vmatmul.mubr.bf16.vlgmr.msra.gmra.mrb[16].mxu1 %v1516_v59 }
 0x25a   : > { %v1659_v2 = vpop.f32.mrb[16].mxu1 }
 0x25b   : > { %v1660_v4 = vadd.f32 %v1659_v2, %v1538_v3  ;;  %v1661_v5 = vpop.f32.mrb[17].mxu1 }
 0x25c   : > { %v1662_v6 = vadd.f32 %v1661_v5, %v1542_v0  ;;  %v1663_v7 = vpop.f32.mrb[18].mxu1 }
 0x25d   : > { %v1664_v8 = vadd.f32 %v1663_v7, %v1538_v3  ;;  %v1665_v9 = vpop.f32.mrb[19].mxu1 }
 0x25e   : > { %v1672_v29 = vcombine.low %v1660_v4, %v1662_v6  ;;  %v1673_v62 = vcombine.high %v1660_v4, %v1662_v6  ;;  %v1902_v37 = vcombine.low %v1662_v6, %v1662_v6  ;;  %v1903_v51 = vcombine.high %v1662_v6, %v1662_v6 }
 0x25f   : > { %v1666_v10 = vadd.f32 %v1665_v9, %v1542_v0 }
 0x260   : > { %v1906_v17 = vpack.c.bf16 %v1902_v37, %v1672_v29  ;;  %v1907_v30 = vpack.c.bf16 %v1903_v51, %v1673_v62 }
 0x261   : > { %v1674_v38 = vcombine.low %v1664_v8, %v1666_v10  ;;  %v1675_v18 = vcombine.high %v1664_v8, %v1666_v10  ;;  %v1904_v50 = vcombine.low %v1666_v10, %v1666_v10  ;;  %v1905_v19 = vcombine.high %v1666_v10, %v1666_v10 }
 0x262   : > { %1910 = vst.sshfl [vmem:[%s224_s25] sm:$0x33 pattern:$0x76325410] %v1906_v17 }
 0x263   : > { %1911 = vst.sshfl [vmem:[%s224_s25 + $0x4] sm:$0x33 pattern:$0x76325410] %v1907_v30  ;;  %v1908_v20 = vpack.c.bf16 %v1904_v50, %v1674_v38  ;;  %v1909_v31 = vpack.c.bf16 %v1905_v19, %v1675_v18 }
 0x265   : > { %1912 = vst.sshfl [vmem:[%s224_s25 + $0x8] sm:$0x33 pattern:$0x76325410] %v1908_v20 }
 0x266   : > { %1913 = vst.sshfl [vmem:[%s224_s25 + $0xc] sm:$0x33 pattern:$0x76325410] %v1909_v31 }
 0x267 PF: > { %s15_s18 = sadd.s32 1, %s2298_s18  }
 0x268   : > { %p12_p4 = scmp.ge.s32.totalorder %s15_s18, 4  }
 0x26a   :  { %14 = sbr.rel (!%p12_p4) target bundleno = 1 (0x1), region = 70 }

</bundles_post_ra>
